<compile_context>
chip_gen: v6e
topology: v6e:2x2x1
jax: 0.10.0
libtpu: 0.0.40
codegen_flags: <defaults>
</compile_context>

<pallas_src>
import functools

import jax
import jax.numpy as jnp
from jax.experimental import pallas as pl
from jax.experimental.pallas import tpu as pltpu

EPS = 1e-5


def _vmem_limit_bytes() -> int:
    """Generation-aware VMEM budget: ~3/4 of physical, capped at 100 MiB."""
    cap = 128 * 1024 * 1024
    try:
        info = pltpu.get_tpu_info()
        cap = int(getattr(info, "vmem_capacity_bytes", cap))
    except Exception:
        pass
    return max(32 * 1024 * 1024, min(100 * 1024 * 1024, (cap * 3) // 4))


def _has_256_wide_mxu() -> bool:
    """v6e / v7x have 256-wide MXUs; v5e (and older) are 128-wide."""
    try:
        kind = jax.devices()[0].device_kind.lower()
    except Exception:
        return False
    return ("v6" in kind) or ("v7" in kind)


def _pick_tri(h, w, cin, tn, vmem_budget):
    """Largest row-block size (divisor of h) whose working set fits the budget."""
    wp = w + 2

    def est(tri):
        b = 2 * tri * wp * cin * 2              # main input block (double buffered)
        b += 2 * 2 * wp * cin * 2               # halo rows (double buffered)
        b += 2 * 16 * cin * tn * 2              # folded weights (double buffered)
        b += 2 * (2 * tri) * (2 * w) * tn * 4   # output block (double buffered)
        b += (tri + 2) * wp * cin * 2           # assembled haloed block
        b += 3 * (tri + 2) * w * cin * 2        # column-shifted copies
        b += 4 * tri * w * tn * 4               # per-subpixel f32 accumulators
        b += 3 * (2 * tri) * (2 * w) * tn * 4   # interleave temporaries
        return b

    best = 1
    for d in range(1, h + 1):
        if h % d == 0 and est(d) <= vmem_budget:
            best = d
    return best


# ----------------------------------------------------------------------------
# Fused kernel: 4 sub-pixel 2x2 convs (16 MXU matmuls) + BN scale/bias + ReLU
# ----------------------------------------------------------------------------
def _upconv_kernel(xm_ref, xh0_ref, xh1_ref, w_ref, s_ref, b_ref, o_ref, *,
                   tri, w_in, cin):
    """One (batch, row-block, Cout-tile) grid step.

    xm_ref : (1, TRI, W+2, Cin) bf16  padded input rows [rb*TRI, rb*TRI+TRI)
    xh0_ref: (1, 1,   W+2, Cin) bf16  padded input row   rb*TRI+TRI
    xh1_ref: (1, 1,   W+2, Cin) bf16  padded input row   rb*TRI+TRI+1
    w_ref  : (4, 4, Cin, TN)    bf16  w_ref[2a+b, 2p+q] = folded 2x2 tap
    s_ref  : (1, TN) f32  BN scale ;  b_ref : (1, TN) f32  BN bias (+conv bias)
    o_ref  : (1, 2*TRI, 2*W, TN) f32
    """
    tn = o_ref.shape[-1]
    tro = 2 * tri
    wo = 2 * w_in
    m = tri * w_in

    # Haloed padded row block, assembled along the (cheap) outer axis.
    xb = jnp.concatenate([xm_ref[0], xh0_ref[0], xh1_ref[0]], axis=0)

    # The only sublane-unaligned copies: 3 column-shifted views (orig. res.).
    xc = [xb[:, c:c + w_in, :] for c in range(3)]
    # Nine (M, Cin) matmul operands = cheap outer-dim row slices of those.
    v = [[xc[c][r:r + tri, :, :].reshape(m, cin) for c in range(3)]
         for r in range(3)]

    # y[2i+a, 2j+b] = sum_{p,q in {0,1}} x_pad[i+a+p, j+b+q] @ W_eff[a,b,p,q]
    sub = [[None, None], [None, None]]
    for a in range(2):
        for b in range(2):
            acc = None
            for p in range(2):
                for q in range(2):
                    d = jnp.dot(v[a + p][b + q], w_ref[2 * a + b, 2 * p + q],
                                preferred_element_type=jnp.float32)
                    acc = d if acc is None else acc + d
            sub[a][b] = acc.reshape(tri, w_in, tn)

    # Interleave the 4 sub-pixel images: columns (j,b)->2j+b, rows (i,a)->2i+a.
    rows = []
    for a in range(2):
        s0, s1 = sub[a]
        ci = jnp.concatenate([s0[:, :, None, :], s1[:, :, None, :]], axis=2)
        rows.append(ci.reshape(tri, wo, tn))
    y = jnp.concatenate([rows[0][:, None], rows[1][:, None]], axis=1)
    y = y.reshape(tro, wo, tn)

    # Fused eval-mode BatchNorm (conv bias folded in) + ReLU, in f32.
    y = jnp.maximum(y * s_ref[...] + b_ref[...], 0.0)
    o_ref[...] = y.reshape(1, tro, wo, tn).astype(o_ref.dtype)


# ----------------------------------------------------------------------------
# Wrapper
# ----------------------------------------------------------------------------
def upconv_pallas(x_nchw, w_hwio, conv_bias, bn_gamma, bn_beta, bn_mean,
                  bn_var, *, eps=EPS):
    """UpConv forward: Upsample(2x, nearest) -> Conv3x3(+bias) -> BN(eval) -> ReLU.

    x_nchw : (N, Cin, H, W) f32      w_hwio : (3, 3, Cin, Cout) f32
    returns: (N, Cout, 2H, 2W) f32
    """
    N, Cin, H, W = x_nchw.shape
    kh, kw, wcin, Cout = w_hwio.shape
    assert (kh, kw, wcin) == (3, 3, Cin)
    Ho, Wo = 2 * H, 2 * W
    Wp = W + 2

    # ---- fold eval-mode BN + conv bias into per-channel scale / bias -------
    scale = (bn_gamma / jnp.sqrt(bn_var + eps)).astype(jnp.float32)
    fbias = ((conv_bias - bn_mean) * scale + bn_beta).astype(jnp.float32)

    # ---- output-channel tile: 256 on 256-wide MXUs when Cout allows --------
    TN = 256 if (_has_256_wide_mxu() and Cout > 128) else 128
    Cp = ((Cout + TN - 1) // TN) * TN
    nJ = Cp // TN

    # ---- fold Upsample(2x nearest)+Conv3x3 into four 2x2 sub-pixel convs ---
    # output pixel (2i+a, 2j+b) = sum_{p,q} x_pad[i+a+p, j+b+q] @ W_eff[a,b,p,q]
    sets = ((0,), (1, 2)), ((0, 1), (2,))      # [parity][tap] -> source 3x3 taps
    taps = []
    for a in range(2):
        for b in range(2):
            for p in range(2):
                for q in range(2):
                    t = None
                    for dy in sets[a][p]:
                        for dx in sets[b][q]:
                            u = w_hwio[dy, dx]
                            t = u if t is None else t + u
                    taps.append(t)
    weff = jnp.stack(taps).reshape(4, 4, Cin, Cout)
    if Cp != Cout:
        weff = jnp.pad(weff, ((0, 0), (0, 0), (0, 0), (0, Cp - Cout)))
        scale = jnp.pad(scale, (0, Cp - Cout))
        fbias = jnp.pad(fbias, (0, Cp - Cout))
    weff = weff.astype(jnp.bfloat16)            # bf16 MXU operands
    scale2 = scale.reshape(1, Cp)
    bias2 = fbias.reshape(1, Cp)

    # ---- activations: single host-side pass (NCHW->NHWC, pad 1, bf16) ------
    xp = jnp.pad(jnp.transpose(x_nchw, (0, 2, 3, 1)),
                 ((0, 0), (1, 1), (1, 1), (0, 0))).astype(jnp.bfloat16)

    # ---- row-block size from the generation-aware VMEM budget --------------
    vmem_budget = _vmem_limit_bytes()
    TRI = _pick_tri(H, W, Cin, TN, int(vmem_budget * 0.6))
    nRB = H // TRI
    TRO = 2 * TRI

    kernel = functools.partial(_upconv_kernel, tri=TRI, w_in=W, cin=Cin)

    flops = 2 * N * H * W * 16 * Cin * Cp
    bytes_accessed = (xp.size * 2 + weff.size * 2 + scale2.size * 4
                      + bias2.size * 4 + N * Ho * Wo * Cp * 4)

    out = pl.pallas_call(
        kernel,
        out_shape=jax.ShapeDtypeStruct((N, Ho, Wo, Cp), jnp.float32),
        grid=(N, nRB, nJ),
        in_specs=[
            # main row block: padded rows [rb*TRI, rb*TRI + TRI)
            pl.BlockSpec((1, TRI, Wp, Cin), lambda n, r, j: (n, r, 0, 0)),
            # 1-row halo blocks: padded rows rb*TRI+TRI and rb*TRI+TRI+1
            pl.BlockSpec((1, 1, Wp, Cin),
                         lambda n, r, j: (n, (r + 1) * TRI, 0, 0)),
            pl.BlockSpec((1, 1, Wp, Cin),
                         lambda n, r, j: (n, (r + 1) * TRI + 1, 0, 0)),
            # folded 2x2 weights (tap-major), one Cout tile
            pl.BlockSpec((4, 4, Cin, TN), lambda n, r, j: (0, 0, 0, j)),
            pl.BlockSpec((1, TN), lambda n, r, j: (0, j)),   # BN scale
            pl.BlockSpec((1, TN), lambda n, r, j: (0, j)),   # BN bias (+conv bias)
        ],
        out_specs=pl.BlockSpec((1, TRO, Wo, TN), lambda n, r, j: (n, r, 0, j)),
        compiler_params=pltpu.CompilerParams(
            # Activation block indices do not depend on j (innermost axis), so
            # the pipeline skips re-fetching them per output-channel tile.
            dimension_semantics=("parallel", "parallel", "arbitrary"),
            vmem_limit_bytes=vmem_budget,
        ),
        cost_estimate=pl.CostEstimate(
            flops=flops, transcendentals=0, bytes_accessed=bytes_accessed),
    )(xp, xp, xp, weff, scale2, bias2)

    if Cp != Cout:
        out = out[..., :Cout]
    return jnp.transpose(out, (0, 3, 1, 2))          # NHWC -> NCHW (module API)


# ----------------------------------------------------------------------------
# Pure-JAX reference (same bf16-rounded inputs) for a correctness check
# ----------------------------------------------------------------------------
def upconv_reference(x_nchw, w_hwio, conv_bias, bn_gamma, bn_beta, bn_mean,
                     bn_var, eps=EPS):
    scale = bn_gamma / jnp.sqrt(bn_var + eps)
    bias = (conv_bias - bn_mean) * scale + bn_beta
    x = jnp.transpose(x_nchw, (0, 2, 3, 1)).astype(jnp.bfloat16).astype(jnp.float32)
    w = w_hwio.astype(jnp.bfloat16).astype(jnp.float32)
    up = jnp.repeat(jnp.repeat(x, 2, axis=1), 2, axis=2)       # nearest 2x
    y = jax.lax.conv_general_dilated(
        up, w, window_strides=(1, 1), padding=((1, 1), (1, 1)),
        dimension_numbers=("NHWC", "HWIO", "NHWC"),
        precision=jax.lax.Precision.HIGHEST)
    y = jnp.maximum(y * scale + bias, 0.0)
    return jnp.transpose(y, (0, 3, 1, 2))


if __name__ == "__main__":
    key = jax.random.PRNGKey(0)
    k_x, k_w, k_b, k_g, k_be, k_m, k_v = jax.random.split(key, 7)

    # Small shapes consistent with UpConv usage in the attention U-Net
    # (channels halve across an up-conv): Cin=256 -> Cout=128, 8x8 -> 16x16.
    N, Cin, H, W = 2, 256, 8, 8
    Cout = 128

    x = jax.random.normal(k_x, (N, Cin, H, W), jnp.float32)
    w = jax.random.normal(k_w, (3, 3, Cin, Cout), jnp.float32) / jnp.sqrt(9.0 * Cin)
    conv_b = 0.05 * jax.random.normal(k_b, (Cout,), jnp.float32)
    gamma = 1.0 + 0.1 * jax.random.normal(k_g, (Cout,), jnp.float32)
    beta = 0.1 * jax.random.normal(k_be, (Cout,), jnp.float32)
    mean = 0.1 * jax.random.normal(k_m, (Cout,), jnp.float32)
    var = 1.0 + 0.1 * jnp.abs(jax.random.normal(k_v, (Cout,), jnp.float32))

    fwd = jax.jit(upconv_pallas)
    out = fwd(x, w, conv_b, gamma, beta, mean, var)
    jax.block_until_ready(out)

    assert out.shape == (N, Cout, 2 * H, 2 * W), out.shape
    assert bool(jnp.all(jnp.isfinite(out)))

    ref = upconv_reference(x, w, conv_b, gamma, beta, mean, var)
    max_err = float(jnp.max(jnp.abs(out - ref)))
    assert max_err < 5e-2, f"max abs error {max_err}"

    print("KERNEL_OK")
</pallas_src>

<mosaic_0001>
module attributes {stable_mosaic.version = 11 : i64} {
  func.func @_upconv_kernel(%arg0: i32, %arg1: i32, %arg2: i32, %arg3: memref<1x8x10x256xbf16, #tpu.memory_space<vmem>>, %arg4: memref<1x1x10x256xbf16, #tpu.memory_space<vmem>>, %arg5: memref<1x1x10x256xbf16, #tpu.memory_space<vmem>>, %arg6: memref<4x4x256x128xbf16, #tpu.memory_space<vmem>>, %arg7: memref<1x128xf32, #tpu.memory_space<vmem>>, %arg8: memref<1x128xf32, #tpu.memory_space<vmem>>, %arg9: memref<1x16x16x128xf32, #tpu.memory_space<vmem>>) attributes {dimension_semantics = [#tpu.dimension_semantics<parallel>, #tpu.dimension_semantics<parallel>, #tpu.dimension_semantics<arbitrary>], iteration_bounds = array<i64: 2, 1, 1>, scalar_prefetch = 0 : i64, scratch_operands = 0 : i64, tpu.core_type = #tpu.core_type<tc>, window_params = [{transform_indices = @transform_0, window_bounds = array<i64: 1, 8, 10, 256>}, {transform_indices = @transform_1, window_bounds = array<i64: 1, 1, 10, 256>}, {transform_indices = @transform_2, window_bounds = array<i64: 1, 1, 10, 256>}, {transform_indices = @transform_3, window_bounds = array<i64: 4, 4, 256, 128>}, {transform_indices = @transform_4, window_bounds = array<i64: 1, 128>}, {transform_indices = @transform_5, window_bounds = array<i64: 1, 128>}, {transform_indices = @transform_6, window_bounds = array<i64: 1, 16, 16, 128>}]} {
    %c0 = arith.constant 0 : index
    %c0_0 = arith.constant 0 : index
    %c0_1 = arith.constant 0 : index
    %c0_2 = arith.constant 0 : index
    %0 = vector.load %arg3[%c0, %c0_0, %c0_1, %c0_2] : memref<1x8x10x256xbf16, #tpu.memory_space<vmem>>, vector<1x8x10x256xbf16>
    %1 = vector.shape_cast %0 : vector<1x8x10x256xbf16> to vector<8x10x256xbf16>
    %c0_3 = arith.constant 0 : index
    %c0_4 = arith.constant 0 : index
    %c0_5 = arith.constant 0 : index
    %c0_6 = arith.constant 0 : index
    %2 = vector.load %arg4[%c0_3, %c0_4, %c0_5, %c0_6] : memref<1x1x10x256xbf16, #tpu.memory_space<vmem>>, vector<1x1x10x256xbf16>
    %3 = vector.shape_cast %2 : vector<1x1x10x256xbf16> to vector<1x10x256xbf16>
    %c0_7 = arith.constant 0 : index
    %c0_8 = arith.constant 0 : index
    %c0_9 = arith.constant 0 : index
    %c0_10 = arith.constant 0 : index
    %4 = vector.load %arg5[%c0_7, %c0_8, %c0_9, %c0_10] : memref<1x1x10x256xbf16, #tpu.memory_space<vmem>>, vector<1x1x10x256xbf16>
    %5 = vector.shape_cast %4 : vector<1x1x10x256xbf16> to vector<1x10x256xbf16>
    %6 = tpu.concatenate %1, %3, %5 in 0 : vector<8x10x256xbf16>, vector<1x10x256xbf16>, vector<1x10x256xbf16> -> vector<10x10x256xbf16>
    %7 = vector.extract_strided_slice %6 {offsets = [0, 0, 0], sizes = [10, 8, 256], strides = [1, 1, 1]} : vector<10x10x256xbf16> to vector<10x8x256xbf16>
    %8 = vector.extract_strided_slice %6 {offsets = [0, 1, 0], sizes = [10, 8, 256], strides = [1, 1, 1]} : vector<10x10x256xbf16> to vector<10x8x256xbf16>
    %9 = vector.extract_strided_slice %6 {offsets = [0, 2, 0], sizes = [10, 8, 256], strides = [1, 1, 1]} : vector<10x10x256xbf16> to vector<10x8x256xbf16>
    %10 = vector.extract_strided_slice %7 {offsets = [0, 0, 0], sizes = [8, 8, 256], strides = [1, 1, 1]} : vector<10x8x256xbf16> to vector<8x8x256xbf16>
    %11 = vector.shape_cast %10 : vector<8x8x256xbf16> to vector<64x256xbf16>
    %12 = vector.extract_strided_slice %8 {offsets = [0, 0, 0], sizes = [8, 8, 256], strides = [1, 1, 1]} : vector<10x8x256xbf16> to vector<8x8x256xbf16>
    %13 = vector.shape_cast %12 : vector<8x8x256xbf16> to vector<64x256xbf16>
    %14 = vector.extract_strided_slice %9 {offsets = [0, 0, 0], sizes = [8, 8, 256], strides = [1, 1, 1]} : vector<10x8x256xbf16> to vector<8x8x256xbf16>
    %15 = vector.shape_cast %14 : vector<8x8x256xbf16> to vector<64x256xbf16>
    %16 = vector.extract_strided_slice %7 {offsets = [1, 0, 0], sizes = [8, 8, 256], strides = [1, 1, 1]} : vector<10x8x256xbf16> to vector<8x8x256xbf16>
    %17 = vector.shape_cast %16 : vector<8x8x256xbf16> to vector<64x256xbf16>
    %18 = vector.extract_strided_slice %8 {offsets = [1, 0, 0], sizes = [8, 8, 256], strides = [1, 1, 1]} : vector<10x8x256xbf16> to vector<8x8x256xbf16>
    %19 = vector.shape_cast %18 : vector<8x8x256xbf16> to vector<64x256xbf16>
    %20 = vector.extract_strided_slice %9 {offsets = [1, 0, 0], sizes = [8, 8, 256], strides = [1, 1, 1]} : vector<10x8x256xbf16> to vector<8x8x256xbf16>
    %21 = vector.shape_cast %20 : vector<8x8x256xbf16> to vector<64x256xbf16>
    %22 = vector.extract_strided_slice %7 {offsets = [2, 0, 0], sizes = [8, 8, 256], strides = [1, 1, 1]} : vector<10x8x256xbf16> to vector<8x8x256xbf16>
    %23 = vector.shape_cast %22 : vector<8x8x256xbf16> to vector<64x256xbf16>
    %24 = vector.extract_strided_slice %8 {offsets = [2, 0, 0], sizes = [8, 8, 256], strides = [1, 1, 1]} : vector<10x8x256xbf16> to vector<8x8x256xbf16>
    %25 = vector.shape_cast %24 : vector<8x8x256xbf16> to vector<64x256xbf16>
    %26 = vector.extract_strided_slice %9 {offsets = [2, 0, 0], sizes = [8, 8, 256], strides = [1, 1, 1]} : vector<10x8x256xbf16> to vector<8x8x256xbf16>
    %27 = vector.shape_cast %26 : vector<8x8x256xbf16> to vector<64x256xbf16>
    %c0_11 = arith.constant 0 : index
    %c0_12 = arith.constant 0 : index
    %c0_13 = arith.constant 0 : index
    %c0_14 = arith.constant 0 : index
    %28 = vector.load %arg6[%c0_11, %c0_12, %c0_13, %c0_14] : memref<4x4x256x128xbf16, #tpu.memory_space<vmem>>, vector<1x1x256x128xbf16>
    %29 = vector.shape_cast %28 : vector<1x1x256x128xbf16> to vector<256x128xbf16>
    %cst = arith.constant dense<0.000000e+00> : vector<64x128xf32>
    %30 = tpu.matmul %11, %29, %cst {dimension_numbers = #tpu.dot_dimension_numbers<[1], [0], [0], [1], [0, 0, 1, 1], [], []>} : vector<64x256xbf16>, vector<256x128xbf16>, vector<64x128xf32> -> vector<64x128xf32>
    %c0_15 = arith.constant 0 : index
    %c1 = arith.constant 1 : index
    %c0_16 = arith.constant 0 : index
    %c0_17 = arith.constant 0 : index
    %31 = vector.load %arg6[%c0_15, %c1, %c0_16, %c0_17] : memref<4x4x256x128xbf16, #tpu.memory_space<vmem>>, vector<1x1x256x128xbf16>
    %32 = vector.shape_cast %31 : vector<1x1x256x128xbf16> to vector<256x128xbf16>
    %cst_18 = arith.constant dense<0.000000e+00> : vector<64x128xf32>
    %33 = tpu.matmul %13, %32, %cst_18 {dimension_numbers = #tpu.dot_dimension_numbers<[1], [0], [0], [1], [0, 0, 1, 1], [], []>} : vector<64x256xbf16>, vector<256x128xbf16>, vector<64x128xf32> -> vector<64x128xf32>
    %34 = arith.addf %30, %33 : vector<64x128xf32>
    %c0_19 = arith.constant 0 : index
    %c2 = arith.constant 2 : index
    %c0_20 = arith.constant 0 : index
    %c0_21 = arith.constant 0 : index
    %35 = vector.load %arg6[%c0_19, %c2, %c0_20, %c0_21] : memref<4x4x256x128xbf16, #tpu.memory_space<vmem>>, vector<1x1x256x128xbf16>
    %36 = vector.shape_cast %35 : vector<1x1x256x128xbf16> to vector<256x128xbf16>
    %cst_22 = arith.constant dense<0.000000e+00> : vector<64x128xf32>
    %37 = tpu.matmul %17, %36, %cst_22 {dimension_numbers = #tpu.dot_dimension_numbers<[1], [0], [0], [1], [0, 0, 1, 1], [], []>} : vector<64x256xbf16>, vector<256x128xbf16>, vector<64x128xf32> -> vector<64x128xf32>
    %38 = arith.addf %34, %37 : vector<64x128xf32>
    %c0_23 = arith.constant 0 : index
    %c3 = arith.constant 3 : index
    %c0_24 = arith.constant 0 : index
    %c0_25 = arith.constant 0 : index
    %39 = vector.load %arg6[%c0_23, %c3, %c0_24, %c0_25] : memref<4x4x256x128xbf16, #tpu.memory_space<vmem>>, vector<1x1x256x128xbf16>
    %40 = vector.shape_cast %39 : vector<1x1x256x128xbf16> to vector<256x128xbf16>
    %cst_26 = arith.constant dense<0.000000e+00> : vector<64x128xf32>
    %41 = tpu.matmul %19, %40, %cst_26 {dimension_numbers = #tpu.dot_dimension_numbers<[1], [0], [0], [1], [0, 0, 1, 1], [], []>} : vector<64x256xbf16>, vector<256x128xbf16>, vector<64x128xf32> -> vector<64x128xf32>
    %42 = arith.addf %38, %41 : vector<64x128xf32>
    %43 = vector.shape_cast %42 : vector<64x128xf32> to vector<8x8x128xf32>
    %c1_27 = arith.constant 1 : index
    %c0_28 = arith.constant 0 : index
    %c0_29 = arith.constant 0 : index
    %c0_30 = arith.constant 0 : index
    %44 = vector.load %arg6[%c1_27, %c0_28, %c0_29, %c0_30] : memref<4x4x256x128xbf16, #tpu.memory_space<vmem>>, vector<1x1x256x128xbf16>
    %45 = vector.shape_cast %44 : vector<1x1x256x128xbf16> to vector<256x128xbf16>
    %cst_31 = arith.constant dense<0.000000e+00> : vector<64x128xf32>
    %46 = tpu.matmul %13, %45, %cst_31 {dimension_numbers = #tpu.dot_dimension_numbers<[1], [0], [0], [1], [0, 0, 1, 1], [], []>} : vector<64x256xbf16>, vector<256x128xbf16>, vector<64x128xf32> -> vector<64x128xf32>
    %c1_32 = arith.constant 1 : index
    %c1_33 = arith.constant 1 : index
    %c0_34 = arith.constant 0 : index
    %c0_35 = arith.constant 0 : index
    %47 = vector.load %arg6[%c1_32, %c1_33, %c0_34, %c0_35] : memref<4x4x256x128xbf16, #tpu.memory_space<vmem>>, vector<1x1x256x128xbf16>
    %48 = vector.shape_cast %47 : vector<1x1x256x128xbf16> to vector<256x128xbf16>
    %cst_36 = arith.constant dense<0.000000e+00> : vector<64x128xf32>
    %49 = tpu.matmul %15, %48, %cst_36 {dimension_numbers = #tpu.dot_dimension_numbers<[1], [0], [0], [1], [0, 0, 1, 1], [], []>} : vector<64x256xbf16>, vector<256x128xbf16>, vector<64x128xf32> -> vector<64x128xf32>
    %50 = arith.addf %46, %49 : vector<64x128xf32>
    %c1_37 = arith.constant 1 : index
    %c2_38 = arith.constant 2 : index
    %c0_39 = arith.constant 0 : index
    %c0_40 = arith.constant 0 : index
    %51 = vector.load %arg6[%c1_37, %c2_38, %c0_39, %c0_40] : memref<4x4x256x128xbf16, #tpu.memory_space<vmem>>, vector<1x1x256x128xbf16>
    %52 = vector.shape_cast %51 : vector<1x1x256x128xbf16> to vector<256x128xbf16>
    %cst_41 = arith.constant dense<0.000000e+00> : vector<64x128xf32>
    %53 = tpu.matmul %19, %52, %cst_41 {dimension_numbers = #tpu.dot_dimension_numbers<[1], [0], [0], [1], [0, 0, 1, 1], [], []>} : vector<64x256xbf16>, vector<256x128xbf16>, vector<64x128xf32> -> vector<64x128xf32>
    %54 = arith.addf %50, %53 : vector<64x128xf32>
    %c1_42 = arith.constant 1 : index
    %c3_43 = arith.constant 3 : index
    %c0_44 = arith.constant 0 : index
    %c0_45 = arith.constant 0 : index
    %55 = vector.load %arg6[%c1_42, %c3_43, %c0_44, %c0_45] : memref<4x4x256x128xbf16, #tpu.memory_space<vmem>>, vector<1x1x256x128xbf16>
    %56 = vector.shape_cast %55 : vector<1x1x256x128xbf16> to vector<256x128xbf16>
    %cst_46 = arith.constant dense<0.000000e+00> : vector<64x128xf32>
    %57 = tpu.matmul %21, %56, %cst_46 {dimension_numbers = #tpu.dot_dimension_numbers<[1], [0], [0], [1], [0, 0, 1, 1], [], []>} : vector<64x256xbf16>, vector<256x128xbf16>, vector<64x128xf32> -> vector<64x128xf32>
    %58 = arith.addf %54, %57 : vector<64x128xf32>
    %59 = vector.shape_cast %58 : vector<64x128xf32> to vector<8x8x128xf32>
    %c2_47 = arith.constant 2 : index
    %c0_48 = arith.constant 0 : index
    %c0_49 = arith.constant 0 : index
    %c0_50 = arith.constant 0 : index
    %60 = vector.load %arg6[%c2_47, %c0_48, %c0_49, %c0_50] : memref<4x4x256x128xbf16, #tpu.memory_space<vmem>>, vector<1x1x256x128xbf16>
    %61 = vector.shape_cast %60 : vector<1x1x256x128xbf16> to vector<256x128xbf16>
    %cst_51 = arith.constant dense<0.000000e+00> : vector<64x128xf32>
    %62 = tpu.matmul %17, %61, %cst_51 {dimension_numbers = #tpu.dot_dimension_numbers<[1], [0], [0], [1], [0, 0, 1, 1], [], []>} : vector<64x256xbf16>, vector<256x128xbf16>, vector<64x128xf32> -> vector<64x128xf32>
    %c2_52 = arith.constant 2 : index
    %c1_53 = arith.constant 1 : index
    %c0_54 = arith.constant 0 : index
    %c0_55 = arith.constant 0 : index
    %63 = vector.load %arg6[%c2_52, %c1_53, %c0_54, %c0_55] : memref<4x4x256x128xbf16, #tpu.memory_space<vmem>>, vector<1x1x256x128xbf16>
    %64 = vector.shape_cast %63 : vector<1x1x256x128xbf16> to vector<256x128xbf16>
    %cst_56 = arith.constant dense<0.000000e+00> : vector<64x128xf32>
    %65 = tpu.matmul %19, %64, %cst_56 {dimension_numbers = #tpu.dot_dimension_numbers<[1], [0], [0], [1], [0, 0, 1, 1], [], []>} : vector<64x256xbf16>, vector<256x128xbf16>, vector<64x128xf32> -> vector<64x128xf32>
    %66 = arith.addf %62, %65 : vector<64x128xf32>
    %c2_57 = arith.constant 2 : index
    %c2_58 = arith.constant 2 : index
    %c0_59 = arith.constant 0 : index
    %c0_60 = arith.constant 0 : index
    %67 = vector.load %arg6[%c2_57, %c2_58, %c0_59, %c0_60] : memref<4x4x256x128xbf16, #tpu.memory_space<vmem>>, vector<1x1x256x128xbf16>
    %68 = vector.shape_cast %67 : vector<1x1x256x128xbf16> to vector<256x128xbf16>
    %cst_61 = arith.constant dense<0.000000e+00> : vector<64x128xf32>
    %69 = tpu.matmul %23, %68, %cst_61 {dimension_numbers = #tpu.dot_dimension_numbers<[1], [0], [0], [1], [0, 0, 1, 1], [], []>} : vector<64x256xbf16>, vector<256x128xbf16>, vector<64x128xf32> -> vector<64x128xf32>
    %70 = arith.addf %66, %69 : vector<64x128xf32>
    %c2_62 = arith.constant 2 : index
    %c3_63 = arith.constant 3 : index
    %c0_64 = arith.constant 0 : index
    %c0_65 = arith.constant 0 : index
    %71 = vector.load %arg6[%c2_62, %c3_63, %c0_64, %c0_65] : memref<4x4x256x128xbf16, #tpu.memory_space<vmem>>, vector<1x1x256x128xbf16>
    %72 = vector.shape_cast %71 : vector<1x1x256x128xbf16> to vector<256x128xbf16>
    %cst_66 = arith.constant dense<0.000000e+00> : vector<64x128xf32>
    %73 = tpu.matmul %25, %72, %cst_66 {dimension_numbers = #tpu.dot_dimension_numbers<[1], [0], [0], [1], [0, 0, 1, 1], [], []>} : vector<64x256xbf16>, vector<256x128xbf16>, vector<64x128xf32> -> vector<64x128xf32>
    %74 = arith.addf %70, %73 : vector<64x128xf32>
    %75 = vector.shape_cast %74 : vector<64x128xf32> to vector<8x8x128xf32>
    %c3_67 = arith.constant 3 : index
    %c0_68 = arith.constant 0 : index
    %c0_69 = arith.constant 0 : index
    %c0_70 = arith.constant 0 : index
    %76 = vector.load %arg6[%c3_67, %c0_68, %c0_69, %c0_70] : memref<4x4x256x128xbf16, #tpu.memory_space<vmem>>, vector<1x1x256x128xbf16>
    %77 = vector.shape_cast %76 : vector<1x1x256x128xbf16> to vector<256x128xbf16>
    %cst_71 = arith.constant dense<0.000000e+00> : vector<64x128xf32>
    %78 = tpu.matmul %19, %77, %cst_71 {dimension_numbers = #tpu.dot_dimension_numbers<[1], [0], [0], [1], [0, 0, 1, 1], [], []>} : vector<64x256xbf16>, vector<256x128xbf16>, vector<64x128xf32> -> vector<64x128xf32>
    %c3_72 = arith.constant 3 : index
    %c1_73 = arith.constant 1 : index
    %c0_74 = arith.constant 0 : index
    %c0_75 = arith.constant 0 : index
    %79 = vector.load %arg6[%c3_72, %c1_73, %c0_74, %c0_75] : memref<4x4x256x128xbf16, #tpu.memory_space<vmem>>, vector<1x1x256x128xbf16>
    %80 = vector.shape_cast %79 : vector<1x1x256x128xbf16> to vector<256x128xbf16>
    %cst_76 = arith.constant dense<0.000000e+00> : vector<64x128xf32>
    %81 = tpu.matmul %21, %80, %cst_76 {dimension_numbers = #tpu.dot_dimension_numbers<[1], [0], [0], [1], [0, 0, 1, 1], [], []>} : vector<64x256xbf16>, vector<256x128xbf16>, vector<64x128xf32> -> vector<64x128xf32>
    %82 = arith.addf %78, %81 : vector<64x128xf32>
    %c3_77 = arith.constant 3 : index
    %c2_78 = arith.constant 2 : index
    %c0_79 = arith.constant 0 : index
    %c0_80 = arith.constant 0 : index
    %83 = vector.load %arg6[%c3_77, %c2_78, %c0_79, %c0_80] : memref<4x4x256x128xbf16, #tpu.memory_space<vmem>>, vector<1x1x256x128xbf16>
    %84 = vector.shape_cast %83 : vector<1x1x256x128xbf16> to vector<256x128xbf16>
    %cst_81 = arith.constant dense<0.000000e+00> : vector<64x128xf32>
    %85 = tpu.matmul %25, %84, %cst_81 {dimension_numbers = #tpu.dot_dimension_numbers<[1], [0], [0], [1], [0, 0, 1, 1], [], []>} : vector<64x256xbf16>, vector<256x128xbf16>, vector<64x128xf32> -> vector<64x128xf32>
    %86 = arith.addf %82, %85 : vector<64x128xf32>
    %c3_82 = arith.constant 3 : index
    %c3_83 = arith.constant 3 : index
    %c0_84 = arith.constant 0 : index
    %c0_85 = arith.constant 0 : index
    %87 = vector.load %arg6[%c3_82, %c3_83, %c0_84, %c0_85] : memref<4x4x256x128xbf16, #tpu.memory_space<vmem>>, vector<1x1x256x128xbf16>
    %88 = vector.shape_cast %87 : vector<1x1x256x128xbf16> to vector<256x128xbf16>
    %cst_86 = arith.constant dense<0.000000e+00> : vector<64x128xf32>
    %89 = tpu.matmul %27, %88, %cst_86 {dimension_numbers = #tpu.dot_dimension_numbers<[1], [0], [0], [1], [0, 0, 1, 1], [], []>} : vector<64x256xbf16>, vector<256x128xbf16>, vector<64x128xf32> -> vector<64x128xf32>
    %90 = arith.addf %86, %89 : vector<64x128xf32>
    %91 = vector.shape_cast %90 : vector<64x128xf32> to vector<8x8x128xf32>
    %92 = vector.shape_cast %43 : vector<8x8x128xf32> to vector<8x8x1x128xf32>
    %93 = vector.shape_cast %59 : vector<8x8x128xf32> to vector<8x8x1x128xf32>
    %94 = tpu.concatenate %92, %93 in 2 : vector<8x8x1x128xf32>, vector<8x8x1x128xf32> -> vector<8x8x2x128xf32>
    %95 = vector.shape_cast %94 : vector<8x8x2x128xf32> to vector<8x16x128xf32>
    %96 = vector.shape_cast %75 : vector<8x8x128xf32> to vector<8x8x1x128xf32>
    %97 = vector.shape_cast %91 : vector<8x8x128xf32> to vector<8x8x1x128xf32>
    %98 = tpu.concatenate %96, %97 in 2 : vector<8x8x1x128xf32>, vector<8x8x1x128xf32> -> vector<8x8x2x128xf32>
    %99 = vector.shape_cast %98 : vector<8x8x2x128xf32> to vector<8x16x128xf32>
    %100 = vector.shape_cast %95 : vector<8x16x128xf32> to vector<8x1x16x128xf32>
    %101 = vector.shape_cast %99 : vector<8x16x128xf32> to vector<8x1x16x128xf32>
    %102 = tpu.concatenate %100, %101 in 1 : vector<8x1x16x128xf32>, vector<8x1x16x128xf32> -> vector<8x2x16x128xf32>
    %103 = vector.shape_cast %102 : vector<8x2x16x128xf32> to vector<16x16x128xf32>
    %c0_87 = arith.constant 0 : index
    %c0_88 = arith.constant 0 : index
    %104 = vector.load %arg7[%c0_87, %c0_88] : memref<1x128xf32, #tpu.memory_space<vmem>>, vector<1x128xf32>
    %105 = vector.shape_cast %104 : vector<1x128xf32> to vector<1x1x128xf32>
    %106 = vector.broadcast %105 : vector<1x1x128xf32> to vector<16x16x128xf32>
    %107 = arith.mulf %103, %106 : vector<16x16x128xf32>
    %c0_89 = arith.constant 0 : index
    %c0_90 = arith.constant 0 : index
    %108 = vector.load %arg8[%c0_89, %c0_90] : memref<1x128xf32, #tpu.memory_space<vmem>>, vector<1x128xf32>
    %109 = vector.shape_cast %108 : vector<1x128xf32> to vector<1x1x128xf32>
    %110 = vector.broadcast %109 : vector<1x1x128xf32> to vector<16x16x128xf32>
    %111 = arith.addf %107, %110 : vector<16x16x128xf32>
    %cst_91 = arith.constant 0.000000e+00 : f32
    %112 = vector.broadcast %cst_91 : f32 to vector<16x16x128xf32>
    %113 = arith.maximumf %111, %112 : vector<16x16x128xf32>
    %114 = vector.shape_cast %113 : vector<16x16x128xf32> to vector<1x16x16x128xf32>
    %c0_92 = arith.constant 0 : index
    %c0_93 = arith.constant 0 : index
    %c0_94 = arith.constant 0 : index
    %c0_95 = arith.constant 0 : index
    %115 = vector.load %arg9[%c0_92, %c0_93, %c0_94, %c0_95] : memref<1x16x16x128xf32, #tpu.memory_space<vmem>>, vector<1x16x16x128xf32>
    tpu.vector_store %arg9[%c0_92, %c0_93, %c0_94, %c0_95], %114 {strides = array<i32>} : memref<1x16x16x128xf32, #tpu.memory_space<vmem>>, vector<1x16x16x128xf32>,
    return
  }
  func.func @transform_0(%arg0: i32, %arg1: i32, %arg2: i32) -> (i32, i32, i32, i32) {
    %c0_i32 = arith.constant 0 : i32
    %c0_i32_0 = arith.constant 0 : i32
    %c0_i32_1 = arith.constant 0 : i32
    return %arg0, %arg1, %c0_i32, %c0_i32_0 : i32, i32, i32, i32
  }
  func.func @transform_1(%arg0: i32, %arg1: i32, %arg2: i32) -> (i32, i32, i32, i32) {
    %c1_i32 = arith.constant 1 : i32
    %0 = arith.addi %arg1, %c1_i32 : i32
    %c8_i32 = arith.constant 8 : i32
    %1 = arith.muli %0, %c8_i32 : i32
    %c0_i32 = arith.constant 0 : i32
    %c0_i32_0 = arith.constant 0 : i32
    %c0_i32_1 = arith.constant 0 : i32
    return %arg0, %1, %c0_i32, %c0_i32_0 : i32, i32, i32, i32
  }
  func.func @transform_2(%arg0: i32, %arg1: i32, %arg2: i32) -> (i32, i32, i32, i32) {
    %c1_i32 = arith.constant 1 : i32
    %0 = arith.addi %arg1, %c1_i32 : i32
    %c8_i32 = arith.constant 8 : i32
    %1 = arith.muli %0, %c8_i32 : i32
    %c1_i32_0 = arith.constant 1 : i32
    %2 = arith.addi %1, %c1_i32_0 : i32
    %c0_i32 = arith.constant 0 : i32
    %c0_i32_1 = arith.constant 0 : i32
    %c0_i32_2 = arith.constant 0 : i32
    return %arg0, %2, %c0_i32, %c0_i32_1 : i32, i32, i32, i32
  }
  func.func @transform_3(%arg0: i32, %arg1: i32, %arg2: i32) -> (i32, i32, i32, i32) {
    %c0_i32 = arith.constant 0 : i32
    %c0_i32_0 = arith.constant 0 : i32
    %c0_i32_1 = arith.constant 0 : i32
    %c0_i32_2 = arith.constant 0 : i32
    return %c0_i32, %c0_i32_0, %c0_i32_1, %arg2 : i32, i32, i32, i32
  }
  func.func @transform_4(%arg0: i32, %arg1: i32, %arg2: i32) -> (i32, i32) {
    %c0_i32 = arith.constant 0 : i32
    %c0_i32_0 = arith.constant 0 : i32
    return %c0_i32, %arg2 : i32, i32
  }
  func.func @transform_5(%arg0: i32, %arg1: i32, %arg2: i32) -> (i32, i32) {
    %c0_i32 = arith.constant 0 : i32
    %c0_i32_0 = arith.constant 0 : i32
    return %c0_i32, %arg2 : i32, i32
  }
  func.func @transform_6(%arg0: i32, %arg1: i32, %arg2: i32) -> (i32, i32, i32, i32) {
    %c0_i32 = arith.constant 0 : i32
    %c0_i32_0 = arith.constant 0 : i32
    return %arg0, %arg1, %c0_i32, %arg2 : i32, i32, i32, i32
  }
}

</mosaic_0001>

<bundles_post_ra>
// kernel: upconv_pallas.1
= control target key start
LH: loop header
LB: loop body
LE: loop exit
PB: predicated region body
PF: predicated region fallthrough
CT: control target
= control target key end

     0   :  { %11 = vsyncpa [#allocation3], 0  ;;  %s13243_s0 = inlined_call_operand.vmem [shape: bf16[2,10,10,256], index: 0, kind: input, shape index: {}, may-alias: {0,1,2}]   ;;  %s13244_s1 = inlined_call_operand.vmem [shape: bf16[2,10,10,256], index: 1, kind: input, shape index: {}, may-alias: {0,1,2}]   ;;  %s13245_s2 = inlined_call_operand.vmem [shape: bf16[2,10,10,256], index: 2, kind: input, shape index: {}, may-alias: {0,1,2}]   ;;  %s13246_s3 = inlined_call_operand.vmem [shape: bf16[4,4,256,128], index: 3, kind: input, shape index: {}]   ;;  %s13247_s4 = inlined_call_operand.vmem [shape: f32[1,128], index: 4, kind: input, shape index: {}]   ;;  %s13248_s5 = inlined_call_operand.vmem [shape: f32[1,128], index: 5, kind: input, shape index: {}]   ;;  %s13249_s6 = inlined_call_operand.hbm [shape: f32[2,16,16,128], index: 6, kind: output, shape index: {}]  }
   0x1   :  { %13 = vsyncpa [#allocation3 + $0x1], 0  ;;  %s9804_s21 = smov 0   ;;  %s9806_s22 = smov 0  }
   0x2   :  { %s9808_s23 = smov 0   ;;  %s9810_s24 = smov 0  }
   0x3   :  { %s9812_s25 = smov 0   ;;  %s9814_s26 = smov 0  }
   0x4 LB: > { %s7889_s27 = sadd.s32 4294967295, %s9762_s26   ;;  %s7890_s28 = sadd.s32 4294967294, %s9762_s26   ;;  %s9762_s26 = sphi %s9814_s26, %s19_s26   ;;  %s9758_s25 = sphi %s9812_s25, %s13642_s25   ;;  %s9754_s24 = sphi %s9810_s24, %s13641_s24   ;;  %s9750_s23 = sphi %s9808_s23, %s13640_s23   ;;  %s9746_s22 = sphi %s9806_s22, %s13639_s22   ;;  %s9742_s21 = sphi %s9804_s21, %s13638_s21  }
   0x5   : > { %s38_s29 = sadd.s32 1, %s9758_s25  ;;  %s221_s30 = sadd.s32 1, %s9750_s23 }
   0x6   : > { %p40_p0 = scmp.ge.s32.totalorder %s38_s29, 2  ;;  %p231_p1 = scmp.ne.s32.totalorder %s9750_s23, %s9746_s22 }
   0x7   : > { %p232_p2 = scmp.eq.s32.totalorder %s7889_s27, 1  ;;  %p237_p3 = scmp.ne.s32.totalorder %s9746_s22, %s9742_s21 }
   0x8   : > { %s13644_s29 = smov (%p40_p0, %s38_s29), 0  ;;  %p238_p5 = scmp.eq.s32.totalorder %s7890_s28, 1 }
   0x9   : > { %p9844_p4 = por %p232_p2, %p231_p1  ;;  %s214_s8 = ssub.s32 %s9758_s25, %s13644_s29 }
   0xa   : > { %p7896_p6 = scmp.ge.s32.totalorder %s9762_s26, 1  ;;  %p219_p7 = scmp.eq.s32.totalorder %s214_s8, 0 }
   0xb   : > { %p9851_p8 = por %p238_p5, %p237_p3  ;;  %p335_p9 = scmp.lt.s32.totalorder %s9762_s26, 3 }
   0xc   : > { %s9857_s10 = scalar_select %p219_p7, %s9750_s23, %s221_s30  }
   0xd   : > { %p336_p10 = pnand %p7896_p6, %p335_p9 }
   0xf   : > { %339 = sbr.rel (%p336_p10) target bundleno = 706 (0x2c2), region = 44 }
  0x14   : > { %v9415_v0 = vld [vmem:[%s13246_s3 + $0xf8] sm:$0xff]   ;;  %p416_p11 = scmp.lt.s32.totalorder %s9754_s24, 1  ;;  %v9419_v4 = vld [vmem:[%s13246_s3 + $0xf0] sm:$0xff]   ;;  %v9423_v8 = vld [vmem:[%s13246_s3 + $0xe8] sm:$0xff]   ;;  %vm623_vm0 = vcmask 1042432   ;;  %vm624_vm3 = vcmask 1046532  }
  0x15   : > { %v9416_v1 = vld [vmem:[%s13246_s3 + $0x78] sm:$0xff]   ;;  %8713 = vmatprep.subr.bf16.mxu0 %v9415_v0  ;;  %v9420_v5 = vld [vmem:[%s13246_s3 + $0x70] sm:$0xff]   ;;  %v9424_v9 = vld [vmem:[%s13246_s3 + $0x68] sm:$0xff]   ;;  %vm492_vm1 = vsmask.f32 3328  ;;  %vm5217_vm6 = vcmask 1040384  }
  0x16   : > { %v9417_v2 = vld [vmem:[%s13246_s3 + $0xb8] sm:$0xff]   ;;  %8753 = vmatprep.subr.bf16.mxu1 %v9416_v1  ;;  %s9873_s19 = scalar_select %p416_p11, %s9754_s24, 1  ;;  %v9421_v6 = vld [vmem:[%s13246_s3 + $0xb0] sm:$0xff]   ;;  %v9425_v10 = vld [vmem:[%s13246_s3 + $0xa8] sm:$0xff]   ;;  %vm493_vm2 = vsmask.f32 7440 }
  0x17   : > { %v9418_v3 = vld [vmem:[%s13246_s3 + $0x38] sm:$0xff]   ;;  %8714 = vmatpush3.bf16.msra.mxu0 %v9417_v2  ;;  %v9422_v7 = vld [vmem:[%s13246_s3 + $0x30] sm:$0xff]   ;;  %v9426_v11 = vld [vmem:[%s13246_s3 + $0x28] sm:$0xff]   ;;  %s406_s30 = sand.u32 1, %s9746_s22   ;;  %s9766_s18 = smov [#allocation2]  }
  0x18   : > { %8754 = vmatpush3.bf16.msra.mxu1 %v9418_v3  ;;  %8715 = vmatprep.subr.bf16.mxu0 %v9419_v4  ;;  %v9427_v12 = vld [vmem:[%s13246_s3 + $0xe0] sm:$0xff]   ;;  %v9431_v16 = vld [vmem:[%s13246_s3 + $0xd8] sm:$0xff]   ;;  %v9435_v20 = vld [vmem:[%s13246_s3 + $0xd0] sm:$0xff]   ;;  %s9942_s11 = smul.u32 160, %s9873_s19  ;;  %s9690_s19 = sshll.u32 %s9766_s18, 4  ;;  %s9691_s19 = int_to_ptr.vmem [resolvable:$false] %s9690_s19 }
  0x19   : > { %8755 = vmatprep.subr.bf16.mxu1 %v9420_v5  ;;  %v9428_v13 = vld [vmem:[%s13246_s3 + $0x60] sm:$0xff]   ;;  %v9432_v17 = vld [vmem:[%s13246_s3 + $0x58] sm:$0xff]   ;;  %v9436_v21 = vld [vmem:[%s13246_s3 + $0x50] sm:$0xff]  }
  0x1a   : > { %v9429_v14 = vld [vmem:[%s13246_s3 + $0xa0] sm:$0xff]   ;;  %v9433_v18 = vld [vmem:[%s13246_s3 + $0x98] sm:$0xff]   ;;  %v9437_v22 = vld [vmem:[%s13246_s3 + $0x90] sm:$0xff]   ;;  %s9960_s28 = scalar_lea.vmem %s13243_s0, %s9942_s11  ;;  %s8709_s12 = sadd.s32 128, %s9942_s11 }
  0x1b   : > { %8716 = vmatpush3.bf16.msra.mxu0 %v9421_v6  ;;  %v9430_v15 = vld [vmem:[%s13246_s3 + $0x20] sm:$0xff]   ;;  %v9434_v19 = vld [vmem:[%s13246_s3 + $0x18] sm:$0xff]   ;;  %v9438_v23 = vld [vmem:[%s13246_s3 + $0x10] sm:$0xff]   ;;  %s10445_s20 = scalar_lea.vmem %s13244_s1, %s8709_s12  ;;  %s8711_s14 = sadd.s32 144, %s9942_s11 }
  0x1c   : > { %8756 = vmatpush3.bf16.msra.mxu1 %v9422_v7  ;;  %8717 = vmatprep.subr.bf16.mxu0 %v9423_v8  ;;  %v9439_v24 = vld [vmem:[%s13246_s3 + $0xc8] sm:$0xff]   ;;  %v9443_v28 = vld [vmem:[%s13246_s3 + $0xc0] sm:$0xff]   ;;  %v9975_v34 = vld [vmem:[%s9960_s28 + $0x10] sm:$0xff]  ;;  %s456_s8 = scalar_lea.vmem %s13245_s2, %s8711_s14  ;;  %s8712_s12 = sshll.u32 %s9754_s24, 12 }
  0x1d   : > { %8757 = vmatprep.subr.bf16.mxu1 %v9424_v9  ;;  %v9440_v25 = vld [vmem:[%s13246_s3 + $0x48] sm:$0xff]   ;;  %v9444_v29 = vld [vmem:[%s13246_s3 + $0x40] sm:$0xff]   ;;  %v9978_v35 = vld [vmem:[%s9960_s28 + $0x18] sm:$0x11]  ;;  %v510_v43 = vshrl.u32 %v9975_v34, 16  ;;  %v513_v46 = vshll.u32 %v9975_v34, 16  ;;  %s13190_s17 = scalar_lea.hbm %s13249_s6, %s8712_s12 }
  0x1e   : > { %v9441_v26 = vld [vmem:[%s13246_s3 + $0x88] sm:$0xff]   ;;  %v9445_v30 = vld [vmem:[%s13246_s3 + $0x80] sm:$0xff]   ;;  %v9449_v44 = vld [vmem:[%s13246_s3 + $0x178] sm:$0xff]   ;;  %v519_v47 = vshll.u32 %v9978_v35, 16  ;;  %s13198_s24 = scalar_lea.sflag [#allocation3], %s406_s30  ;;  %s9692_s11 = scalar_lea.vmem %s9691_s19, 8192 }
  0x1f   : > { %8718 = vmatpush3.bf16.msra.mxu0 %v9425_v10  ;;  %v9442_v27 = vld [vmem:[%s13246_s3 + $0x8] sm:$0xff]   ;;  %v9446_v31 = vld [vmem:[%s13246_s3] sm:$0xff]   ;;  %v512_v50 = vrot.slane %v510_v43, 4  ;;  %v515_v53 = vrot.slane %v513_v46, 5  ;;  %v9450_v58 = vld [vmem:[%s13246_s3 + $0x1f8] sm:$0xff]  }
  0x20   : > { %8758 = vmatpush3.bf16.msra.mxu1 %v9426_v11  ;;  %8719 = vmatprep.subr.bf16.mxu0 %v9427_v12  ;;  %v9969_v32 = vld [vmem:[%s9960_s28] sm:$0xff]  ;;  %v9972_v33 = vld [vmem:[%s9960_s28 + $0x8] sm:$0x11]  ;;  %vm10007_vm4 = vmor %vm492_vm1, %vm493_vm2  ;;  %v521_v61 = vrot.slane %v519_v47, 5 }
  0x21   : > { %8759 = vmatprep.subr.bf16.mxu1 %v9428_v13  ;;  %v9981_v36 = vld [vmem:[%s9960_s28 + $0x20] sm:$0xff]  ;;  %v9984_v37 = vld [vmem:[%s9960_s28 + $0x28] sm:$0x11]  ;;  %v496_v38 = vshrl.u32 %v9969_v32, 16  ;;  %v7968_v39 = vcombine.high %v9969_v32, %v9975_v34  ;;  %v7967_v40 = vcombine.low %v9969_v32, %v9975_v34  ;;  %v499_v41 = vshll.u32 %v9969_v32, 16  ;;  %v9452_v0 = vld [vmem:[%s13246_s3 + $0x1b8] sm:$0xff]  }
  0x22   : > { %v505_v42 = vshll.u32 %v9972_v33, 16  ;;  %v524_v48 = vshrl.u32 %v9981_v36, 16  ;;  %v527_v51 = vshll.u32 %v9981_v36, 16  ;;  %v533_v55 = vshll.u32 %v9984_v37, 16  ;;  %vm10016_vm5 = vmor %vm623_vm0, %vm624_vm3  ;;  %v9451_v5 = vld [vmem:[%s13246_s3 + $0x138] sm:$0xff]   ;;  %v9454_v6 = vld [vmem:[%s13246_s3 + $0x1f0] sm:$0xff]  }
  0x23   : > { %8720 = vmatpush3.bf16.msra.mxu0 %v9429_v14  ;;  %v498_v45 = vrot.slane %v496_v38, 4  ;;  %1116 = vmatprep.mubr.bf16.mxu1 %v7968_v39  ;;  %v501_v49 = vrot.slane %v499_v41, 5  ;;  %v516_v60 = vor.u32 %v515_v53, %v512_v50  ;;  %v9453_v8 = vld [vmem:[%s13246_s3 + $0x170] sm:$0xff]   ;;  %v7901_v9 = vrot.slane %v9969_v32, 9  ;;  %v9463_v38 = vld [vmem:[%s13246_s3 + $0x160] sm:$0xff]  }
  0x24   : > { %8760 = vmatpush3.bf16.msra.mxu1 %v9430_v15  ;;  %8721 = vmatprep.subr.bf16.mxu0 %v9431_v16  ;;  %v507_v52 = vrot.slane %v505_v42, 5  ;;  %v526_v54 = vrot.slane %v524_v48, 4  ;;  %v529_v57 = vrot.slane %v527_v51, 5  ;;  %v535_v4 = vrot.slane %v533_v55, 5  ;;  %v9456_v13 = vld [vmem:[%s13246_s3 + $0x1b0] sm:$0xff]   ;;  %v9464_v39 = vld [vmem:[%s13246_s3 + $0x1e0] sm:$0xff]  }
  0x25   : > { %8761 = vmatprep.subr.bf16.mxu1 %v9432_v17  ;;  %v502_v56 = vor.u32 %v501_v49, %v498_v45  ;;  %v517_v1 = vrot.slane %v516_v60, 4  ;;  %v10046_v14 = vld [vmem:[%s9960_s28 + $0x30] sm:$0xff]  ;;  %v628_v15 = vrot.slane %v9972_v33, 5  ;;  %v10050_v16 = vld [vmem:[%s9960_s28 + $0x38] sm:$0x11]  ;;  %v632_v41 = vrot.slane %v9978_v35, 5 }
  0x26   : > { %v530_v63 = vor.u32 %v529_v57, %v526_v54  ;;  %v538_v17 = vshrl.u32 %v10046_v14, 16  ;;  %v9466_v43 = vld [vmem:[%s13246_s3 + $0x1a0] sm:$0xff]   ;;  %v7903_v45 = vrot.slane %v9981_v36, 9  ;;  %v636_v46 = vrot.slane %v9984_v37, 5  ;;  %v10122_v49 = vld [vmem:[%s9960_s28 + $0x48] sm:$0x11] }
  0x27   : > { %8722 = vmatpush3.bf16.msra.mxu0 %v9433_v18  ;;  %v503_v62 = vrot.slane %v502_v56, 4  ;;  %v10030_v7 = vsel %vm10007_vm4, %v517_v1, %v521_v61  ;;  %v541_v18 = vshll.u32 %v10046_v14, 16  ;;  %v9465_v48 = vld [vmem:[%s13246_s3 + $0x120] sm:$0xff]   ;;  %v10125_v50 = vld [vmem:[%s9960_s28 + $0x50] sm:$0xff]  ;;  %v10128_v51 = vld [vmem:[%s9960_s28 + $0x58] sm:$0x11] }
  0x28   : > { %8762 = vmatpush3.bf16.msra.mxu1 %v9434_v19  ;;  %8723 = vmatprep.subr.bf16.mxu0 %v9435_v20  ;;  %v531_v10 = vrot.slane %v530_v63, 4  ;;  %v10056_v19 = vcombine.high %v9981_v36, %v10046_v14  ;;  %v9455_v20 = vld [vmem:[%s13246_s3 + $0x130] sm:$0xff]   ;;  %v561_v53 = vshll.u32 %v10122_v49, 16  ;;  %v566_v54 = vshrl.u32 %v10125_v50, 16  ;;  %v9469_v61 = vld [vmem:[%s13246_s3 + $0x158] sm:$0xff]   ;;  %v9651_v59 = vld [vmem:[%s13246_s3 + $0x680] sm:$0xff]  }
  0x29   : > { %8763 = vmatprep.subr.bf16.mxu1 %v9436_v21  ;;  %v508_v3 = vsel %vm10007_vm4, %v503_v62, %v507_v52  ;;  %v547_v21 = vshll.u32 %v10050_v16, 16  ;;  %v569_v55 = vshll.u32 %v10125_v50, 16  ;;  %v575_v57 = vshll.u32 %v10128_v51, 16  ;;  %v9470_v62 = vld [vmem:[%s13246_s3 + $0x1d8] sm:$0xff]  }
  0x2a   : > { %v10037_v11 = vcombine.low %v508_v3, %v10030_v7  ;;  %v10040_v12 = vcombine.high %v508_v3, %v10030_v7  ;;  %v10088_v32 = vsel %vm10007_vm4, %v531_v10, %v535_v4  ;;  %v568_v1 = vrot.slane %v566_v54, 4 }
  0x2b   : > { %8724 = vmatpush3.bf16.msra.mxu0 %v9437_v22  ;;  %v10065_v22 = vcombine.low %v9981_v36, %v10046_v14  ;;  %v571_v3 = vrot.slane %v569_v55, 5  ;;  %v577_v4 = vrot.slane %v575_v57, 5 }
  0x2c   : > { %8764 = vmatpush3.bf16.msra.mxu1 %v9438_v23  ;;  %8725 = vmatprep.subr.bf16.mxu0 %v9439_v24  ;;  %v10069_v23 = vsel %vm10016_vm5, %v7901_v9, %v628_v15  ;;  %v540_v24 = vrot.slane %v538_v17, 4  ;;  %v9472_v17 = vld [vmem:[%s13246_s3 + $0x198] sm:$0xff]  }
  0x2d   : > { %8765 = vmatprep.subr.bf16.mxu1 %v9440_v25  ;;  %923 = vmatprep.mubr.bf16.mxu0 %v10040_v12  ;;  %v543_v25 = vrot.slane %v541_v18, 5  ;;  %v572_v10 = vor.u32 %v571_v3, %v568_v1 }
  0x2f   : > { %8726 = vmatpush3.bf16.msra.mxu0 %v9441_v26  ;;  %v9459_v26 = vld [vmem:[%s13246_s3 + $0x168] sm:$0xff]  }
  0x30   : > { %8766 = vmatpush3.bf16.msra.mxu1 %v9442_v27  ;;  %8727 = vmatprep.subr.bf16.mxu0 %v9443_v28  ;;  %v9460_v27 = vld [vmem:[%s13246_s3 + $0x1e8] sm:$0xff]   ;;  %v549_v28 = vrot.slane %v547_v21, 5 }
  0x31   : > { %8767 = vmatprep.subr.bf16.mxu1 %v9444_v29  ;;  %v9462_v29 = vld [vmem:[%s13246_s3 + $0x1a8] sm:$0xff]  }
  0x33   : > { %8728 = vmatpush3.bf16.msra.mxu0 %v9445_v30  ;;  %v544_v30 = vor.u32 %v543_v25, %v540_v24  ;;  %v573_v24 = vrot.slane %v572_v10, 4  ;;  %v9473_v25 = vld [vmem:[%s13246_s3 + $0x150] sm:$0xff]  }
  0x34   : > { %8768 = vmatpush3.bf16.msra.mxu1 %v9446_v31  ;;  %8793 = vmatprep.subr.bf16.mxu0 %v9449_v44  ;;  %v9461_v31 = vld [vmem:[%s13246_s3 + $0x128] sm:$0xff]   ;;  %v10106_v44 = vld [vmem:[%s9960_s28 + $0x40] sm:$0xff] }
  0x35   : > { %8833 = vmatprep.subr.bf16.mxu1 %v9450_v58  ;;  %v545_v33 = vrot.slane %v544_v30, 4  ;;  %v552_v37 = vshrl.u32 %v10106_v44, 16  ;;  %v555_v52 = vshll.u32 %v10106_v44, 16  ;;  %v10139_v58 = vcombine.high %v10106_v44, %v10125_v50 }
  0x36   : > { %924 = vmatmul.mubr.bf16.vlgmr.msra.gmra.mxu0 %v10037_v11  ;;  %v10143_v60 = vcombine.low %v10106_v44, %v10125_v50 }
  0x37   : > { %1117 = vmatmul.mubr.bf16.vlgmr.msra.gmra.mxu1 %v7967_v40  ;;  %8794 = vmatpush3.bf16.msra.mxu0 %v9451_v5  ;;  %v7902_v40 = vrot.slane %v9975_v34, 9  ;;  %v10100_v42 = vsel %vm10007_vm4, %v545_v33, %v549_v28  ;;  %v554_v56 = vrot.slane %v552_v37, 4  ;;  %v557_v63 = vrot.slane %v555_v52, 5  ;;  %v9471_v5 = vld [vmem:[%s13246_s3 + $0x118] sm:$0xff]   ;;  %v9476_v33 = vld [vmem:[%s13246_s3 + $0x190] sm:$0xff]  }
  0x38   : > { %8834 = vmatpush3.bf16.msra.mxu1 %v9452_v0  ;;  %1124 = vmatprep.mubr.bf16.mxu1 %v10056_v19  ;;  %v10112_v47 = vcombine.high %v10088_v32, %v10100_v42  ;;  %v10116_v35 = vcombine.low %v10088_v32, %v10100_v42  ;;  %v563_v0 = vrot.slane %v561_v53, 5  ;;  %v10192_v28 = vsel %vm10007_vm4, %v573_v24, %v577_v4 }
  0x39   : > { %8835 = vmatprep.subr.bf16.mxu1 %v9454_v6  ;;  %8795 = vmatprep.subr.bf16.mxu0 %v9453_v8  ;;  %v10158_v6 = vsel %vm10016_vm5, %v7902_v40, %v632_v41  ;;  %v10162_v8 = vsel %vm10016_vm5, %v7903_v45, %v636_v46  ;;  %v558_v9 = vor.u32 %v557_v63, %v554_v56  ;;  %v7904_v40 = vrot.slane %v10046_v14, 9  ;;  %v10220_v45 = vld [vmem:[%s9960_s28 + $0x78] sm:$0x11]  ;;  %v9479_v56 = vld [vmem:[%s13246_s3 + $0x148] sm:$0xff]  }
  0x3a   : > { %931 = vmatprep.mubr.bf16.mxu0 %v10112_v47  ;;  %v8168_v15 = vcombine.high %v10069_v23, %v10158_v6  ;;  %v10174_v18 = vcombine.high %v10158_v6, %v10162_v8  ;;  %v640_v41 = vrot.slane %v10050_v16, 5  ;;  %v10227_v52 = vcombine.high %v10030_v7, %v10088_v32 }
  0x3b   : > { %8796 = vmatpush3.bf16.msra.mxu0 %v9455_v20  ;;  %v10178_v20 = vcombine.low %v10158_v6, %v10162_v8  ;;  %v559_v21 = vrot.slane %v558_v9, 4  ;;  %v603_v54 = vshll.u32 %v10220_v45, 16 }
  0x3c   : > { %8836 = vmatpush3.bf16.msra.mxu1 %v9456_v13  ;;  %8797 = vmatprep.subr.bf16.mxu0 %v9459_v26  ;;  %v8167_v13 = vcombine.low %v10069_v23, %v10158_v6  ;;  %v9474_v26 = vld [vmem:[%s13246_s3 + $0x1d0] sm:$0xff]   ;;  %v641_v10 = vsel %vm10016_vm5, %v7904_v40, %v640_v41  ;;  %v9484_v41 = vld [vmem:[%s13246_s3 + $0x1c0] sm:$0xff]   ;;  %v9534_v23 = vld [vmem:[%s13246_s3 + $0x3e8] sm:$0xff]  }
  0x3d   : > { %8837 = vmatprep.subr.bf16.mxu1 %v9460_v27  ;;  %v10188_v27 = vsel %vm10007_vm4, %v559_v21, %v563_v0  ;;  %v9480_v0 = vld [vmem:[%s13246_s3 + $0x1c8] sm:$0xff]   ;;  %v605_v4 = vrot.slane %v603_v54, 5  ;;  %v10260_v24 = vcombine.high %v10162_v8, %v641_v10  ;;  %v10293_v54 = vcombine.high %v9975_v34, %v9981_v36 }
  0x3e   : > { %932 = vmatmul.mubr.bf16.gmra.mxu0 %v10116_v35  ;;  %v10199_v30 = vcombine.high %v10188_v27, %v10192_v28  ;;  %v9482_v21 = vld [vmem:[%s13246_s3 + $0x188] sm:$0xff]  }
  0x3f   : > { %1125 = vmatmul.mubr.bf16.gmra.mxu1 %v10065_v22  ;;  %8798 = vmatpush3.bf16.msra.mxu0 %v9461_v31  ;;  %v10203_v31 = vcombine.low %v10188_v27, %v10192_v28  ;;  %v9535_v6 = vld [vmem:[%s13246_s3 + $0x328] sm:$0xff]  }
  0x40   : > { %8838 = vmatpush3.bf16.msra.mxu1 %v9462_v29  ;;  %8799 = vmatprep.subr.bf16.mxu0 %v9463_v38  ;;  %v9475_v29 = vld [vmem:[%s13246_s3 + $0x110] sm:$0xff]   ;;  %v10209_v38 = vld [vmem:[%s9960_s28 + $0x60] sm:$0xff] }
  0x41   : > { %8839 = vmatprep.subr.bf16.mxu1 %v9464_v39  ;;  %1132 = vmatprep.mubr.bf16.mxu1 %v10139_v58  ;;  %v10212_v39 = vld [vmem:[%s9960_s28 + $0x68] sm:$0x11]  ;;  %v580_v46 = vshrl.u32 %v10209_v38, 16 }
  0x42   : > { %v589_v37 = vshll.u32 %v10212_v39, 16  ;;  %939 = vmatprep.mubr.bf16.mxu0 %v10199_v30 }
  0x43   : > { %8800 = vmatpush3.bf16.msra.mxu0 %v9465_v48  ;;  %v583_v48 = vshll.u32 %v10209_v38, 16  ;;  %v582_v57 = vrot.slane %v580_v46, 4 }
  0x44   : > { %8840 = vmatpush3.bf16.msra.mxu1 %v9466_v43  ;;  %8801 = vmatprep.subr.bf16.mxu0 %v9469_v61  ;;  %v10217_v43 = vld [vmem:[%s9960_s28 + $0x70] sm:$0xff] }
  0x45   : > { %8841 = vmatprep.subr.bf16.mxu1 %v9470_v62  ;;  %v594_v16 = vshrl.u32 %v10217_v43, 16  ;;  %v597_v53 = vshll.u32 %v10217_v43, 16  ;;  %v10235_v55 = vcombine.high %v10209_v38, %v10217_v43  ;;  %v585_v61 = vrot.slane %v583_v48, 5 }
  0x46   : > { %940 = vmatmul.mubr.bf16.gmra.mxu0 %v10203_v31  ;;  %v591_v62 = vrot.slane %v589_v37, 5  ;;  %v10243_v63 = vcombine.low %v10209_v38, %v10217_v43  ;;  %v644_v48 = vrot.slane %v10122_v49, 5  ;;  %v10282_v37 = vcombine.low %v10030_v7, %v10088_v32  ;;  %v9489_v32 = vld [vmem:[%s13246_s3 + $0x2f8] sm:$0xff]  }
  0x47   : > { %1133 = vmatmul.mubr.bf16.gmra.mxu1 %v10143_v60  ;;  %8802 = vmatpush3.bf16.msra.mxu0 %v9471_v5  ;;  %v596_v1 = vrot.slane %v594_v16, 4  ;;  %v599_v3 = vrot.slane %v597_v53, 5  ;;  %v9481_v5 = vld [vmem:[%s13246_s3 + $0x108] sm:$0xff]   ;;  %v586_v9 = vor.u32 %v585_v61, %v582_v57  ;;  %v9486_v53 = vld [vmem:[%s13246_s3 + $0x180] sm:$0xff]   ;;  %v648_v61 = vrot.slane %v10128_v51, 5 }
  0x48   : > { %8842 = vmatpush3.bf16.msra.mxu1 %v9472_v17  ;;  %8803 = vmatprep.subr.bf16.mxu0 %v9473_v25  ;;  %v10263_v25 = vcombine.low %v10162_v8, %v641_v10  ;;  %v9485_v8 = vld [vmem:[%s13246_s3 + $0x100] sm:$0xff]  }
  0x49   : > { %8843 = vmatprep.subr.bf16.mxu1 %v9474_v26  ;;  %1140 = vmatprep.mubr.bf16.mxu1 %v10235_v55  ;;  %v600_v17 = vor.u32 %v599_v3, %v596_v1  ;;  %v7905_v26 = vrot.slane %v10106_v44, 9  ;;  %v7907_v1 = vrot.slane %v10209_v38, 9 }
  0x4b   : > { %8804 = vmatpush3.bf16.msra.mxu0 %v9475_v29  ;;  %v587_v29 = vrot.slane %v586_v9, 4  ;;  %v601_v40 = vrot.slane %v600_v17, 4  ;;  %v645_v57 = vsel %vm10016_vm5, %v7905_v26, %v644_v48  ;;  %v9492_v9 = vld [vmem:[%s13246_s3 + $0x238] sm:$0xff]   ;;  %v656_v26 = vrot.slane %v10220_v45, 5  ;;  %v9496_v48 = vld [vmem:[%s13246_s3 + $0x230] sm:$0xff]  }
  0x4c   : > { %8844 = vmatpush3.bf16.msra.mxu1 %v9476_v33  ;;  %8805 = vmatprep.subr.bf16.mxu0 %v9479_v56  ;;  %v9483_v33 = vld [vmem:[%s13246_s3 + $0x140] sm:$0xff]   ;;  %v7906_v56 = vrot.slane %v10125_v50, 9  ;;  %v10318_v3 = vcombine.high %v641_v10, %v645_v57  ;;  %v10357_v45 = vcombine.low %v9975_v34, %v9981_v36  ;;  %v10377_v34 = vcombine.low %v10100_v42, %v10188_v27  ;;  %v9500_v36 = vld [vmem:[%s13246_s3 + $0x268] sm:$0xff]  }
  0x4d   : > { %8845 = vmatprep.subr.bf16.mxu1 %v9480_v0  ;;  %v10274_v46 = vsel %vm10007_vm4, %v587_v29, %v591_v62  ;;  %v10286_v16 = vsel %vm10007_vm4, %v601_v40, %v605_v4  ;;  %v9490_v62 = vld [vmem:[%s13246_s3 + $0x278] sm:$0xff]   ;;  %v10315_v0 = vcombine.high %v10100_v42, %v10188_v27  ;;  %v10320_v4 = vcombine.low %v641_v10, %v645_v57  ;;  %v9494_v29 = vld [vmem:[%s13246_s3 + $0x270] sm:$0xff]   ;;  %v9502_v42 = vld [vmem:[%s13246_s3 + $0x228] sm:$0xff]  }
  0x4e   : > { %v10298_v49 = vcombine.high %v10274_v46, %v10286_v16  ;;  %v10302_v7 = vcombine.low %v10274_v46, %v10286_v16  ;;  %v649_v51 = vsel %vm10016_vm5, %v7906_v56, %v648_v61  ;;  %v7908_v10 = vrot.slane %v10217_v43, 9  ;;  %v9495_v61 = vld [vmem:[%s13246_s3 + $0x2b0] sm:$0xff]   ;;  %v9499_v27 = vld [vmem:[%s13246_s3 + $0x2e8] sm:$0xff]  }
  0x4f   : > { %1141 = vmatmul.mubr.bf16.gmra.mxu1 %v10243_v63  ;;  %8806 = vmatpush3.bf16.msra.mxu0 %v9481_v5  ;;  %v652_v5 = vrot.slane %v10212_v39, 5  ;;  %v10330_v17 = vcombine.high %v645_v57, %v649_v51 }
  0x50   : > { %1548 = vmatprep.mubr.bf16.mxu1 %v10227_v52  ;;  %8846 = vmatpush3.bf16.msra.mxu1 %v9482_v21  ;;  %v10332_v21 = vcombine.low %v645_v57, %v649_v51  ;;  %v10373_v57 = vcombine.high %v10046_v14, %v10106_v44 }
  0x51   : > { %8807 = vmatprep.subr.bf16.mxu0 %v9483_v33  ;;  %8847 = vmatprep.subr.bf16.mxu1 %v9484_v41  ;;  %v653_v39 = vsel %vm10016_vm5, %v7907_v1, %v652_v5  ;;  %v9491_v41 = vld [vmem:[%s13246_s3 + $0x2b8] sm:$0xff]   ;;  %v9504_v1 = vld [vmem:[%s13246_s3 + $0x260] sm:$0xff]   ;;  %v10407_v5 = vcombine.low %v10046_v14, %v10106_v44 }
  0x52   : > { %947 = vmatprep.mubr.bf16.mxu0 %v10298_v49  ;;  %v10344_v33 = vcombine.high %v649_v51, %v653_v39  ;;  %v10346_v40 = vcombine.low %v649_v51, %v653_v39  ;;  %v9501_v51 = vld [vmem:[%s13246_s3 + $0x2a8] sm:$0xff]   ;;  %v9510_v14 = vld [vmem:[%s13246_s3 + $0x258] sm:$0xff]   ;;  %v9505_v44 = vld [vmem:[%s13246_s3 + $0x2a0] sm:$0xff]  }
  0x53   : > { %8808 = vmatpush3.bf16.msra.mxu0 %v9485_v8  ;;  %v10353_v8 = vsel %vm10016_vm5, %v7908_v10, %v656_v26  ;;  %v9503_v10 = vld [vmem:[%s13246_s3 + $0x2e0] sm:$0xff]   ;;  %v10421_v26 = vcombine.low %v10192_v28, %v10274_v46 }
  0x54   : > { %8848 = vmatpush3.bf16.msra.mxu1 %v9486_v53  ;;  %8873 = vmatprep.subr.bf16.mxu0 %v9489_v32  ;;  %v10363_v53 = vcombine.high %v653_v39, %v10353_v8  ;;  %v10366_v56 = vcombine.low %v653_v39, %v10353_v8  ;;  %v9493_v32 = vld [vmem:[%s13246_s3 + $0x2f0] sm:$0xff]   ;;  %v10417_v39 = vcombine.high %v10125_v50, %v10209_v38 }
  0x55   : > { %948 = vmatmul.mubr.bf16.gmra.mxu0 %v10302_v7  ;;  %8913 = vmatprep.subr.bf16.mxu1 %v9490_v62  ;;  %v10387_v62 = vcombine.high %v10192_v28, %v10274_v46  ;;  %v9509_v28 = vld [vmem:[%s13246_s3 + $0x2d8] sm:$0xff]   ;;  %v9514_v46 = vld [vmem:[%s13246_s3 + $0x250] sm:$0xff]  }
  0x56   : > { %1328 = vmatprep.mubr.bf16.mxu0 %v10293_v54 }
  0x57   : > { %1549 = vmatmul.mubr.bf16.vlgmr.msra.gmra.mxu1 %v10282_v37 }
  0x58   : > { %8914 = vmatpush3.bf16.msra.mxu1 %v9492_v9  ;;  %1556 = vmatprep.mubr.bf16.mxu1 %v10315_v0  ;;  %v9506_v9 = vld [vmem:[%s13246_s3 + $0x220] sm:$0xff]  }
  0x59   : > { %8915 = vmatprep.subr.bf16.mxu1 %v9494_v29  ;;  %v9512_v29 = vld [vmem:[%s13246_s3 + $0x218] sm:$0xff]  }
  0x5c   : > { %8916 = vmatpush3.bf16.msra.mxu1 %v9496_v48  ;;  %v10452_v48 = vcombine.low %v10125_v50, %v10209_v38 }
  0x5d   : > { %1329 = vmatmul.mubr.bf16.vlgmr.msra.gmra.mxu0 %v10357_v45  ;;  %8917 = vmatprep.subr.bf16.mxu1 %v9500_v36  ;;  %v10458_v36 = vld [vmem:[%s10445_s20] sm:$0xff] }
  0x5e   : > { %8874 = vmatpush3.bf16.msra.mxu0 %v9491_v41  ;;  %1336 = vmatprep.mubr.bf16.mxu0 %v10373_v57  ;;  %v9511_v41 = vld [vmem:[%s13246_s3 + $0x298] sm:$0xff]   ;;  %v659_v50 = vshrl.u32 %v10458_v36, 16  ;;  %v662_v38 = vshll.u32 %v10458_v36, 16 }
  0x5f   : > { %8875 = vmatprep.subr.bf16.mxu0 %v9493_v32  ;;  %1557 = vmatmul.mubr.bf16.gmra.mxu1 %v10377_v34  ;;  %v9516_v32 = vld [vmem:[%s13246_s3 + $0x210] sm:$0xff]  }
  0x60   : > { %8918 = vmatpush3.bf16.msra.mxu1 %v9502_v42  ;;  %1564 = vmatprep.mubr.bf16.mxu1 %v10387_v62  ;;  %v9513_v42 = vld [vmem:[%s13246_s3 + $0x2d0] sm:$0xff]  }
  0x61   : > { %8919 = vmatprep.subr.bf16.mxu1 %v9504_v1 }
  0x62   : > { %8876 = vmatpush3.bf16.msra.mxu0 %v9495_v61  ;;  %v10461_v61 = vld [vmem:[%s10445_s20 + $0x8] sm:$0x11] }
  0x63   : > { %8877 = vmatprep.subr.bf16.mxu0 %v9499_v27  ;;  %v10468_v27 = vcombine.high %v10217_v43, %v10458_v36  ;;  %v668_v1 = vshll.u32 %v10461_v61, 16 }
  0x64   : > { %8920 = vmatpush3.bf16.msra.mxu1 %v9506_v9  ;;  %v9515_v9 = vld [vmem:[%s13246_s3 + $0x290] sm:$0xff]  }
  0x65   : > { %1337 = vmatmul.mubr.bf16.gmra.mxu0 %v10407_v5  ;;  %8921 = vmatprep.subr.bf16.mxu1 %v9510_v14  ;;  %v664_v14 = vrot.slane %v662_v38, 5  ;;  %v10492_v38 = vcombine.low %v10217_v43, %v10458_v36  ;;  %v9524_v43 = vld [vmem:[%s13246_s3 + $0x200] sm:$0xff]  }
  0x66   : > { %8878 = vmatpush3.bf16.msra.mxu0 %v9501_v51  ;;  %1344 = vmatprep.mubr.bf16.mxu0 %v10417_v39  ;;  %v9518_v51 = vld [vmem:[%s13246_s3 + $0x248] sm:$0xff]  }
  0x67   : > { %8879 = vmatprep.subr.bf16.mxu0 %v9503_v10  ;;  %1565 = vmatmul.mubr.bf16.gmra.mxu1 %v10421_v26  ;;  %v661_v10 = vrot.slane %v659_v50, 4 }
  0x68   : > { %8922 = vmatpush3.bf16.msra.mxu1 %v9512_v29 }
  0x69   : > { %8923 = vmatprep.subr.bf16.mxu1 %v9514_v46  ;;  %v665_v29 = vor.u32 %v664_v14, %v661_v10  ;;  %v9520_v46 = vld [vmem:[%s13246_s3 + $0x208] sm:$0xff]   ;;  %v9526_v10 = vld [vmem:[%s13246_s3 + $0x3f8] sm:$0xff]   ;;  %v9523_v14 = vld [vmem:[%s13246_s3 + $0x280] sm:$0xff]  }
  0x6a   : > { %8880 = vmatpush3.bf16.msra.mxu0 %v9505_v44  ;;  %v9517_v44 = vld [vmem:[%s13246_s3 + $0x2c8] sm:$0xff]  }
  0x6b   : > { %8881 = vmatprep.subr.bf16.mxu0 %v9509_v28  ;;  %v670_v28 = vrot.slane %v668_v1, 5  ;;  %v666_v50 = vrot.slane %v665_v29, 4  ;;  %v9528_v29 = vld [vmem:[%s13246_s3 + $0x3b8] sm:$0xff]  }
  0x6c   : > { %8924 = vmatpush3.bf16.msra.mxu1 %v9516_v32  ;;  %v9519_v32 = vld [vmem:[%s13246_s3 + $0x288] sm:$0xff]  }
  0x6d   : > { %1345 = vmatmul.mubr.bf16.gmra.mxu0 %v10452_v48  ;;  %8925 = vmatprep.subr.bf16.mxu1 %v9518_v51  ;;  %v10502_v1 = vsel %vm10007_vm4, %v666_v50, %v670_v28  ;;  %v9529_v28 = vld [vmem:[%s13246_s3 + $0x370] sm:$0xff]   ;;  %v9538_v50 = vld [vmem:[%s13246_s3 + $0x3e0] sm:$0xff]  }
  0x6e   : > { %8882 = vmatpush3.bf16.msra.mxu0 %v9511_v41  ;;  %1352 = vmatprep.mubr.bf16.mxu0 %v10468_v27  ;;  %v9522_v41 = vld [vmem:[%s13246_s3 + $0x240] sm:$0xff]   ;;  %v10509_v51 = vcombine.high %v10286_v16, %v10502_v1 }
  0x6f   : > { %8883 = vmatprep.subr.bf16.mxu0 %v9513_v42  ;;  %v9521_v42 = vld [vmem:[%s13246_s3 + $0x2c0] sm:$0xff]  }
  0x70   : > { %8926 = vmatpush3.bf16.msra.mxu1 %v9520_v46  ;;  %1572 = vmatprep.mubr.bf16.mxu1 %v10509_v51  ;;  %v9532_v46 = vld [vmem:[%s13246_s3 + $0x3b0] sm:$0xff]  }
  0x71   : > { %8927 = vmatprep.subr.bf16.mxu1 %v9522_v41  ;;  %v9539_v41 = vld [vmem:[%s13246_s3 + $0x320] sm:$0xff]  }
  0x72   : > { %8884 = vmatpush3.bf16.msra.mxu0 %v9515_v9  ;;  %v10513_v9 = vcombine.low %v10286_v16, %v10502_v1  ;;  %v9525_v16 = vld [vmem:[%s13246_s3 + $0x378] sm:$0xff]  }
  0x73   : > { %8885 = vmatprep.subr.bf16.mxu0 %v9517_v44  ;;  %v9527_v44 = vld [vmem:[%s13246_s3 + $0x338] sm:$0xff]  }
  0x74   : > { %8928 = vmatpush3.bf16.msra.mxu1 %v9524_v43  ;;  %v9541_v43 = vld [vmem:[%s13246_s3 + $0x358] sm:$0xff]  }
  0x75   : > { %1353 = vmatmul.mubr.bf16.gmra.mxu0 %v10492_v38  ;;  %1573 = vmatmul.mubr.bf16.gmra.mxu1 %v10513_v9 }
  0x76   : > { %8886 = vmatpush3.bf16.msra.mxu0 %v9519_v32  ;;  %1815 = vmatprep.mubr.bf16.mxu0 %v8168_v15  ;;  %v9530_v15 = vld [vmem:[%s13246_s3 + $0x3f0] sm:$0xff]   ;;  %v9533_v32 = vld [vmem:[%s13246_s3 + $0x368] sm:$0xff]  }
  0x77   : > { %8887 = vmatprep.subr.bf16.mxu0 %v9521_v42  ;;  %1976 = vmatprep.mubr.bf16.mxu1 %v10040_v12  ;;  %v9531_v12 = vld [vmem:[%s13246_s3 + $0x330] sm:$0xff]   ;;  %v9540_v42 = vld [vmem:[%s13246_s3 + $0x3a0] sm:$0xff]  }
  0x78   : > { %8993 = vmatprep.subr.bf16.mxu1 %v9526_v10  ;;  %v9542_v10 = vld [vmem:[%s13246_s3 + $0x3d8] sm:$0xff]  }
  0x7a   : > { %8888 = vmatpush3.bf16.msra.mxu0 %v9523_v14  ;;  %v9543_v14 = vld [vmem:[%s13246_s3 + $0x318] sm:$0xff]  }
  0x7b   : > { %8953 = vmatprep.subr.bf16.mxu0 %v9525_v16  ;;  %v9544_v16 = vld [vmem:[%s13246_s3 + $0x398] sm:$0xff]  }
  0x7d   : > { %1816 = vmatmul.mubr.bf16.vlgmr.msra.gmra.mxu0 %v8167_v13  ;;  %1977 = vmatmul.mubr.bf16.vlgmr.msra.gmra.mxu1 %v10037_v11  ;;  %v9536_v11 = vld [vmem:[%s13246_s3 + $0x3a8] sm:$0xff]   ;;  %v9537_v13 = vld [vmem:[%s13246_s3 + $0x360] sm:$0xff]  }
  0x7e   : > { %8954 = vmatpush3.bf16.msra.mxu0 %v9527_v44  ;;  %1823 = vmatprep.mubr.bf16.mxu0 %v10260_v24  ;;  %v9545_v44 = vld [vmem:[%s13246_s3 + $0x350] sm:$0xff]  }
  0x7f   : > { %8955 = vmatprep.subr.bf16.mxu0 %v9529_v28  ;;  %8994 = vmatpush3.bf16.msra.mxu1 %v9528_v29  ;;  %v9546_v29 = vld [vmem:[%s13246_s3 + $0x3d0] sm:$0xff]  }
  0x80   : > { %1984 = vmatprep.mubr.bf16.mxu1 %v10112_v47  ;;  %8995 = vmatprep.subr.bf16.mxu1 %v9530_v15  ;;  %v9547_v28 = vld [vmem:[%s13246_s3 + $0x310] sm:$0xff]  }
  0x81   : > { %v9548_v15 = vld [vmem:[%s13246_s3 + $0x390] sm:$0xff]  }
  0x82   : > { %8956 = vmatpush3.bf16.msra.mxu0 %v9531_v12  ;;  %v9549_v12 = vld [vmem:[%s13246_s3 + $0x348] sm:$0xff]  }
  0x83   : > { %8957 = vmatprep.subr.bf16.mxu0 %v9533_v32  ;;  %8996 = vmatpush3.bf16.msra.mxu1 %v9532_v46  ;;  %v9550_v46 = vld [vmem:[%s13246_s3 + $0x3c8] sm:$0xff]  }
  0x84   : > { %8997 = vmatprep.subr.bf16.mxu1 %v9534_v23  ;;  %v9551_v32 = vld [vmem:[%s13246_s3 + $0x308] sm:$0xff]  }
  0x85   : > { %1824 = vmatmul.mubr.bf16.gmra.mxu0 %v10263_v25  ;;  %1985 = vmatmul.mubr.bf16.gmra.mxu1 %v10116_v35  ;;  %v9552_v23 = vld [vmem:[%s13246_s3 + $0x388] sm:$0xff]  }
  0x86   : > { %8958 = vmatpush3.bf16.msra.mxu0 %v9535_v6  ;;  %1831 = vmatprep.mubr.bf16.mxu0 %v10330_v17  ;;  %v9553_v6 = vld [vmem:[%s13246_s3 + $0x340] sm:$0xff]  }
  0x87   : > { %8959 = vmatprep.subr.bf16.mxu0 %v9537_v13  ;;  %8998 = vmatpush3.bf16.msra.mxu1 %v9536_v11  ;;  %v9554_v11 = vld [vmem:[%s13246_s3 + $0x3c0] sm:$0xff]  }
  0x88   : > { %1992 = vmatprep.mubr.bf16.mxu1 %v10199_v30  ;;  %8999 = vmatprep.subr.bf16.mxu1 %v9538_v50  ;;  %v9555_v13 = vld [vmem:[%s13246_s3 + $0x300] sm:$0xff]  }
  0x89   : > { %v9556_v50 = vld [vmem:[%s13246_s3 + $0x380] sm:$0xff]  }
  0x8a   : > { %8960 = vmatpush3.bf16.msra.mxu0 %v9539_v41  ;;  %v9557_v41 = vld [vmem:[%s13246_s3 + $0x4f8] sm:$0xff]  }
  0x8b   : > { %8961 = vmatprep.subr.bf16.mxu0 %v9541_v43  ;;  %9000 = vmatpush3.bf16.msra.mxu1 %v9540_v42  ;;  %v9558_v42 = vld [vmem:[%s13246_s3 + $0x478] sm:$0xff]  }
  0x8c   : > { %9001 = vmatprep.subr.bf16.mxu1 %v9542_v10  ;;  %v9559_v43 = vld [vmem:[%s13246_s3 + $0x4b8] sm:$0xff]  }
  0x8d   : > { %1832 = vmatmul.mubr.bf16.gmra.mxu0 %v10332_v21  ;;  %1993 = vmatmul.mubr.bf16.gmra.mxu1 %v10203_v31  ;;  %v9560_v10 = vld [vmem:[%s13246_s3 + $0x438] sm:$0xff]  }
  0x8e   : > { %8962 = vmatpush3.bf16.msra.mxu0 %v9543_v14  ;;  %1839 = vmatprep.mubr.bf16.mxu0 %v10363_v53  ;;  %v9561_v14 = vld [vmem:[%s13246_s3 + $0x4f0] sm:$0xff]  }
  0x8f   : > { %8963 = vmatprep.subr.bf16.mxu0 %v9545_v44  ;;  %9002 = vmatpush3.bf16.msra.mxu1 %v9544_v16  ;;  %v9562_v16 = vld [vmem:[%s13246_s3 + $0x470] sm:$0xff]  }
  0x90   : > { %2000 = vmatprep.mubr.bf16.mxu1 %v10298_v49  ;;  %9003 = vmatprep.subr.bf16.mxu1 %v9546_v29  ;;  %v9563_v44 = vld [vmem:[%s13246_s3 + $0x4b0] sm:$0xff]  }
  0x91   : > { %v9564_v29 = vld [vmem:[%s13246_s3 + $0x430] sm:$0xff]  }
  0x92   : > { %8964 = vmatpush3.bf16.msra.mxu0 %v9547_v28  ;;  %v9565_v28 = vld [vmem:[%s13246_s3 + $0x4e8] sm:$0xff]  }
  0x93   : > { %8965 = vmatprep.subr.bf16.mxu0 %v9549_v12  ;;  %9004 = vmatpush3.bf16.msra.mxu1 %v9548_v15  ;;  %v9566_v15 = vld [vmem:[%s13246_s3 + $0x468] sm:$0xff]  }
  0x94   : > { %9005 = vmatprep.subr.bf16.mxu1 %v9550_v46  ;;  %v9567_v12 = vld [vmem:[%s13246_s3 + $0x4a8] sm:$0xff]  }
  0x95   : > { %1840 = vmatmul.mubr.bf16.gmra.mxu0 %v10366_v56  ;;  %2001 = vmatmul.mubr.bf16.gmra.mxu1 %v10302_v7  ;;  %v9568_v46 = vld [vmem:[%s13246_s3 + $0x428] sm:$0xff]  }
  0x96   : > { %8966 = vmatpush3.bf16.msra.mxu0 %v9551_v32  ;;  %2170 = vmatprep.mubr.bf16.mxu0 %v10227_v52  ;;  %v9569_v32 = vld [vmem:[%s13246_s3 + $0x4e0] sm:$0xff]  }
  0x97   : > { %8967 = vmatprep.subr.bf16.mxu0 %v9553_v6  ;;  %9006 = vmatpush3.bf16.msra.mxu1 %v9552_v23  ;;  %v9570_v23 = vld [vmem:[%s13246_s3 + $0x460] sm:$0xff]   ;;  %v7909_v6 = vrot.slane %v10458_v36, 9  ;;  %v9573_v36 = vld [vmem:[%s13246_s3 + $0x4d8] sm:$0xff]  }
  0x98   : > { %2390 = vmatprep.mubr.bf16.mxu1 %v10174_v18  ;;  %9007 = vmatprep.subr.bf16.mxu1 %v9554_v11  ;;  %v9571_v11 = vld [vmem:[%s13246_s3 + $0x4a0] sm:$0xff]  }
  0x9a   : > { %8968 = vmatpush3.bf16.msra.mxu0 %v9555_v13  ;;  %v676_v13 = vrot.slane %v10461_v61, 5  ;;  %v9574_v61 = vld [vmem:[%s13246_s3 + $0x458] sm:$0xff]  }
  0x9b   : > { %9033 = vmatprep.subr.bf16.mxu0 %v9557_v41  ;;  %9008 = vmatpush3.bf16.msra.mxu1 %v9556_v50  ;;  %v9572_v50 = vld [vmem:[%s13246_s3 + $0x420] sm:$0xff]   ;;  %v9575_v41 = vld [vmem:[%s13246_s3 + $0x498] sm:$0xff]  }
  0x9c   : > { %9073 = vmatprep.subr.bf16.mxu1 %v9558_v42  ;;  %v10708_v42 = vsel %vm10016_vm5, %v7909_v6, %v676_v13  ;;  %v9586_v6 = vld [vmem:[%s13246_s3 + $0x440] sm:$0xff]   ;;  %v9589_v13 = vld [vmem:[%s13246_s3 + $0x578] sm:$0xff]  }
  0x9d   : > { %2171 = vmatmul.mubr.bf16.vlgmr.msra.gmra.mxu0 %v10282_v37 }
  0x9e   : > { %9034 = vmatpush3.bf16.msra.mxu0 %v9559_v43  ;;  %2178 = vmatprep.mubr.bf16.mxu0 %v10315_v0  ;;  %v9576_v43 = vld [vmem:[%s13246_s3 + $0x418] sm:$0xff]  }
  0x9f   : > { %2391 = vmatmul.mubr.bf16.vlgmr.msra.gmra.mxu1 %v10178_v20  ;;  %9035 = vmatprep.subr.bf16.mxu0 %v9561_v14  ;;  %v9578_v14 = vld [vmem:[%s13246_s3 + $0x450] sm:$0xff]  }
  0xa0   : > { %9074 = vmatpush3.bf16.msra.mxu1 %v9560_v10  ;;  %2398 = vmatprep.mubr.bf16.mxu1 %v10318_v3  ;;  %v9577_v10 = vld [vmem:[%s13246_s3 + $0x4d0] sm:$0xff]  }
  0xa1   : > { %9075 = vmatprep.subr.bf16.mxu1 %v9562_v16  ;;  %v10721_v16 = vcombine.high %v10353_v8, %v10708_v42 }
  0xa2   : > { %9036 = vmatpush3.bf16.msra.mxu0 %v9563_v44  ;;  %v9579_v44 = vld [vmem:[%s13246_s3 + $0x490] sm:$0xff]  }
  0xa3   : > { %9037 = vmatprep.subr.bf16.mxu0 %v9565_v28  ;;  %v9581_v28 = vld [vmem:[%s13246_s3 + $0x4c8] sm:$0xff]  }
  0xa4   : > { %9076 = vmatpush3.bf16.msra.mxu1 %v9564_v29  ;;  %v9580_v29 = vld [vmem:[%s13246_s3 + $0x410] sm:$0xff]  }
  0xa5   : > { %2179 = vmatmul.mubr.bf16.gmra.mxu0 %v10377_v34  ;;  %9077 = vmatprep.subr.bf16.mxu1 %v9566_v15  ;;  %v9582_v15 = vld [vmem:[%s13246_s3 + $0x448] sm:$0xff]  }
  0xa6   : > { %9038 = vmatpush3.bf16.msra.mxu0 %v9567_v12  ;;  %2186 = vmatprep.mubr.bf16.mxu0 %v10387_v62  ;;  %v9583_v12 = vld [vmem:[%s13246_s3 + $0x488] sm:$0xff]  }
  0xa7   : > { %2399 = vmatmul.mubr.bf16.gmra.mxu1 %v10320_v4  ;;  %9039 = vmatprep.subr.bf16.mxu0 %v9569_v32  ;;  %v10747_v32 = vcombine.low %v10353_v8, %v10708_v42  ;;  %v9588_v8 = vld [vmem:[%s13246_s3 + $0x400] sm:$0xff]  }
  0xa8   : > { %9078 = vmatpush3.bf16.msra.mxu1 %v9568_v46  ;;  %2406 = vmatprep.mubr.bf16.mxu1 %v10344_v33  ;;  %v9584_v46 = vld [vmem:[%s13246_s3 + $0x408] sm:$0xff]  }
  0xa9   : > { %9079 = vmatprep.subr.bf16.mxu1 %v9570_v23  ;;  %v9585_v23 = vld [vmem:[%s13246_s3 + $0x4c0] sm:$0xff]  }
  0xaa   : > { %9040 = vmatpush3.bf16.msra.mxu0 %v9571_v11  ;;  %v9587_v11 = vld [vmem:[%s13246_s3 + $0x480] sm:$0xff]  }
  0xab   : > { %9041 = vmatprep.subr.bf16.mxu0 %v9573_v36  ;;  %v9591_v36 = vld [vmem:[%s13246_s3 + $0x538] sm:$0xff]  }
  0xac   : > { %9080 = vmatpush3.bf16.msra.mxu1 %v9572_v50  ;;  %v9590_v50 = vld [vmem:[%s13246_s3 + $0x5f8] sm:$0xff]  }
  0xad   : > { %2187 = vmatmul.mubr.bf16.gmra.mxu0 %v10421_v26  ;;  %9081 = vmatprep.subr.bf16.mxu1 %v9574_v61  ;;  %v9592_v61 = vld [vmem:[%s13246_s3 + $0x5b8] sm:$0xff]  }
  0xae   : > { %9042 = vmatpush3.bf16.msra.mxu0 %v9575_v41  ;;  %2194 = vmatprep.mubr.bf16.mxu0 %v10509_v51  ;;  %v9593_v41 = vld [vmem:[%s13246_s3 + $0x570] sm:$0xff]  }
  0xaf   : > { %2407 = vmatmul.mubr.bf16.gmra.mxu1 %v10346_v40  ;;  %9043 = vmatprep.subr.bf16.mxu0 %v9577_v10  ;;  %v9596_v10 = vld [vmem:[%s13246_s3 + $0x5b0] sm:$0xff]  }
  0xb0   : > { %9082 = vmatpush3.bf16.msra.mxu1 %v9576_v43  ;;  %2414 = vmatprep.mubr.bf16.mxu1 %v10721_v16  ;;  %v9595_v43 = vld [vmem:[%s13246_s3 + $0x530] sm:$0xff]  }
  0xb1   : > { %9083 = vmatprep.subr.bf16.mxu1 %v9578_v14  ;;  %v9597_v14 = vld [vmem:[%s13246_s3 + $0x568] sm:$0xff]  }
  0xb2   : > { %9044 = vmatpush3.bf16.msra.mxu0 %v9579_v44  ;;  %v9598_v44 = vld [vmem:[%s13246_s3 + $0x5e8] sm:$0xff]  }
  0xb3   : > { %9045 = vmatprep.subr.bf16.mxu0 %v9581_v28  ;;  %v9601_v28 = vld [vmem:[%s13246_s3 + $0x560] sm:$0xff]  }
  0xb4   : > { %9084 = vmatpush3.bf16.msra.mxu1 %v9580_v29  ;;  %v9599_v29 = vld [vmem:[%s13246_s3 + $0x528] sm:$0xff]  }
  0xb5   : > { %2195 = vmatmul.mubr.bf16.gmra.mxu0 %v10513_v9  ;;  %9085 = vmatprep.subr.bf16.mxu1 %v9582_v15  ;;  %v9603_v15 = vld [vmem:[%s13246_s3 + $0x520] sm:$0xff]  }
  0xb6   : > { %9046 = vmatpush3.bf16.msra.mxu0 %v9583_v12  ;;  %2625 = vmatprep.mubr.bf16.mxu0 %v10227_v52  ;;  %v9604_v12 = vld [vmem:[%s13246_s3 + $0x5a0] sm:$0xff]  }
  0xb7   : > { %2415 = vmatmul.mubr.bf16.gmra.mxu1 %v10747_v32  ;;  %9047 = vmatprep.subr.bf16.mxu0 %v9585_v23  ;;  %v9606_v23 = vld [vmem:[%s13246_s3 + $0x5d8] sm:$0xff]  }
  0xb8   : > { %9086 = vmatpush3.bf16.msra.mxu1 %v9584_v46  ;;  %2786 = vmatprep.mubr.bf16.mxu1 %v10293_v54  ;;  %v9594_v54 = vld [vmem:[%s13246_s3 + $0x5f0] sm:$0xff]   ;;  %v9605_v46 = vld [vmem:[%s13246_s3 + $0x558] sm:$0xff]  }
  0xb9   : > { %9087 = vmatprep.subr.bf16.mxu1 %v9586_v6  ;;  %v9607_v6 = vld [vmem:[%s13246_s3 + $0x518] sm:$0xff]  }
  0xba   : > { %9048 = vmatpush3.bf16.msra.mxu0 %v9587_v11  ;;  %v9609_v11 = vld [vmem:[%s13246_s3 + $0x550] sm:$0xff]  }
  0xbb   : > { %9113 = vmatprep.subr.bf16.mxu0 %v9589_v13  ;;  %v9612_v13 = vld [vmem:[%s13246_s3 + $0x590] sm:$0xff]  }
  0xbc   : > { %9088 = vmatpush3.bf16.msra.mxu1 %v9588_v8  ;;  %v9611_v8 = vld [vmem:[%s13246_s3 + $0x510] sm:$0xff]  }
  0xbd   : > { %2626 = vmatmul.mubr.bf16.vlgmr.msra.gmra.mxu0 %v10282_v37  ;;  %9153 = vmatprep.subr.bf16.mxu1 %v9590_v50  ;;  %v9613_v50 = vld [vmem:[%s13246_s3 + $0x548] sm:$0xff]  }
  0xbe   : > { %9114 = vmatpush3.bf16.msra.mxu0 %v9591_v36  ;;  %2633 = vmatprep.mubr.bf16.mxu0 %v10315_v0  ;;  %v9614_v36 = vld [vmem:[%s13246_s3 + $0x5c8] sm:$0xff]  }
  0xbf   : > { %2787 = vmatmul.mubr.bf16.vlgmr.msra.gmra.mxu1 %v10357_v45  ;;  %9115 = vmatprep.subr.bf16.mxu0 %v9593_v41  ;;  %v9600_v45 = vld [vmem:[%s13246_s3 + $0x5a8] sm:$0xff]   ;;  %v9617_v41 = vld [vmem:[%s13246_s3 + $0x540] sm:$0xff]  }
  0xc0   : > { %9154 = vmatpush3.bf16.msra.mxu1 %v9592_v61  ;;  %2794 = vmatprep.mubr.bf16.mxu1 %v10373_v57  ;;  %v9602_v57 = vld [vmem:[%s13246_s3 + $0x5e0] sm:$0xff]   ;;  %v9615_v61 = vld [vmem:[%s13246_s3 + $0x508] sm:$0xff]  }
  0xc1   : > { %9155 = vmatprep.subr.bf16.mxu1 %v9594_v54  ;;  %v9619_v54 = vld [vmem:[%s13246_s3 + $0x500] sm:$0xff]  }
  0xc2   : > { %9116 = vmatpush3.bf16.msra.mxu0 %v9595_v43  ;;  %v9620_v43 = vld [vmem:[%s13246_s3 + $0x580] sm:$0xff]  }
  0xc3   : > { %9117 = vmatprep.subr.bf16.mxu0 %v9597_v14  ;;  %v9622_v14 = vld [vmem:[%s13246_s3 + $0x678] sm:$0xff]  }
  0xc4   : > { %9156 = vmatpush3.bf16.msra.mxu1 %v9596_v10  ;;  %v9621_v10 = vld [vmem:[%s13246_s3 + $0x6f8] sm:$0xff]  }
  0xc5   : > { %2634 = vmatmul.mubr.bf16.gmra.mxu0 %v10377_v34  ;;  %9157 = vmatprep.subr.bf16.mxu1 %v9598_v44  ;;  %v9623_v44 = vld [vmem:[%s13246_s3 + $0x6b8] sm:$0xff]  }
  0xc6   : > { %9118 = vmatpush3.bf16.msra.mxu0 %v9599_v29  ;;  %2641 = vmatprep.mubr.bf16.mxu0 %v10387_v62  ;;  %v9626_v29 = vld [vmem:[%s13246_s3 + $0x670] sm:$0xff]  }
  0xc7   : > { %2795 = vmatmul.mubr.bf16.gmra.mxu1 %v10407_v5  ;;  %9119 = vmatprep.subr.bf16.mxu0 %v9601_v28  ;;  %v9608_v5 = vld [vmem:[%s13246_s3 + $0x598] sm:$0xff]   ;;  %v9628_v28 = vld [vmem:[%s13246_s3 + $0x630] sm:$0xff]  }
  0xc8   : > { %9158 = vmatpush3.bf16.msra.mxu1 %v9600_v45  ;;  %2802 = vmatprep.mubr.bf16.mxu1 %v10417_v39  ;;  %v9610_v39 = vld [vmem:[%s13246_s3 + $0x5d0] sm:$0xff]  }
  0xc9   : > { %9159 = vmatprep.subr.bf16.mxu1 %v9602_v57  ;;  %v9627_v45 = vld [vmem:[%s13246_s3 + $0x6b0] sm:$0xff]   ;;  %v9630_v57 = vld [vmem:[%s13246_s3 + $0x668] sm:$0xff]  }
  0xca   : > { %9120 = vmatpush3.bf16.msra.mxu0 %v9603_v15  ;;  %v9632_v15 = vld [vmem:[%s13246_s3 + $0x628] sm:$0xff]  }
  0xcb   : > { %9121 = vmatprep.subr.bf16.mxu0 %v9605_v46  ;;  %v9634_v46 = vld [vmem:[%s13246_s3 + $0x660] sm:$0xff]  }
  0xcc   : > { %9160 = vmatpush3.bf16.msra.mxu1 %v9604_v12  ;;  %v9633_v12 = vld [vmem:[%s13246_s3 + $0x6e0] sm:$0xff]  }
  0xcd   : > { %2642 = vmatmul.mubr.bf16.gmra.mxu0 %v10421_v26  ;;  %9161 = vmatprep.subr.bf16.mxu1 %v9606_v23  ;;  %v9635_v23 = vld [vmem:[%s13246_s3 + $0x6a0] sm:$0xff]  }
  0xce   : > { %9122 = vmatpush3.bf16.msra.mxu0 %v9607_v6  ;;  %2649 = vmatprep.mubr.bf16.mxu0 %v10509_v51  ;;  %v9636_v6 = vld [vmem:[%s13246_s3 + $0x620] sm:$0xff]  }
  0xcf   : > { %2803 = vmatmul.mubr.bf16.gmra.mxu1 %v10452_v48  ;;  %9123 = vmatprep.subr.bf16.mxu0 %v9609_v11  ;;  %v9616_v48 = vld [vmem:[%s13246_s3 + $0x588] sm:$0xff]   ;;  %v9640_v11 = vld [vmem:[%s13246_s3 + $0x618] sm:$0xff]  }
  0xd0   : > { %9162 = vmatpush3.bf16.msra.mxu1 %v9608_v5  ;;  %2810 = vmatprep.mubr.bf16.mxu1 %v10468_v27  ;;  %v9618_v27 = vld [vmem:[%s13246_s3 + $0x5c0] sm:$0xff]   ;;  %v9638_v5 = vld [vmem:[%s13246_s3 + $0x658] sm:$0xff]  }
  0xd1   : > { %9163 = vmatprep.subr.bf16.mxu1 %v9610_v39  ;;  %v9641_v39 = vld [vmem:[%s13246_s3 + $0x6d0] sm:$0xff]  }
  0xd2   : > { %9124 = vmatpush3.bf16.msra.mxu0 %v9611_v8  ;;  %v10952_v8 = vld [vmem:[%s456_s8] sm:$0xff] }
  0xd3   : > { %9125 = vmatprep.subr.bf16.mxu0 %v9613_v50 }
  0xd4   : > { %9164 = vmatpush3.bf16.msra.mxu1 %v9612_v13  ;;  %v10954_v13 = vld [vmem:[%s456_s8 + $0x8] sm:$0x11]  ;;  %s11556_s8 = sshll.u32 %s406_s30, 8 }
  0xd5   : > { %2650 = vmatmul.mubr.bf16.gmra.mxu0 %v10513_v9  ;;  %9165 = vmatprep.subr.bf16.mxu1 %v9614_v36  ;;  %v9642_v36 = vld [vmem:[%s13246_s3 + $0x650] sm:$0xff]   ;;  %s11588_s13 = scalar_lea.vmem [#allocation2], %s11556_s8 }
  0xd6   : > { %9126 = vmatpush3.bf16.msra.mxu0 %v9615_v61  ;;  %2986 = vmatprep.mubr.bf16.mxu0 %v10056_v19  ;;  %v9624_v19 = vld [vmem:[%s13246_s3 + $0x638] sm:$0xff]   ;;  %v9685_v61 = vld [vmem:[%s10445_s20] sm:$0xff]  ;;  %s7722_s28 = sshll.u32 %s11588_s13, 4  ;;  %s13192_s28 = int_to_ptr.vmem [resolvable:$true] %s7722_s28 }
  0xd7   : > { %2811 = vmatmul.mubr.bf16.gmra.mxu1 %v10492_v38  ;;  %9127 = vmatprep.subr.bf16.mxu0 %v9617_v41  ;;  %v9625_v38 = vld [vmem:[%s13246_s3 + $0x6f0] sm:$0xff]   ;;  %v679_v41 = vshrl.u32 %v10952_v8, 16  ;;  %s9686_s14 = scalar_lea.vmem %s13192_s28, 4096  ;;  %p9693_p1 = scmp.lt.s32.totalorder %s13192_s28, %s9691_s19 }
  0xd8   : > { %9166 = vmatpush3.bf16.msra.mxu1 %v9616_v48  ;;  %3194 = vmatprep.mubr.bf16.mxu1 %v10112_v47  ;;  %v8440_v48 = vcombine.high %v9685_v61, %v10952_v8  ;;  %p9687_p12 = scmp.ne.s32.totalorder %s13192_s28, %s9686_s14  ;;  %p9694_p2 = scmp.lt.s32.totalorder %s9692_s11, %s9686_s14 }
  0xd9   : > { %9167 = vmatprep.subr.bf16.mxu1 %v9618_v27  ;;  %v682_v27 = vshll.u32 %v10952_v8, 16 }
  0xda   : > { %9128 = vmatpush3.bf16.msra.mxu0 %v9619_v54  ;;  %v688_v54 = vshll.u32 %v10954_v13, 16  ;;  %p9688_p13 = pnand %p9687_p12, %p9844_p4  ;;  %p9695_p3 = por %p9694_p2, %p9693_p1 }
  0xdb   : > { %9193 = vmatprep.subr.bf16.mxu0 %v9621_v10  ;;  %v9643_v10 = vld [vmem:[%s13246_s3 + $0x690] sm:$0xff]  }
  0xdc   : > { %9168 = vmatpush3.bf16.msra.mxu1 %v9620_v43  ;;  %p9689_p0 = pneg %p9688_p13 }
  0xdd   : > { %2987 = vmatmul.mubr.bf16.vlgmr.msra.gmra.mxu0 %v10065_v22  ;;  %9233 = vmatprep.subr.bf16.mxu1 %v9622_v14  ;;  %v9629_v22 = vld [vmem:[%s13246_s3 + $0x6e8] sm:$0xff]   ;;  %v681_v14 = vrot.slane %v679_v41, 4 }
  0xde   : > { %9194 = vmatpush3.bf16.msra.mxu0 %v9623_v44  ;;  %2994 = vmatprep.mubr.bf16.mxu0 %v10139_v58  ;;  %v9631_v58 = vld [vmem:[%s13246_s3 + $0x6a8] sm:$0xff]   ;;  %v684_v44 = vrot.slane %v682_v27, 5  ;;  %v9655_v27 = vld [vmem:[%s13246_s3 + $0x738] sm:$0xff]   ;;  %p9696_p5 = pnand %p9695_p3, %p9689_p0 }
  0xdf   : > { %3195 = vmatmul.mubr.bf16.vlgmr.msra.gmra.mxu1 %v10116_v35  ;;  %9195 = vmatprep.subr.bf16.mxu0 %v9625_v38  ;;  %v9645_v38 = vld [vmem:[%s13246_s3 + $0x6c8] sm:$0xff]  }
  0xe0   : > { %9234 = vmatpush3.bf16.msra.mxu1 %v9624_v19  ;;  %3202 = vmatprep.mubr.bf16.mxu1 %v10199_v30 }
  0xe1   : > { %9235 = vmatprep.subr.bf16.mxu1 %v9626_v29 }
  0xe2   : > { %9196 = vmatpush3.bf16.msra.mxu0 %v9627_v45  ;;  %v685_v45 = vor.u32 %v684_v44, %v681_v14  ;;  %v9656_v44 = vld [vmem:[%s13246_s3 + $0x7b8] sm:$0xff]  }
  0xe3   : > { %9197 = vmatprep.subr.bf16.mxu0 %v9629_v22  ;;  %v8439_v22 = vcombine.low %v9685_v61, %v10952_v8 }
  0xe4   : > { %9236 = vmatpush3.bf16.msra.mxu1 %v9628_v28  ;;  %v690_v28 = vrot.slane %v688_v54, 5 }
  0xe5   : > { %2995 = vmatmul.mubr.bf16.gmra.mxu0 %v10143_v60  ;;  %9237 = vmatprep.subr.bf16.mxu1 %v9630_v57  ;;  %v9637_v60 = vld [vmem:[%s13246_s3 + $0x6d8] sm:$0xff]   ;;  %v9646_v57 = vld [vmem:[%s13246_s3 + $0x648] sm:$0xff]  }
  0xe6   : > { %9198 = vmatpush3.bf16.msra.mxu0 %v9631_v58  ;;  %3002 = vmatprep.mubr.bf16.mxu0 %v10235_v55  ;;  %v9639_v55 = vld [vmem:[%s13246_s3 + $0x698] sm:$0xff]  }
  0xe7   : > { %3203 = vmatmul.mubr.bf16.gmra.mxu1 %v10203_v31  ;;  %9199 = vmatprep.subr.bf16.mxu0 %v9633_v12  ;;  %v9647_v12 = vld [vmem:[%s13246_s3 + $0x688] sm:$0xff]  }
  0xe8   : > { %9238 = vmatpush3.bf16.msra.mxu1 %v9632_v15  ;;  %3210 = vmatprep.mubr.bf16.mxu1 %v10298_v49  ;;  %v686_v15 = vrot.slane %v685_v45, 4  ;;  %v9659_v45 = vld [vmem:[%s13246_s3 + $0x730] sm:$0xff]  }
  0xe9   : > { %9239 = vmatprep.subr.bf16.mxu1 %v9634_v46 }
  0xea   : > { %9200 = vmatpush3.bf16.msra.mxu0 %v9635_v23  ;;  %v9649_v23 = vld [vmem:[%s13246_s3 + $0x6c0] sm:$0xff]  }
  0xeb   : > { %9201 = vmatprep.subr.bf16.mxu0 %v9637_v60  ;;  %v9648_v60 = vld [vmem:[%s13246_s3 + $0x608] sm:$0xff]  }
  0xec   : > { %9240 = vmatpush3.bf16.msra.mxu1 %v9636_v6  ;;  %v691_v6 = vsel %vm10007_vm4, %v686_v15, %v690_v28  ;;  %v9662_v15 = vld [vmem:[%s13246_s3 + $0x7e8] sm:$0xff]  }
  0xed   : > { %3003 = vmatmul.mubr.bf16.gmra.mxu0 %v10243_v63  ;;  %9241 = vmatprep.subr.bf16.mxu1 %v9638_v5  ;;  %v9644_v63 = vld [vmem:[%s13246_s3 + $0x610] sm:$0xff]   ;;  %v10991_v5 = vcombine.high %v10502_v1, %v691_v6 }
  0xee   : > { %9202 = vmatpush3.bf16.msra.mxu0 %v9639_v55  ;;  %3010 = vmatprep.mubr.bf16.mxu0 %v8440_v48  ;;  %v10994_v55 = vcombine.low %v10502_v1, %v691_v6  ;;  %v9653_v1 = vld [vmem:[%s13246_s3 + $0x778] sm:$0xff]  }
  0xef   : > { %3211 = vmatmul.mubr.bf16.gmra.mxu1 %v10302_v7  ;;  %9203 = vmatprep.subr.bf16.mxu0 %v9641_v39 }
  0xf0   : > { %9242 = vmatpush3.bf16.msra.mxu1 %v9640_v11  ;;  %v9650_v11 = vld [vmem:[%s13246_s3 + $0x640] sm:$0xff]   ;;  %3218 = vmatprep.mubr.bf16.mxu1 %v10991_v5 }
  0xf1   : > { %9243 = vmatprep.subr.bf16.mxu1 %v9642_v36  ;;  %v9652_v36 = vld [vmem:[%s13246_s3 + $0x600] sm:$0xff]  }
  0xf2   : > { %9204 = vmatpush3.bf16.msra.mxu0 %v9643_v10 }
  0xf3   : > { %9205 = vmatprep.subr.bf16.mxu0 %v9645_v38 }
  0xf4   : > { %9244 = vmatpush3.bf16.msra.mxu1 %v9644_v63 }
  0xf5   : > { %3011 = vmatmul.mubr.bf16.gmra.mxu0 %v8439_v22  ;;  %9245 = vmatprep.subr.bf16.mxu1 %v9646_v57  ;;  %v9660_v57 = vld [vmem:[%s13246_s3 + $0x7b0] sm:$0xff]  }
  0xf6   : > { %9206 = vmatpush3.bf16.msra.mxu0 %v9647_v12  ;;  %3429 = vmatprep.mubr.bf16.mxu0 %v10174_v18  ;;  %v8729_v39 = vpop.f32.mrf.mxu0  ;;  %v9654_v18 = vld [vmem:[%s13246_s3 + $0x7f8] sm:$0xff]  }
  0xf7   : > { %v8769_v50 = vpop.f32.mrf.mxu1  ;;  %9207 = vmatprep.subr.bf16.mxu0 %v9649_v23  ;;  %3219 = vmatmul.mubr.bf16.gmra.mxu1 %v10994_v55  ;;  %v9665_v23 = vld [vmem:[%s13246_s3 + $0x760] sm:$0xff]  }
  0xf8   : > { %v8730_v61 = vpop.f32.mrf.mxu0  ;;  %9246 = vmatpush3.bf16.msra.mxu1 %v9648_v60  ;;  %3590 = vmatprep.mubr.bf16.mxu1 %v10227_v52  ;;  %v9657_v52 = vld [vmem:[%s13246_s3 + $0x770] sm:$0xff]  }
  0xf9   : > { %v8770_v43 = vpop.f32.mrf.mxu1  ;;  %v8731_v48 = vadd.f32 %v8730_v61, %v8729_v39  ;;  %9247 = vmatprep.subr.bf16.mxu1 %v9650_v11 }
  0xfa   : > { %v8771_v19 = vadd.f32 %v8770_v43, %v8769_v50  ;;  %9208 = vmatpush3.bf16.msra.mxu0 %v9651_v59  ;;  %v8732_v54 = vpop.f32.mrf.mxu0  ;;  %v9666_v59 = vld [vmem:[%s13246_s3 + $0x7e0] sm:$0xff]  }
  0xfb   : > { %v8772_v29 = vpop.f32.mrf.mxu1  ;;  %9273 = vmatprep.subr.bf16.mxu0 %v9653_v1  ;;  %v9667_v1 = vld [vmem:[%s13246_s3 + $0x720] sm:$0xff]  }
  0xfc   : > { %v11018_v10 = vadd.f32 %v8771_v19, %v8731_v48  ;;  %v8733_v38 = vpop.f32.mrf.mxu0  ;;  %9248 = vmatpush3.bf16.msra.mxu1 %v9652_v36 }
  0xfd   : > { %v8773_v58 = vpop.f32.mrf.mxu1  ;;  %3430 = vmatmul.mubr.bf16.vlgmr.msra.gmra.mxu0 %v10178_v20  ;;  %v8734_v63 = vadd.f32 %v8733_v38, %v8732_v54  ;;  %9313 = vmatprep.subr.bf16.mxu1 %v9654_v18  ;;  %v9661_v20 = vld [vmem:[%s13246_s3 + $0x768] sm:$0xff]   ;;  %v9668_v18 = vld [vmem:[%s13246_s3 + $0x7a0] sm:$0xff]   ;;  %v9674_v38 = vld [vmem:[%s13246_s3 + $0x7d0] sm:$0xff]  }
  0xfe   : > { %v8774_v46 = vadd.f32 %v8773_v58, %v8772_v29  ;;  %v9658_v29 = vld [vmem:[%s13246_s3 + $0x7f0] sm:$0xff]   ;;  %9274 = vmatpush3.bf16.msra.mxu0 %v9655_v27  ;;  %3437 = vmatprep.mubr.bf16.mxu0 %v10318_v3  ;;  %v8735_v58 = vpop.f32.mrf.mxu0  ;;  %v9663_v3 = vld [vmem:[%s13246_s3 + $0x728] sm:$0xff]  }
  0xff   : > { %v8775_v50 = vpop.f32.mrf.mxu1  ;;  %9275 = vmatprep.subr.bf16.mxu0 %v9657_v52  ;;  %3591 = vmatmul.mubr.bf16.vlgmr.msra.gmra.mxu1 %v10282_v37 }
 0x100   : > { %v11033_v22 = vadd.f32 %v8774_v46, %v8734_v63  ;;  %9314 = vmatpush3.bf16.msra.mxu1 %v9656_v44  ;;  %3598 = vmatprep.mubr.bf16.mxu1 %v10315_v0  ;;  %v8736_v12 = vpop.f32.mrf.mxu0  ;;  %v9664_v0 = vld [vmem:[%s13246_s3 + $0x7a8] sm:$0xff]   ;;  %v9675_v63 = vld [vmem:[%s13246_s3 + $0x710] sm:$0xff]  }
 0x101   : > { %v8776_v41 = vpop.f32.mrf.mxu1  ;;  %9315 = vmatprep.subr.bf16.mxu1 %v9658_v29  ;;  %v8737_v46 = vadd.f32 %v8736_v12, %v8735_v58 }
 0x102   : > { %v8777_v43 = vadd.f32 %v8776_v41, %v8775_v50  ;;  %9276 = vmatpush3.bf16.msra.mxu0 %v9659_v45  ;;  %v8738_v6 = vpop.f32.mrf.mxu0 }
 0x103   : > { %v8778_v14 = vpop.f32.mrf.mxu1  ;;  %9277 = vmatprep.subr.bf16.mxu0 %v9661_v20  ;;  %v9676_v20 = vld [vmem:[%s13246_s3 + $0x790] sm:$0xff]  }
 0x104   : > { %9316 = vmatpush3.bf16.msra.mxu1 %v9660_v57  ;;  %v11057_v11 = vadd.f32 %v8777_v43, %v8737_v46  ;;  %v8739_v50 = vpop.f32.mrf.mxu0  ;;  %v9673_v43 = vld [vmem:[%s13246_s3 + $0x750] sm:$0xff]  }
 0x105   : > { %v8779_v19 = vpop.f32.mrf.mxu1  ;;  %3438 = vmatmul.mubr.bf16.gmra.mxu0 %v10320_v4  ;;  %9317 = vmatprep.subr.bf16.mxu1 %v9662_v15  ;;  %v8740_v61 = vadd.f32 %v8739_v50, %v8738_v6  ;;  %v9669_v4 = vld [vmem:[%s13246_s3 + $0x758] sm:$0xff]   ;;  %v9683_v6 = vld [vmem:[%s13246_s3 + $0x700] sm:$0xff]  }
 0x106   : > { %v8780_v28 = vadd.f32 %v8779_v19, %v8778_v14  ;;  %9278 = vmatpush3.bf16.msra.mxu0 %v9663_v3  ;;  %3445 = vmatprep.mubr.bf16.mxu0 %v10344_v33  ;;  %v9670_v33 = vld [vmem:[%s13246_s3 + $0x7d8] sm:$0xff]   ;;  %v8741_v54 = vpop.f32.mrf.mxu0  ;;  %v9684_v50 = vld [vmem:[%s13246_s3 + $0x780] sm:$0xff]  }
 0x107   : > { %v8781_v37 = vpop.f32.mrf.mxu1  ;;  %9279 = vmatprep.subr.bf16.mxu0 %v9665_v23  ;;  %3599 = vmatmul.mubr.bf16.gmra.mxu1 %v10377_v34  ;;  %v9671_v34 = vld [vmem:[%s13246_s3 + $0x718] sm:$0xff]   ;;  %v9680_v23 = vld [vmem:[%s13246_s3 + $0x788] sm:$0xff]  }
 0x108   : > { %9318 = vmatpush3.bf16.msra.mxu1 %v9664_v0  ;;  %v11073_v41 = vadd.f32 %v8780_v28, %v8740_v61  ;;  %3606 = vmatprep.mubr.bf16.mxu1 %v10387_v62  ;;  %v9672_v62 = vld [vmem:[%s13246_s3 + $0x798] sm:$0xff]   ;;  %v8742_v52 = vpop.f32.mrf.mxu0  ;;  %v9682_v0 = vld [vmem:[%s13246_s3 + $0x7c0] sm:$0xff]  }
 0x109   : > { %v8782_v60 = vpop.f32.mrf.mxu1  ;;  %9319 = vmatprep.subr.bf16.mxu1 %v9666_v59  ;;  %v8743_v44 = vadd.f32 %v8742_v52, %v8741_v54 }
 0x10a   : > { %v8783_v39 = vadd.f32 %v8782_v60, %v8781_v37  ;;  %9280 = vmatpush3.bf16.msra.mxu0 %v9667_v1  ;;  %v8744_v29 = vpop.f32.mrf.mxu0  ;;  %v9681_v37 = vld [vmem:[%s13246_s3 + $0x740] sm:$0xff]  }
 0x10b   : > { %v8784_v36 = vpop.f32.mrf.mxu1  ;;  %9281 = vmatprep.subr.bf16.mxu0 %v9669_v4 }
 0x10c   : > { %9320 = vmatpush3.bf16.msra.mxu1 %v9668_v18  ;;  %v11095_v45 = vadd.f32 %v8783_v39, %v8743_v44  ;;  %v8745_v57 = vpop.f32.mrf.mxu0 }
 0x10d   : > { %v8785_v48 = vpop.f32.mrf.mxu1  ;;  %3446 = vmatmul.mubr.bf16.gmra.mxu0 %v10346_v40  ;;  %9321 = vmatprep.subr.bf16.mxu1 %v9670_v33  ;;  %v9677_v40 = vld [vmem:[%s13246_s3 + $0x748] sm:$0xff]   ;;  %v8746_v15 = vadd.f32 %v8745_v57, %v8744_v29 }
 0x10e   : > { %v8786_v27 = vadd.f32 %v8785_v48, %v8784_v36  ;;  %9282 = vmatpush3.bf16.msra.mxu0 %v9671_v34  ;;  %3453 = vmatprep.mubr.bf16.mxu0 %v10721_v16  ;;  %v9678_v16 = vld [vmem:[%s13246_s3 + $0x7c8] sm:$0xff]  }
 0x10f   : > { %v8787_v14 = vpop.f32.mrf.mxu1  ;;  %9283 = vmatprep.subr.bf16.mxu0 %v9673_v43  ;;  %3607 = vmatmul.mubr.bf16.gmra.mxu1 %v10421_v26  ;;  %v9679_v26 = vld [vmem:[%s13246_s3 + $0x708] sm:$0xff]  }
 0x110   : > { %9322 = vmatpush3.bf16.msra.mxu1 %v9672_v62  ;;  %3614 = vmatprep.mubr.bf16.mxu1 %v10509_v51  ;;  %v11112_v12 = vadd.f32 %v8786_v27, %v8746_v15 }
 0x111   : > { %v8788_v19 = vpop.f32.mrf.mxu1  ;;  %9323 = vmatprep.subr.bf16.mxu1 %v9674_v38 }
 0x112   : > { %v8789_v28 = vadd.f32 %v8788_v19, %v8787_v14  ;;  %9284 = vmatpush3.bf16.msra.mxu0 %v9675_v63 }
 0x113   : > { %v8790_v58 = vpop.f32.mrf.mxu1  ;;  %9285 = vmatprep.subr.bf16.mxu0 %v9677_v40  ;;  %v696_v40 = vrot.slane %v10954_v13, 5 }
 0x114   : > { %9324 = vmatpush3.bf16.msra.mxu1 %v9676_v20 }
 0x115   : > { %v8791_v3 = vpop.f32.mrf.mxu1  ;;  %v8747_v51 = vpop.f32.mrf.mxu0  ;;  %3454 = vmatmul.mubr.bf16.gmra.mxu0 %v10747_v32  ;;  %9325 = vmatprep.subr.bf16.mxu1 %v9678_v16 }
 0x116   : > { %v8792_v46 = vadd.f32 %v8791_v3, %v8790_v58  ;;  %9286 = vmatpush3.bf16.msra.mxu0 %v9679_v26  ;;  %3784 = vmatprep.mubr.bf16.mxu0 %v10112_v47 }
 0x117   : > { %v8849_v60 = vpop.f32.mrf.mxu1  ;;  %v8748_v59 = vpop.f32.mrf.mxu0  ;;  %9287 = vmatprep.subr.bf16.mxu0 %v9681_v37  ;;  %3615 = vmatmul.mubr.bf16.gmra.mxu1 %v10513_v9 }
 0x118   : > { %v8749_v32 = vadd.f32 %v8748_v59, %v8747_v51  ;;  %9326 = vmatpush3.bf16.msra.mxu1 %v9680_v23  ;;  %3992 = vmatprep.mubr.bf16.mxu1 %v10260_v24 }
 0x119   : > { %v8850_v39 = vpop.f32.mrf.mxu1  ;;  %v8750_v1 = vpop.f32.mrf.mxu0  ;;  %9327 = vmatprep.subr.bf16.mxu1 %v9682_v0 }
 0x11a   : > { %v8851_v36 = vadd.f32 %v8850_v39, %v8849_v60  ;;  %v11133_v61 = vadd.f32 %v8789_v28, %v8749_v32  ;;  %9288 = vmatpush3.bf16.msra.mxu0 %v9683_v6  ;;  %v9764_v60 = vmov 1966171168   ;;  %v4045_v32 = vlaneseq }
 0x11b   : > { %v8852_v4 = vpop.f32.mrf.mxu1  ;;  %v8751_v18 = vpop.f32.mrf.mxu0  ;;  %v4043_v59 = vunpack.c.l.s4 %v9764_v60 }
 0x11c   : > { %v8752_v47 = vadd.f32 %v8751_v18, %v8750_v1  ;;  %9328 = vmatpush3.bf16.msra.mxu1 %v9684_v50 }
 0x11d   : > { %v8853_v48 = vpop.f32.mrf.mxu1  ;;  %v8809_v9 = vpop.f32.mrf.mxu0  ;;  %3785 = vmatmul.mubr.bf16.vlgmr.msra.gmra.mxu0 %v10116_v35 }
 0x11e   : > { %v8854_v33 = vadd.f32 %v8853_v48, %v8852_v4  ;;  %v11136_v27 = vadd.f32 %v8792_v46, %v8752_v47  ;;  %3792 = vmatprep.mubr.bf16.mxu0 %v10199_v30  ;;  %v4046_v4 = vshrl.u32 %v4045_v32, 7 }
 0x11f   : > { %v8810_v54 = vpop.f32.mrf.mxu0  ;;  %v8855_v24 = vpop.f32.mrf.mxu1  ;;  %3993 = vmatmul.mubr.bf16.vlgmr.msra.gmra.mxu1 %v10263_v25 }
 0x120   : > { %v8811_v34 = vadd.f32 %v8810_v54, %v8809_v9  ;;  %4000 = vmatprep.mubr.bf16.mxu1 %v10330_v17  ;;  %v7910_v17 = vrot.slane %v10952_v8, 9 }
 0x121   : > { %v8812_v43 = vpop.f32.mrf.mxu0  ;;  %v8856_v62 = vpop.f32.mrf.mxu1 }
 0x122   : > { %v1361_v52 = vadd.f32 %v8811_v34, %v11018_v10  ;;  %v8857_v14 = vadd.f32 %v8856_v62, %v8855_v24 }
 0x123   : > { %v8813_v44 = vpop.f32.mrf.mxu0  ;;  %v8858_v38 = vpop.f32.mrf.mxu1 }
 0x124   : > { %v11142_v35 = vadd.f32 %v8851_v36, %v1361_v52  ;;  %v8814_v29 = vadd.f32 %v8813_v44, %v8812_v43  ;;  %v4044_v36 = vunpack.c.0.s8 %v4043_v59  ;;  %v11246_v59 = vsub.s32 0, %v4046_v4 }
 0x125   : > { %v8815_v63 = vpop.f32.mrf.mxu0  ;;  %3793 = vmatmul.mubr.bf16.gmra.mxu0 %v10203_v31  ;;  %v8859_v30 = vpop.f32.mrf.mxu1 }
 0x126   : > { %v1362_v19 = vadd.f32 %v8814_v29, %v11033_v22  ;;  %v8860_v25 = vadd.f32 %v8859_v30, %v8858_v38  ;;  %3800 = vmatprep.mubr.bf16.mxu0 %v10298_v49  ;;  %v697_v22 = vsel %vm10016_vm5, %v7910_v17, %v696_v40  ;;  %v11174_v34 = vsub.s32 %v4044_v36, %v4046_v4 }
 0x127   : > { %v8816_v10 = vpop.f32.mrf.mxu0  ;;  %v8861_v28 = vpop.f32.mrf.mxu1  ;;  %4001 = vmatmul.mubr.bf16.gmra.mxu1 %v10332_v21  ;;  %v8684_v37 = vcombine.high %v10708_v42, %v697_v22  ;;  %v4041_v38 = vcombine.high %v11142_v35, %v11142_v35 }
 0x128   : > { %v11149_v20 = vadd.f32 %v8854_v33, %v1362_v19  ;;  %v8817_v57 = vadd.f32 %v8816_v10, %v8815_v63  ;;  %4008 = vmatprep.mubr.bf16.mxu1 %v10363_v53  ;;  %v4048_v19 = vrot.slane %v11142_v35, %v11174_v34  ;;  %v8702_v10 = vld [vmem:[%s13248_s5] ss:$0 sm:$0xff] }
 0x129   : > { %v8818_v58 = vpop.f32.mrf.mxu0  ;;  %v8862_v31 = vpop.f32.mrf.mxu1 }
 0x12a   : > { %v1363_v49 = vadd.f32 %v8817_v57, %v11057_v11  ;;  %v8863_v8 = vadd.f32 %v8862_v31, %v8861_v28 }
 0x12b   : > { %v8819_v15 = vpop.f32.mrf.mxu0  ;;  %v8864_v16 = vpop.f32.mrf.mxu1 }
 0x12c   : > { %v8820_v13 = vadd.f32 %v8819_v15, %v8818_v58  ;;  %v11156_v26 = vadd.f32 %v8857_v14, %v1363_v49  ;;  %v4055_v58 = vrot.slane %v4041_v38, %v11174_v34  ;;  %v4056_v49 = vcombine.high %v4048_v19, %v4048_v19 }
 0x12d   : > { %v8821_v3 = vpop.f32.mrf.mxu0  ;;  %3801 = vmatmul.mubr.bf16.gmra.mxu0 %v10302_v7  ;;  %v8865_v21 = vpop.f32.mrf.mxu1  ;;  %v8683_v7 = vcombine.low %v10708_v42, %v697_v22  ;;  %v9765_v42 = vmov 1983009808   ;;  %v6691_v22 = vcombine.high %v8702_v10, %v8702_v10 }
 0x12e   : > { %v1364_v53 = vadd.f32 %v8820_v13, %v11073_v41  ;;  %v8866_v46 = vadd.f32 %v8865_v21, %v8864_v16  ;;  %3808 = vmatprep.mubr.bf16.mxu0 %v10991_v5  ;;  %v6538_v48 = vunpack.c.l.s4 %v9765_v42  ;;  %v4097_v13 = vrot.slane %v11149_v20, %v11174_v34 }
 0x12f   : > { %v8822_v2 = vpop.f32.mrf.mxu0  ;;  %4009 = vmatmul.mubr.bf16.gmra.mxu1 %v10366_v56  ;;  %v4057_v21 = vcombine.high %v4055_v58, %v4055_v58 }
 0x130   : > { %v11162_v51 = vadd.f32 %v8860_v25, %v1364_v53  ;;  %v8823_v11 = vadd.f32 %v8822_v2, %v8821_v3  ;;  %4016 = vmatprep.mubr.bf16.mxu1 %v8684_v37  ;;  %v6539_v14 = vunpack.c.0.s8 %v6538_v48  ;;  %v4139_v53 = vcombine.high %v11156_v26, %v11156_v26 }
 0x131   : > { %v8824_v23 = vpop.f32.mrf.mxu0 }
 0x132   : > { %v1365_v0 = vadd.f32 %v8823_v11, %v11095_v45  ;;  %v11196_v40 = vsub.s32 %v6539_v14, %v4046_v4  ;;  %v11230_v11 = vrot.slane %v4048_v19, %v11174_v34  ;;  %v11264_v4 = vrot.slane %v4097_v13, %v11174_v34 }
 0x133   : > { %v8825_v6 = vpop.f32.mrf.mxu0 }
 0x134   : > { %v11167_v41 = vadd.f32 %v8863_v8, %v1365_v0  ;;  %v8826_v5 = vadd.f32 %v8825_v6, %v8824_v23  ;;  %13343 = vst [vmem:[#allocation5_spill] sm:$0xff] %v11196_v40  ;;  %v11233_v23 = vrot.slane %v8702_v10, %v11196_v40  ;;  %v11239_v0 = vrot.slane %v4055_v58, %v11174_v34 }
 0x135   : > { %v8827_v39 = vpop.f32.mrf.mxu0  ;;  %3809 = vmatmul.mubr.bf16.gmra.mxu0 %v10994_v55  ;;  %v8867_v1 = vpop.f32.mrf.mxu1  ;;  %v11242_v6 = vrot.slane %v4056_v49, %v11174_v34 }
 0x136   : > { %v1366_v56 = vadd.f32 %v8826_v5, %v11112_v12  ;;  %13345 = vst [vmem:[#allocation7_spill] sm:$0xff] %v11233_v23  ;;  %v4146_v5 = vrot.slane %v11156_v26, %v11174_v34  ;;  %v11271_v48 = vcombine.high %v11233_v23, %v11233_v23  ;;  %v4237_v49 = vcombine.high %v11167_v41, %v11167_v41 }
 0x137   : > { %v8828_v50 = vpop.f32.mrf.mxu0  ;;  %4017 = vmatmul.mubr.bf16.gmra.mxu1 %v8683_v7  ;;  %v8868_v18 = vpop.f32.mrf.mxu1 }
 0x138   : > { %v8829_v45 = vadd.f32 %v8828_v50, %v8827_v39  ;;  %v11171_v9 = vadd.f32 %v8866_v46, %v1366_v56  ;;  %v8869_v54 = vadd.f32 %v8868_v18, %v8867_v1  ;;  %v4105_v39 = vcombine.high %v4097_v13, %v4097_v13  ;;  %13348 = vst [vmem:[#allocation10_spill] sm:$0xff] %v11271_v48 }
 0x139   : > { %v8830_v47 = vpop.f32.mrf.mxu0  ;;  %v8870_v24 = vpop.f32.mrf.mxu1  ;;  %v4188_v1 = vcombine.high %v11162_v51, %v11162_v51  ;;  %v11261_v56 = vrot.slane %v4057_v21, %v11174_v34  ;;  %v4154_v38 = vcombine.high %v4146_v5, %v4146_v5 }
 0x13a   : > { %v1367_v33 = vadd.f32 %v8829_v45, %v11133_v61  ;;  %v8701_v61 = vld [vmem:[%s13247_s4] ss:$0 sm:$0xff]  ;;  %v4153_v45 = vrot.slane %v4139_v53, %v11174_v34 }
 0x13b   : > { %v8831_v55 = vpop.f32.mrf.mxu0  ;;  %v8871_v62 = vpop.f32.mrf.mxu1  ;;  %v6536_v57 = vcombine.high %v8701_v61, %v8701_v61  ;;  %v11215_v16 = vrot.slane %v8701_v61, %v11196_v40  ;;  %v4202_v61 = vrot.slane %v4188_v1, %v11174_v34 }
 0x13c   : > { %v11176_v43 = vadd.f32 %v8869_v54, %v1367_v33  ;;  %v8832_v12 = vadd.f32 %v8831_v55, %v8830_v47  ;;  %v8872_v44 = vadd.f32 %v8871_v62, %v8870_v24  ;;  %v4155_v58 = vcombine.high %v4153_v45, %v4153_v45 }
 0x13d   : > { %v11178_v52 = vpop.f32.mrf.mxu0  ;;  %v11182_v29 = vpop.f32.mrf.mxu1  ;;  %v11220_v3 = vrot.slane %v6536_v57, %v11196_v40  ;;  %v11250_v32 = vcombine.high %v11215_v16, %v11215_v16  ;;  %v11307_v53 = vrot.slane %v4153_v45, %v11174_v34 }
 0x13e   : > { %v1368_v30 = vadd.f32 %v8832_v12, %v11136_v27  ;;  %v4090_v27 = vcombine.high %v11149_v20, %v11149_v20  ;;  %v11236_v20 = vrot.slane %v6691_v22, %v11196_v40  ;;  %v4195_v12 = vrot.slane %v11162_v51, %v11174_v34 }
 0x13f   : > { %v11184_v63 = vpop.f32.mrf.mxu0  ;;  %v11192_v25 = vpop.f32.mrf.mxu1  ;;  %13344 = vst [vmem:[#allocation6_spill] sm:$0xff] %v11220_v3  ;;  %v11258_v50 = vcombine.high %v11220_v3, %v11220_v3  ;;  %v11298_v22 = vrot.slane %v4146_v5, %v11174_v34  ;;  %v11319_v45 = vrot.slane %v4155_v58, %v11174_v34 }
 0x140   : > { %v11201_v28 = vadd.f32 %v8872_v44, %v1368_v30  ;;  %v4104_v37 = vrot.slane %v4090_v27, %v11174_v34  ;;  %13346 = vst [vmem:[#allocation8_spill] sm:$0xff] %v11236_v20  ;;  %v11275_v33 = vcombine.high %v11236_v20, %v11236_v20  ;;  %v11287_v44 = vrot.slane %v4105_v39, %v11174_v34 }
 0x141   : > { %v11194_v17 = vpop.f32.mrf.mxu0  ;;  %v11206_v31 = vpop.f32.mrf.mxu1  ;;  %13347 = vst [vmem:[#allocation9_spill] sm:$0xff] %v11258_v50  ;;  %v4244_v39 = vrot.slane %v11167_v41, %v11174_v34  ;;  %v4286_v41 = vcombine.high %v11171_v9, %v11171_v9 }
 0x142   : > { %v4106_v36 = vcombine.high %v4104_v37, %v4104_v37  ;;  %13349 = vst [vmem:[#allocation11_spill] sm:$0xff] %v11275_v33  ;;  %v11282_v55 = vrot.slane %v4104_v37, %v11174_v34  ;;  %v4251_v37 = vrot.slane %v4237_v49, %v11174_v34 }
 0x143   : > { %v11208_v35 = vpop.f32.mrf.mxu0  ;;  %v11210_v15 = vpop.f32.mrf.mxu1  ;;  %v4252_v5 = vcombine.high %v4244_v39, %v4244_v39 }
 0x144   : > { %v11293_v10 = vrot.slane %v4106_v36, %v11174_v34  ;;  %v4253_v54 = vcombine.high %v4251_v37, %v4251_v37 }
 0x145   : > { %v11212_v8 = vpop.f32.mrf.mxu0  ;;  %v11225_v46 = vpop.f32.mrf.mxu1 }
 0x147   : > { %v11227_v2 = vpop.f32.mrf.mxu0  ;;  %v11244_v7 = vpop.f32.mrf.mxu1 }
 0x149   : > { %v8898_v60 = vpop.f32.mrf.mxu0  ;;  %v8938_v18 = vpop.f32.mrf.mxu1 }
 0x14b   : > { %v8899_v47 = vpop.f32.mrf.mxu0  ;;  %v8939_v62 = vpop.f32.mrf.mxu1 }
 0x14c   : > { %v8900_v42 = vadd.f32 %v8899_v47, %v8898_v60  ;;  %v8940_v30 = vadd.f32 %v8939_v62, %v8938_v18  ;;  %v4203_v60 = vcombine.high %v4195_v12, %v4195_v12  ;;  %v11314_v18 = vrot.slane %v4154_v38, %v11174_v34 }
 0x14d   : > { %v8901_v14 = vpop.f32.mrf.mxu0  ;;  %v8941_v51 = vpop.f32.mrf.mxu1  ;;  %v4204_v47 = vcombine.high %v4202_v61, %v4202_v61  ;;  %v11334_v62 = vrot.slane %v4202_v61, %v11174_v34 }
 0x14e   : > { %v11302_v13 = vadd.f32 %v8940_v30, %v8900_v42 }
 0x14f   : > { %v8902_v27 = vpop.f32.mrf.mxu0  ;;  %v8942_v1 = vpop.f32.mrf.mxu1  ;;  %13350 = vst [vmem:[#allocation12_spill] sm:$0xff] %v11334_v62  ;;  %v11342_v49 = vrot.slane %v4204_v47, %v11174_v34  ;;  %v11354_v47 = vrot.slane %v4244_v39, %v11174_v34  ;;  %v8894_v39 = vadd.f32 %v11208_v35, %v11194_v17 }
 0x150   : > { %v8903_v21 = vadd.f32 %v8902_v27, %v8901_v14  ;;  %v8943_v42 = vadd.f32 %v8942_v1, %v8941_v51  ;;  %v11322_v14 = vrot.slane %v4195_v12, %v11174_v34  ;;  %v11337_v12 = vrot.slane %v4203_v60, %v11174_v34 }
 0x151   : > { %v8904_v36 = vpop.f32.mrf.mxu0  ;;  %v8944_v30 = vpop.f32.mrf.mxu1  ;;  %13352 = vst [vmem:[#allocation14_spill] sm:$0xff] %v11342_v49  ;;  %v11366_v60 = vrot.slane %v4252_v5, %v11174_v34  ;;  %v8931_v5 = vadd.f32 %v11192_v25, %v11182_v29 }
 0x152   : > { %v11329_v51 = vadd.f32 %v8943_v42, %v8903_v21  ;;  %13351 = vst [vmem:[#allocation13_spill] sm:$0xff] %v11337_v12  ;;  %v4293_v21 = vrot.slane %v11171_v9, %v11174_v34  ;;  %v4300_v42 = vrot.slane %v4286_v41, %v11174_v34  ;;  %v11363_v41 = vrot.slane %v4251_v37, %v11174_v34 }
 0x153   : > { %v8905_v27 = vpop.f32.mrf.mxu0  ;;  %v8945_v57 = vpop.f32.mrf.mxu1  ;;  %v8891_v37 = vadd.f32 %v11184_v63, %v11178_v52  ;;  %v11378_v12 = vrot.slane %v4253_v54, %v11174_v34 }
 0x154   : > { %v8906_v1 = vadd.f32 %v8905_v27, %v8904_v36  ;;  %v8946_v36 = vadd.f32 %v8945_v57, %v8944_v30  ;;  %v4335_v27 = vcombine.high %v11176_v43, %v11176_v43  ;;  %v11389_v63 = vrot.slane %v4293_v21, %v11174_v34 }
 0x155   : > { %v8907_v19 = vpop.f32.mrf.mxu0  ;;  %v8947_v58 = vpop.f32.mrf.mxu1  ;;  %v11392_v29 = vrot.slane %v4300_v42, %v11174_v34 }
 0x156   : > { %v11356_v24 = vadd.f32 %v8946_v36, %v8906_v1  ;;  %v4301_v1 = vcombine.high %v4293_v21, %v4293_v21  ;;  %v4302_v36 = vcombine.high %v4300_v42, %v4300_v42  ;;  %v4349_v57 = vrot.slane %v4335_v27, %v11174_v34  ;;  %13354 = vst [vmem:[#allocation16_spill] sm:$0xff] %v11389_v63 }
 0x157   : > { %v8908_v38 = vpop.f32.mrf.mxu0  ;;  %v8948_v61 = vpop.f32.mrf.mxu1  ;;  %13355 = vst [vmem:[#allocation17_spill] sm:$0xff] %v11392_v29  ;;  %v4384_v21 = vcombine.high %v11201_v28, %v11201_v28 }
 0x158   : > { %v8909_v9 = vadd.f32 %v8908_v38, %v8907_v19  ;;  %v4342_v19 = vrot.slane %v11176_v43, %v11174_v34  ;;  %v8949_v38 = vadd.f32 %v8948_v61, %v8947_v58  ;;  %v11395_v61 = vrot.slane %v4301_v1, %v11174_v34 }
 0x159   : > { %v8910_v26 = vpop.f32.mrf.mxu0  ;;  %v8950_v30 = vpop.f32.mrf.mxu1  ;;  %v1979_v58 = vadd.f32 %v8931_v5, %v8891_v37  ;;  %v8934_v1 = vadd.f32 %v11210_v15, %v11206_v31  ;;  %v4391_v37 = vrot.slane %v11201_v28, %v11174_v34  ;;  %v8937_v28 = vadd.f32 %v11244_v7, %v11225_v46 }
 0x15a   : > { %v11382_v49 = vadd.f32 %v8949_v38, %v8909_v9  ;;  %13356 = vst [vmem:[#allocation18_spill] sm:$0xff] %v11395_v61  ;;  %v4350_v27 = vcombine.high %v4342_v19, %v4342_v19  ;;  %v11401_v9 = vrot.slane %v4302_v36, %v11174_v34  ;;  %v4351_v38 = vcombine.high %v4349_v57, %v4349_v57 }
 0x15b   : > { %v8911_v62 = vpop.f32.mrf.mxu0  ;;  %v8951_v25 = vpop.f32.mrf.mxu1 }
 0x15c   : > { %13353 = vst [vmem:[#allocation15_spill] sm:$0xff] %v11382_v49  ;;  %v8912_v43 = vadd.f32 %v8911_v62, %v8910_v26  ;;  %v11398_v26 = vrot.slane %v4342_v19, %v11174_v34  ;;  %v8952_v62 = vadd.f32 %v8951_v25, %v8950_v30  ;;  %13358 = vst [vmem:[#allocation20_spill] sm:$0xff] %v11401_v9 }
 0x15d   : > { %v8969_v54 = vpop.f32.mrf.mxu0  ;;  %v11416_v25 = vrot.slane %v4349_v57, %v11174_v34  ;;  %v11428_v57 = vrot.slane %v4351_v38, %v11174_v34  ;;  %v8897_v38 = vadd.f32 %v11227_v2, %v11212_v8  ;;  %v11451_v8 = vrot.slane %v4391_v37, %v11174_v34 }
 0x15e   : > { %13357 = vst [vmem:[#allocation19_spill] sm:$0xff] %v11398_v26  ;;  %v11409_v49 = vadd.f32 %v8952_v62, %v8912_v43 }
 0x15f   : > { %v9009_v42 = vpop.f32.mrf.mxu1  ;;  %v8970_v52 = vpop.f32.mrf.mxu0  ;;  %13360 = vst [vmem:[#allocation22_spill] sm:$0xff] %v11416_v25  ;;  %13362 = vst [vmem:[#allocation24_spill] sm:$0xff] %v11428_v57 }
 0x160   : > { %13359 = vst [vmem:[#allocation21_spill] sm:$0xff] %v11409_v49  ;;  %v8971_v19 = vadd.f32 %v8970_v52, %v8969_v54  ;;  %v11425_v52 = vrot.slane %v4350_v27, %v11174_v34  ;;  %v11433_v54 = vrot.slane %v4384_v21, %v11174_v34  ;;  %13364 = vst [vmem:[#allocation26_spill] sm:$0xff] %v11451_v8 }
 0x161   : > { %v9010_v5 = vpop.f32.mrf.mxu1  ;;  %v8972_v17 = vpop.f32.mrf.mxu0 }
 0x162   : > { %v2203_v15 = vadd.f32 %v8971_v19, %v1979_v58  ;;  %v9011_v43 = vadd.f32 %v9010_v5, %v9009_v42  ;;  %13361 = vst [vmem:[#allocation23_spill] sm:$0xff] %v11425_v52  ;;  %13363 = vst [vmem:[#allocation25_spill] sm:$0xff] %v11433_v54  ;;  %v1982_v58 = vadd.f32 %v8934_v1, %v8894_v39 }
 0x163   : > { %v9012_v62 = vpop.f32.mrf.mxu1  ;;  %v8973_v31 = vpop.f32.mrf.mxu0  ;;  %v4399_v5 = vcombine.high %v4391_v37, %v4391_v37 }
 0x164   : > { %v2423_v42 = vadd.f32 %v9011_v43, %v2203_v15  ;;  %v8974_v19 = vadd.f32 %v8973_v31, %v8972_v17 }
 0x165   : > { %v9013_v21 = vpop.f32.mrf.mxu1  ;;  %v8975_v36 = vpop.f32.mrf.mxu0 }
 0x166   : > { %v4505_v30 = vcombine.high %v2423_v42, %v2423_v42  ;;  %v4512_v26 = vrot.slane %v2423_v42, %v11174_v34  ;;  %v2204_v49 = vadd.f32 %v8974_v19, %v1982_v58  ;;  %v9014_v35 = vadd.f32 %v9013_v21, %v9012_v62 }
 0x167   : > { %v11453_v46 = vpop.f32.mrf.mxu1  ;;  %v8976_v2 = vpop.f32.mrf.mxu0  ;;  %v11459_v62 = vrot.slane %v11433_v54, %v11174_v34  ;;  %v11462_v58 = vrot.slane %v4399_v5, %v11174_v34  ;;  %v1987_v42 = vadd.f32 %v8937_v28, %v8897_v38 }
 0x168   : > { %v4519_v7 = vrot.slane %v4505_v30, %v11174_v34  ;;  %v4520_v31 = vcombine.high %v4512_v26, %v4512_v26  ;;  %v4528_v15 = vrot.slane %v4512_v26, %v11174_v34  ;;  %v2424_v43 = vadd.f32 %v9014_v35, %v2204_v49 }
 0x169   : > { %13365 = vst [vmem:[#allocation27_spill] sm:$0xff] %v11459_v62  ;;  %13366 = vst [vmem:[#allocation28_spill] sm:$0xff] %v11462_v58  ;;  %v8977_v19 = vadd.f32 %v8976_v2, %v8975_v36  ;;  %v11464_v37 = vpop.f32.mrf.mxu1  ;;  %v11466_v21 = vpop.f32.mrf.mxu0 }
 0x16a   : > { %v4521_v1 = vcombine.high %v4519_v7, %v4519_v7  ;;  %v4535_v30 = vrot.slane %v4519_v7, %v11174_v34  ;;  %v4542_v27 = vrot.slane %v4520_v31, %v11174_v34  ;;  %v4550_v26 = vcombine.high %v4528_v15, %v4528_v15 }
 0x16b   : > { %v4900_v49 = vrot.slane %v4528_v15, %v11246_v59  ;;  %v4554_v35 = vcombine.high %v2424_v43, %v2424_v43  ;;  %v11472_v39 = vrot.slane %v2424_v43, %v11174_v34  ;;  %v11474_v5 = vadd.f32 %v8977_v19, %v1987_v42  ;;  %v11476_v28 = vpop.f32.mrf.mxu1  ;;  %v11478_v36 = vpop.f32.mrf.mxu0 }
 0x16c   : > { %v4549_v38 = vrot.slane %v4521_v1, %v11174_v34  ;;  %v4551_v2 = vcombine.high %v4535_v30, %v4535_v30  ;;  %v4552_v17 = vcombine.high %v4542_v27, %v4542_v27  ;;  %v4904_v7 = vrot.slane %v4542_v27, %v11246_v59 }
 0x16d   : > { %v4908_v31 = vrot.slane %v4550_v26, %v11246_v59  ;;  %v4916_v15 = vrot.slane %v4535_v30, %v11246_v59  ;;  %v5218_v43 = vsel %vm5217_vm6, %v11230_v11, %v4900_v49  ;;  %v11487_v42 = vrot.slane %v4554_v35, %v11174_v34  ;;  %v11489_v19 = vpop.f32.mrf.mxu1  ;;  %v11491_v57 = vpop.f32.mrf.mxu0 }
 0x16e   : > { %v4553_v25 = vcombine.high %v4549_v38, %v4549_v38  ;;  %v4912_v1 = vrot.slane %v4552_v17, %v11246_v59  ;;  %v4920_v52 = vrot.slane %v4549_v38, %v11246_v59  ;;  %v4924_v27 = vrot.slane %v4551_v2, %v11246_v59 }
 0x16f   : > { %v5219_v30 = vsel %vm5217_vm6, %v11242_v6, %v4904_v7  ;;  %v13367_v26 = vcombine.high %v11230_v11, %v11230_v11  ;;  %v5222_v35 = vsel %vm5217_vm6, %v11239_v0, %v4916_v15  ;;  %v6557_v58 = vmul.f32 %v11215_v16, %v5218_v43  ;;  %v11505_v62 = vpop.f32.mrf.mxu1  ;;  %v11507_v17 = vpop.f32.mrf.mxu0 }
 0x170   : > { %v4928_v38 = vrot.slane %v4553_v25, %v11246_v59  ;;  %v13368_v2 = vcombine.high %v11242_v6, %v11242_v6  ;;  %v5223_v11 = vsel %vm5217_vm6, %v11261_v56, %v4920_v52  ;;  %v6558_v43 = vmul.f32 %v11250_v32, %v5219_v30 }
 0x171   : > { %v5220_v49 = vsel %vm5217_vm6, %v13367_v26, %v4908_v31  ;;  %v13369_v31 = vcombine.high %v11239_v0, %v11239_v0  ;;  %v6561_v54 = vmul.f32 %v11215_v16, %v5222_v35  ;;  %v11524_v6 = vpop.f32.mrf.mxu1  ;;  %v13370_v52 = vcombine.high %v11261_v56, %v11261_v56 }
 0x172   : > { %v5221_v7 = vsel %vm5217_vm6, %v13368_v2, %v4912_v1  ;;  %v6559_v26 = vmul.f32 %v11220_v3, %v5220_v49  ;;  %v11526_v1 = vpop.f32.mrf.mxu0  ;;  %v6712_v2 = vadd.f32 %v11233_v23, %v6557_v58 }
 0x173   : > { %v5224_v15 = vsel %vm5217_vm6, %v13369_v31, %v4924_v27  ;;  %v6560_v25 = vmul.f32 %v11258_v50, %v5221_v7  ;;  %v5225_v0 = vsel %vm5217_vm6, %v13370_v52, %v4928_v38  ;;  %v6562_v27 = vmul.f32 %v11250_v32, %v5223_v11  ;;  %v11539_v9 = vpop.f32.mrf.mxu1 }
 0x174   : > { %v6563_v30 = vmul.f32 %v11220_v3, %v5224_v15  ;;  %v6564_v49 = vmul.f32 %v11258_v50, %v5225_v0  ;;  %v6713_v7 = vadd.f32 %v11271_v48, %v6558_v43  ;;  %v6714_v35 = vadd.f32 %v11236_v20, %v6559_v26  ;;  %v11541_v61 = vpop.f32.mrf.mxu0 }
 0x175   : > { %v6715_v31 = vadd.f32 %v11275_v33, %v6560_v25  ;;  %v6716_v56 = vadd.f32 %v11233_v23, %v6561_v54  ;;  %v6717_v38 = vadd.f32 %v11271_v48, %v6562_v27  ;;  %v6840_v11 = vmax.f32 %v6712_v2, 0.0  ;;  %v11548_v0 = vpop.f32.mrf.mxu1 }
 0x176   : > { %v6718_v58 = vadd.f32 %v11236_v20, %v6563_v30  ;;  %v6719_v15 = vadd.f32 %v11275_v33, %v6564_v49  ;;  %v6841_v43 = vmax.f32 %v6713_v7, 0.0  ;;  %v6842_v52 = vmax.f32 %v6714_v35, 0.0  ;;  %v11550_v25 = vpop.f32.mrf.mxu0 }
 0x177   : > { %v6843_v26 = vmax.f32 %v6715_v31, 0.0  ;;  %13371 = vst [vmem:[#allocation29_spill] sm:$0xff] %v11550_v25  ;;  %v6844_v29 = vmax.f32 %v6716_v56, 0.0  ;;  %v6845_v63 = vmax.f32 %v6717_v38, 0.0  ;;  %v4569_v54 = vcombine.high %v11472_v39, %v11472_v39  ;;  %v11560_v7 = vpop.f32.mrf.mxu1 }
 0x178   : > { %v6846_v8 = vmax.f32 %v6718_v58, 0.0  ;;  %v6847_v27 = vmax.f32 %v6719_v15, 0.0  ;;  %v7096_v30 = vcombine.low %v6840_v11, %v6841_v43  ;;  %v4570_v49 = vcombine.high %v11487_v42, %v11487_v42  ;;  %13372 = vst [vmem:[#allocation30_spill] sm:$0xff] %v11560_v7  ;;  %v11562_v35 = vpop.f32.mrf.mxu0 }
 0x179   : > { %v7097_v2 = vcombine.low %v6842_v52, %v6843_v26  ;;  %13373 = vst [vmem:[#allocation31_spill] sm:$0xff] %v11562_v35  ;;  %v7113_v31 = vcombine.low %v6844_v29, %v6845_v63  ;;  %v4577_v56 = vrot.slane %v11472_v39, %v11174_v34  ;;  %v4584_v38 = vrot.slane %v11487_v42, %v11174_v34  ;;  %v11572_v26 = vpop.f32.mrf.mxu1 }
 0x17a   : > { %v4591_v58 = vrot.slane %v4569_v54, %v11174_v34  ;;  %v7104_v15 = vrot.slane %v7096_v30, %v11196_v40  ;;  %v7114_v43 = vcombine.low %v6846_v8, %v6847_v27  ;;  %v4598_v52 = vrot.slane %v4570_v49, %v11174_v34  ;;  %13374 = vst [vmem:[#allocation32_spill] sm:$0xff] %v11572_v26  ;;  %v11574_v7 = vpop.f32.mrf.mxu0 }
 0x17b   : > { %v7111_v11 = vrot.slane %v7097_v2, %v11196_v40  ;;  %13375 = vst [vmem:[#allocation33_spill] sm:$0xff] %v11574_v7  ;;  %v7121_v63 = vrot.slane %v7113_v31, %v11196_v40  ;;  %v4599_v29 = vcombine.high %v4577_v56, %v4577_v56  ;;  %v4600_v39 = vcombine.high %v4584_v38, %v4584_v38  ;;  %v11579_v2 = vpop.f32.mrf.mxu1 }
 0x17c   : > { %v4601_v35 = vcombine.high %v4591_v58, %v4591_v58  ;;  %v7128_v54 = vrot.slane %v7114_v43, %v11196_v40  ;;  %v4602_v25 = vcombine.high %v4598_v52, %v4598_v52  ;;  %v4932_v30 = vrot.slane %v4577_v56, %v11246_v59  ;;  %v11581_v8 = vpop.f32.mrf.mxu0 }
 0x17d   : > { %v7112_v42 = vcombine.low %v7104_v15, %v7111_v11  ;;  %v4936_v27 = vrot.slane %v4591_v58, %v11246_v59  ;;  %v4940_v49 = vrot.slane %v4599_v29, %v11246_v59  ;;  %v4948_v31 = vrot.slane %v4584_v38, %v11246_v59  ;;  %v11594_v43 = vpop.f32.mrf.mxu1 }
 0x17e   : > { %v4944_v7 = vrot.slane %v4601_v35, %v11246_v59  ;;  %v7129_v26 = vcombine.low %v7121_v63, %v7128_v54  ;;  %v4952_v56 = vrot.slane %v4598_v52, %v11246_v59  ;;  %v4956_v15 = vrot.slane %v4600_v39, %v11246_v59  ;;  %v11596_v58 = vpop.f32.mrf.mxu0 }
 0x17f   : > { %7672 = vst [vmem:[%s11588_s13] sm:$0xff] %v7112_v42  ;;  %v4960_v11 = vrot.slane %v4602_v25, %v11246_v59  ;;  %13376 = vst [vmem:[#allocation34_spill] sm:$0xff] %v11596_v58  ;;  %v5226_v35 = vsel %vm5217_vm6, %v11264_v4, %v4932_v30  ;;  %v5227_v38 = vsel %vm5217_vm6, %v11287_v44, %v4936_v27 }
 0x180   : > { %v13377_v63 = vcombine.high %v11264_v4, %v11264_v4  ;;  %v13378_v52 = vcombine.high %v11287_v44, %v11287_v44  ;;  %7673 = vst [vmem:[%s11588_s13 + $0x8] sm:$0xff] %v7129_v26  ;;  %v5230_v39 = vsel %vm5217_vm6, %v11282_v55, %v4948_v31  ;;  %v5231_v42 = vsel %vm5217_vm6, %v11293_v10, %v4952_v56  ;;  %v11623_v44 = vpop.f32.mrf.mxu1 }
 0x181   : > { %v13379_v54 = vcombine.high %v11282_v55, %v11282_v55  ;;  %v13380_v4 = vcombine.high %v11293_v10, %v11293_v10  ;;  %13381 = vst [vmem:[#allocation35_spill] sm:$0xff] %v11623_v44  ;;  %v6573_v26 = vmul.f32 %v11215_v16, %v5226_v35  ;;  %v6577_v55 = vmul.f32 %v11215_v16, %v5230_v39 }
 0x182   : > { %v5228_v29 = vsel %vm5217_vm6, %v13377_v63, %v4940_v49  ;;  %v5229_v25 = vsel %vm5217_vm6, %v13378_v52, %v4944_v7  ;;  %v11625_v7 = vpop.f32.mrf.mxu0  ;;  %v6574_v49 = vmul.f32 %v11250_v32, %v5227_v38  ;;  %v11635_v63 = vpop.f32.mrf.mxu1 }
 0x183   : > { %v5232_v30 = vsel %vm5217_vm6, %v13379_v54, %v4956_v15  ;;  %v5233_v27 = vsel %vm5217_vm6, %v13380_v4, %v4960_v11  ;;  %13382 = vst [vmem:[#allocation36_spill] sm:$0xff] %v11625_v7  ;;  %v6575_v31 = vmul.f32 %v11220_v3, %v5228_v29  ;;  %v6576_v56 = vmul.f32 %v11258_v50, %v5229_v25 }
 0x184   : > { %v6578_v15 = vmul.f32 %v11250_v32, %v5231_v42  ;;  %v6579_v10 = vmul.f32 %v11220_v3, %v5232_v30  ;;  %v6580_v11 = vmul.f32 %v11258_v50, %v5233_v27  ;;  %13383 = vst [vmem:[#allocation37_spill] sm:$0xff] %v11635_v63  ;;  %v11637_v52 = vpop.f32.mrf.mxu0  ;;  %v6728_v35 = vadd.f32 %v11233_v23, %v6573_v26  ;;  %v11647_v4 = vpop.f32.mrf.mxu1 }
 0x185   : > { %13384 = vst [vmem:[#allocation38_spill] sm:$0xff] %v11637_v52  ;;  %v6729_v38 = vadd.f32 %v11271_v48, %v6574_v49  ;;  %v6730_v29 = vadd.f32 %v11236_v20, %v6575_v31  ;;  %v6731_v25 = vadd.f32 %v11275_v33, %v6576_v56  ;;  %v6732_v39 = vadd.f32 %v11233_v23, %v6577_v55 }
 0x186   : > { %v6733_v42 = vadd.f32 %v11271_v48, %v6578_v15  ;;  %v6734_v54 = vadd.f32 %v11236_v20, %v6579_v10  ;;  %v6735_v30 = vadd.f32 %v11275_v33, %v6580_v11  ;;  %13385 = vst [vmem:[#allocation39_spill] sm:$0xff] %v11647_v4  ;;  %v11649_v27 = vpop.f32.mrf.mxu0  ;;  %v6856_v52 = vmax.f32 %v6728_v35, 0.0  ;;  %v11651_v58 = vpop.f32.mrf.mxu1 }
 0x187   : > { %v6857_v26 = vmax.f32 %v6729_v38, 0.0  ;;  %v6858_v63 = vmax.f32 %v6730_v29, 0.0  ;;  %v6859_v49 = vmax.f32 %v6731_v25, 0.0  ;;  %v6860_v44 = vmax.f32 %v6732_v39, 0.0 }
 0x188   : > { %v6861_v31 = vmax.f32 %v6733_v42, 0.0  ;;  %v6862_v7 = vmax.f32 %v6734_v54, 0.0  ;;  %v6863_v56 = vmax.f32 %v6735_v30, 0.0  ;;  %v11653_v55 = vpop.f32.mrf.mxu0  ;;  %v9017_v11 = vadd.f32 %v11464_v37, %v11453_v46  ;;  %v11663_v39 = vpop.f32.mrf.mxu1 }
 0x189   : > { %v7164_v15 = vcombine.low %v6856_v52, %v6857_v26  ;;  %v7165_v10 = vcombine.low %v6858_v63, %v6859_v49  ;;  %v8980_v4 = vadd.f32 %v11478_v36, %v11466_v21  ;;  %v9020_v29 = vadd.f32 %v11489_v19, %v11476_v28 }
 0x18a   : > { %v7181_v35 = vcombine.low %v6860_v44, %v6861_v31  ;;  %v7182_v38 = vcombine.low %v6862_v7, %v6863_v56  ;;  %v8983_v25 = vadd.f32 %v11507_v17, %v11491_v57  ;;  %v11665_v42 = vpop.f32.mrf.mxu0  ;;  %v2425_v46 = vadd.f32 %v9017_v11, %v11474_v5  ;;  %v11676_v19 = vpop.f32.mrf.mxu1 }
 0x18b   : > { %v7172_v63 = vrot.slane %v7164_v15, %v11196_v40  ;;  %v7179_v52 = vrot.slane %v7165_v10, %v11196_v40  ;;  %v2206_v37 = vadd.f32 %v8980_v4, %v11302_v13  ;;  %v9023_v57 = vadd.f32 %v11524_v6, %v11505_v62 }
 0x18c   : > { %v7189_v21 = vrot.slane %v7181_v35, %v11196_v40  ;;  %v7196_v28 = vrot.slane %v7182_v38, %v11196_v40  ;;  %v2207_v36 = vadd.f32 %v8983_v25, %v11329_v51  ;;  %v11678_v17 = vpop.f32.mrf.mxu0  ;;  %v4603_v7 = vcombine.high %v2425_v46, %v2425_v46  ;;  %v11689_v62 = vpop.f32.mrf.mxu1 }
 0x18d   : > { %v7180_v44 = vcombine.low %v7172_v63, %v7179_v52  ;;  %v4610_v5 = vrot.slane %v2425_v46, %v11174_v34  ;;  %v2426_v13 = vadd.f32 %v9020_v29, %v2206_v37  ;;  %v8986_v4 = vadd.f32 %v11541_v61, %v11526_v1 }
 0x18e   : > { %v7197_v54 = vcombine.low %v7189_v21, %v7196_v28  ;;  %v11681_v30 = vadd.f32 %v9023_v57, %v2207_v36  ;;  %v11687_v51 = vadd.f32 %v11548_v0, %v11539_v9  ;;  %v11691_v6 = vpop.f32.mrf.mxu0  ;;  %v4617_v26 = vrot.slane %v4603_v7, %v11174_v34  ;;  %v11709_v0 = vpop.f32.mrf.mxu1 }
 0x18f   : > { %7676 = vst [vmem:[%s11588_s13 + $0x20] sm:$0xff] %v7180_v44  ;;  %v4618_v49 = vcombine.high %v4610_v5, %v4610_v5  ;;  %v4626_v31 = vrot.slane %v4610_v5, %v11174_v34  ;;  %v4652_v56 = vcombine.high %v2426_v13, %v2426_v13  ;;  %v11698_v15 = vrot.slane %v2426_v13, %v11174_v34 }
 0x190   : > { %7677 = vst [vmem:[%s11588_s13 + $0x28] sm:$0xff] %v7197_v54  ;;  %v11704_v9 = vrot.slane %v11681_v30, %v11174_v34  ;;  %v11707_v1 = vadd.f32 %v8986_v4, %v11356_v24  ;;  %v11711_v10 = vpop.f32.mrf.mxu0  ;;  %v4619_v11 = vcombine.high %v4617_v26, %v4617_v26  ;;  %v4633_v35 = vrot.slane %v4617_v26, %v11174_v34  ;;  %v11725_v46 = vpop.f32.mrf.mxu1 }
 0x191   : > { %v4640_v38 = vrot.slane %v4618_v49, %v11174_v34  ;;  %v4648_v29 = vcombine.high %v4626_v31, %v4626_v31  ;;  %v4964_v25 = vrot.slane %v4626_v31, %v11246_v59  ;;  %v11717_v63 = vrot.slane %v4652_v56, %v11174_v34 }
 0x192   : > { %v4667_v52 = vcombine.high %v11698_v15, %v11698_v15  ;;  %v11723_v24 = vrot.slane %v11698_v15, %v11174_v34  ;;  %v11727_v37 = vpop.f32.mrf.mxu0  ;;  %v4647_v21 = vrot.slane %v4619_v11, %v11174_v34  ;;  %v4649_v28 = vcombine.high %v4633_v35, %v4633_v35  ;;  %v11737_v54 = vpop.f32.mrf.mxu1 }
 0x193   : > { %v4650_v36 = vcombine.high %v4640_v38, %v4640_v38  ;;  %v4968_v57 = vrot.slane %v4640_v38, %v11246_v59  ;;  %v4972_v44 = vrot.slane %v4648_v29, %v11246_v59  ;;  %v4980_v7 = vrot.slane %v4633_v35, %v11246_v59 }
 0x194   : > { %v5234_v5 = vsel %vm5217_vm6, %v11298_v22, %v4964_v25  ;;  %v4668_v13 = vcombine.high %v11717_v63, %v11717_v63  ;;  %v11739_v4 = vpop.f32.mrf.mxu0  ;;  %v4651_v26 = vcombine.high %v4647_v21, %v4647_v21  ;;  %v4984_v31 = vrot.slane %v4647_v21, %v11246_v59  ;;  %v11753_v25 = vpop.f32.mrf.mxu1 }
 0x195   : > { %13386 = vst [vmem:[#allocation40_spill] sm:$0xff] %v11739_v4  ;;  %v4976_v49 = vrot.slane %v4650_v36, %v11246_v59  ;;  %v4988_v56 = vrot.slane %v4649_v28, %v11246_v59  ;;  %v5235_v15 = vsel %vm5217_vm6, %v11314_v18, %v4968_v57  ;;  %v13387_v11 = vcombine.high %v11298_v22, %v11298_v22 }
 0x196   : > { %v5238_v38 = vsel %vm5217_vm6, %v11307_v53, %v4980_v7  ;;  %v6589_v29 = vmul.f32 %v11215_v16, %v5234_v5  ;;  %13388 = vst [vmem:[#allocation41_spill] sm:$0xff] %v11753_v25  ;;  %v11755_v36 = vpop.f32.mrf.mxu0  ;;  %v4992_v21 = vrot.slane %v4651_v26, %v11246_v59  ;;  %v13390_v28 = vcombine.high %v11314_v18, %v11314_v18  ;;  %v11772_v25 = vpop.f32.mrf.mxu1 }
 0x197   : > { %v5236_v35 = vsel %vm5217_vm6, %v13387_v11, %v4972_v44  ;;  %13389 = vst [vmem:[#allocation42_spill] sm:$0xff] %v11755_v36  ;;  %v5239_v22 = vsel %vm5217_vm6, %v11319_v45, %v4984_v31  ;;  %v13391_v44 = vcombine.high %v11307_v53, %v11307_v53  ;;  %v6590_v5 = vmul.f32 %v11250_v32, %v5235_v15 }
 0x198   : > { %v5237_v57 = vsel %vm5217_vm6, %v13390_v28, %v4976_v49  ;;  %v6591_v11 = vmul.f32 %v11220_v3, %v5236_v35  ;;  %v6593_v26 = vmul.f32 %v11215_v16, %v5238_v38  ;;  %13392 = vst [vmem:[#allocation43_spill] sm:$0xff] %v11772_v25  ;;  %v11774_v18 = vpop.f32.mrf.mxu0  ;;  %v13394_v49 = vcombine.high %v11319_v45, %v11319_v45 }
 0x199   : > { %v5240_v7 = vsel %vm5217_vm6, %v13391_v44, %v4988_v56  ;;  %v6592_v61 = vmul.f32 %v11258_v50, %v5237_v57  ;;  %13393 = vst [vmem:[#allocation44_spill] sm:$0xff] %v11774_v18  ;;  %v6594_v53 = vmul.f32 %v11250_v32, %v5239_v22  ;;  %v6744_v15 = vadd.f32 %v11233_v23, %v6589_v29  ;;  %v11787_v44 = vpop.f32.mrf.mxu1 }
 0x19a   : > { %v5241_v31 = vsel %vm5217_vm6, %v13394_v49, %v4992_v21  ;;  %v6595_v56 = vmul.f32 %v11220_v3, %v5240_v7  ;;  %v6745_v28 = vadd.f32 %v11271_v48, %v6590_v5  ;;  %v6746_v38 = vadd.f32 %v11236_v20, %v6591_v11  ;;  %13395 = vst [vmem:[#allocation45_spill] sm:$0xff] %v11787_v44  ;;  %v11789_v18 = vpop.f32.mrf.mxu0 }
 0x19b   : > { %v6596_v35 = vmul.f32 %v11258_v50, %v5241_v31  ;;  %v6747_v57 = vadd.f32 %v11275_v33, %v6592_v61  ;;  %13396 = vst [vmem:[#allocation46_spill] sm:$0xff] %v11789_v18  ;;  %v6748_v45 = vadd.f32 %v11233_v23, %v6593_v26  ;;  %v6749_v21 = vadd.f32 %v11271_v48, %v6594_v53  ;;  %v11795_v25 = vpop.f32.mrf.mxu1 }
 0x19c   : > { %v6750_v22 = vadd.f32 %v11236_v20, %v6595_v56  ;;  %v6872_v7 = vmax.f32 %v6744_v15, 0.0  ;;  %v6873_v49 = vmax.f32 %v6745_v28, 0.0  ;;  %v6874_v31 = vmax.f32 %v6746_v38, 0.0  ;;  %13397 = vst [vmem:[#allocation47_spill] sm:$0xff] %v11795_v25  ;;  %v11797_v11 = vpop.f32.mrf.mxu0 }
 0x19d   : > { %v6751_v29 = vadd.f32 %v11275_v33, %v6596_v35  ;;  %v6875_v5 = vmax.f32 %v6747_v57, 0.0  ;;  %13398 = vst [vmem:[#allocation48_spill] sm:$0xff] %v11797_v11  ;;  %v6876_v61 = vmax.f32 %v6748_v45, 0.0  ;;  %v6877_v44 = vmax.f32 %v6749_v21, 0.0  ;;  %v11802_v15 = vpop.f32.mrf.mxu1 }
 0x19e   : > { %v6878_v36 = vmax.f32 %v6750_v22, 0.0  ;;  %v4682_v26 = vrot.slane %v11717_v63, %v11174_v34  ;;  %v7232_v53 = vcombine.low %v6872_v7, %v6873_v49  ;;  %v4689_v56 = vrot.slane %v4667_v52, %v11174_v34  ;;  %13399 = vst [vmem:[#allocation49_spill] sm:$0xff] %v11802_v15  ;;  %v11804_v35 = vpop.f32.mrf.mxu0 }
 0x19f   : > { %v6879_v18 = vmax.f32 %v6751_v29, 0.0  ;;  %v7233_v4 = vcombine.low %v6874_v31, %v6875_v5  ;;  %13400 = vst [vmem:[#allocation50_spill] sm:$0xff] %v11804_v35  ;;  %v7249_v28 = vcombine.low %v6876_v61, %v6877_v44  ;;  %v4696_v38 = vrot.slane %v4668_v13, %v11174_v34  ;;  %v11811_v29 = vpop.f32.mrf.mxu1 }
 0x1a0   : > { %v4697_v57 = vcombine.high %v11723_v24, %v11723_v24  ;;  %v4698_v45 = vcombine.high %v4682_v26, %v4682_v26  ;;  %v7240_v21 = vrot.slane %v7232_v53, %v11196_v40  ;;  %v4699_v7 = vcombine.high %v4689_v56, %v4689_v56  ;;  %13401 = vst [vmem:[#allocation51_spill] sm:$0xff] %v11811_v29  ;;  %v11813_v52 = vpop.f32.mrf.mxu0 }
 0x1a1   : > { %v7247_v63 = vrot.slane %v7233_v4, %v11196_v40  ;;  %v7250_v22 = vcombine.low %v6878_v36, %v6879_v18  ;;  %v7257_v49 = vrot.slane %v7249_v28, %v11196_v40  ;;  %v4700_v44 = vcombine.high %v4696_v38, %v4696_v38  ;;  %v11822_v18 = vpop.f32.mrf.mxu1 }
 0x1a2   : > { %v4996_v13 = vrot.slane %v11723_v24, %v11246_v59  ;;  %v5000_v31 = vrot.slane %v4689_v56, %v11246_v59  ;;  %v5004_v4 = vrot.slane %v4697_v57, %v11246_v59  ;;  %v5008_v36 = vrot.slane %v4699_v7, %v11246_v59  ;;  %13402 = vst [vmem:[#allocation52_spill] sm:$0xff] %v11822_v18  ;;  %v11824_v53 = vpop.f32.mrf.mxu0 }
 0x1a3   : > { %v7248_v5 = vcombine.low %v7240_v21, %v7247_v63  ;;  %v7264_v61 = vrot.slane %v7250_v22, %v11196_v40  ;;  %v5012_v28 = vrot.slane %v4682_v26, %v11246_v59  ;;  %v5016_v29 = vrot.slane %v4696_v38, %v11246_v59  ;;  %v13403_v63 = vld [vmem:[#allocation13_spill] sm:$0xff]  ;;  %v11839_v26 = vpop.f32.mrf.mxu1 }
 0x1a4   : > { %v5020_v24 = vrot.slane %v4698_v45, %v11246_v59  ;;  %v5024_v56 = vrot.slane %v4700_v44, %v11246_v59  ;;  %v5242_v57 = vsel %vm5217_vm6, %v11322_v14, %v4996_v13  ;;  %v5243_v22 = vsel %vm5217_vm6, %v13403_v63, %v5000_v31  ;;  %13405 = vst [vmem:[#allocation13_spill] sm:$0xff] %v11839_v26  ;;  %v11841_v38 = vpop.f32.mrf.mxu0  ;;  %v13407_v44 = vld [vmem:[#allocation12_spill] sm:$0xff] }
 0x1a5   : > { %v7265_v21 = vcombine.low %v7257_v49, %v7264_v61  ;;  %7680 = vst [vmem:[%s11588_s13 + $0x40] sm:$0xff] %v7248_v5  ;;  %v13404_v7 = vcombine.high %v11322_v14, %v11322_v14  ;;  %v13406_v45 = vcombine.high %v13403_v63, %v13403_v63  ;;  %v5246_v13 = vsel %vm5217_vm6, %v13407_v44, %v5012_v28  ;;  %v13408_v5 = vld [vmem:[#allocation14_spill] sm:$0xff] }
 0x1a6   : > { %v5247_v31 = vsel %vm5217_vm6, %v13408_v5, %v5016_v29  ;;  %v13409_v14 = vcombine.high %v13407_v44, %v13407_v44  ;;  %v6605_v63 = vmul.f32 %v11215_v16, %v5242_v57  ;;  %v11865_v29 = vpop.f32.mrf.mxu0 }
 0x1a7   : > { %v5244_v15 = vsel %vm5217_vm6, %v13404_v7, %v5004_v4  ;;  %v5245_v49 = vsel %vm5217_vm6, %v13406_v45, %v5008_v36  ;;  %7681 = vst [vmem:[%s11588_s13 + $0x48] sm:$0xff] %v7265_v21  ;;  %v13410_v4 = vcombine.high %v13408_v5, %v13408_v5  ;;  %v6606_v36 = vmul.f32 %v11250_v32, %v5243_v22  ;;  %v11863_v45 = vpop.f32.mrf.mxu1 }
 0x1a8   : > { %v5248_v61 = vsel %vm5217_vm6, %v13409_v14, %v5020_v24  ;;  %v6607_v28 = vmul.f32 %v11220_v3, %v5244_v15  ;;  %13411 = vst [vmem:[#allocation12_spill] sm:$0xff] %v11863_v45  ;;  %v6608_v44 = vmul.f32 %v11258_v50, %v5245_v49  ;;  %v6609_v24 = vmul.f32 %v11215_v16, %v5246_v13 }
 0x1a9   : > { %v5249_v7 = vsel %vm5217_vm6, %v13410_v4, %v5024_v56  ;;  %v6610_v21 = vmul.f32 %v11250_v32, %v5247_v31  ;;  %v6611_v5 = vmul.f32 %v11220_v3, %v5248_v61  ;;  %v6760_v57 = vadd.f32 %v11233_v23, %v6605_v63  ;;  %v11875_v14 = vpop.f32.mrf.mxu1  ;;  %v11877_v4 = vpop.f32.mrf.mxu0 }
 0x1aa   : > { %v6612_v56 = vmul.f32 %v11258_v50, %v5249_v7  ;;  %v6761_v22 = vadd.f32 %v11271_v48, %v6606_v36  ;;  %v6762_v15 = vadd.f32 %v11236_v20, %v6607_v28  ;;  %13412 = vst [vmem:[#allocation14_spill] sm:$0xff] %v11875_v14  ;;  %v6763_v49 = vadd.f32 %v11275_v33, %v6608_v44 }
 0x1ab   : > { %v6764_v13 = vadd.f32 %v11233_v23, %v6609_v24  ;;  %v6765_v31 = vadd.f32 %v11271_v48, %v6610_v21  ;;  %v6766_v61 = vadd.f32 %v11236_v20, %v6611_v5  ;;  %v6888_v35 = vmax.f32 %v6760_v57, 0.0  ;;  %v11884_v36 = vpop.f32.mrf.mxu1  ;;  %v11886_v28 = vpop.f32.mrf.mxu0 }
 0x1ac   : > { %v6767_v7 = vadd.f32 %v11275_v33, %v6612_v56  ;;  %v6889_v63 = vmax.f32 %v6761_v22, 0.0  ;;  %v6890_v11 = vmax.f32 %v6762_v15, 0.0  ;;  %v6891_v25 = vmax.f32 %v6763_v49, 0.0 }
 0x1ad   : > { %v6892_v14 = vmax.f32 %v6764_v13, 0.0  ;;  %v6893_v45 = vmax.f32 %v6765_v31, 0.0  ;;  %v6894_v26 = vmax.f32 %v6766_v61, 0.0  ;;  %v13413_v24 = vcombine.high %v11681_v30, %v11681_v30  ;;  %v11894_v56 = vpop.f32.mrf.mxu1  ;;  %v11896_v57 = vpop.f32.mrf.mxu0 }
 0x1ae   : > { %v6895_v44 = vmax.f32 %v6767_v7, 0.0  ;;  %v7300_v18 = vcombine.low %v6888_v35, %v6889_v63  ;;  %v4716_v5 = vcombine.high %v11704_v9, %v11704_v9  ;;  %13414 = vst [vmem:[#allocation53_spill] sm:$0xff] %v11896_v57  ;;  %v7301_v22 = vcombine.low %v6890_v11, %v6891_v25 }
 0x1af   : > { %v4715_v21 = vrot.slane %v13413_v24, %v11174_v34  ;;  %v7317_v15 = vcombine.low %v6892_v14, %v6893_v45  ;;  %v4724_v49 = vrot.slane %v11704_v9, %v11174_v34  ;;  %v11902_v35 = vadd.f32 %v11687_v51, %v11707_v1  ;;  %v11906_v7 = vpop.f32.mrf.mxu1  ;;  %v11908_v63 = vpop.f32.mrf.mxu0 }
 0x1b0   : > { %v7308_v13 = vrot.slane %v7300_v18, %v11196_v40  ;;  %v7318_v30 = vcombine.low %v6894_v26, %v6895_v44  ;;  %13415 = vst [vmem:[#allocation54_spill] sm:$0xff] %v11906_v7  ;;  %13416 = vst [vmem:[#allocation55_spill] sm:$0xff] %v11908_v63  ;;  %v7315_v25 = vrot.slane %v7301_v22, %v11196_v40 }
 0x1b1   : > { %v4717_v31 = vcombine.high %v4715_v21, %v4715_v21  ;;  %v4731_v61 = vrot.slane %v4715_v21, %v11174_v34  ;;  %v7325_v11 = vrot.slane %v7317_v15, %v11196_v40  ;;  %v4738_v9 = vrot.slane %v4716_v5, %v11174_v34  ;;  %v11916_v14 = vpop.f32.mrf.mxu1  ;;  %v11918_v44 = vpop.f32.mrf.mxu0 }
 0x1b2   : > { %v4746_v45 = vcombine.high %v4724_v49, %v4724_v49  ;;  %v7332_v51 = vrot.slane %v7318_v30, %v11196_v40  ;;  %v5028_v26 = vrot.slane %v4724_v49, %v11246_v59  ;;  %13417 = vst [vmem:[#allocation56_spill] sm:$0xff] %v11916_v14  ;;  %13418 = vst [vmem:[#allocation57_spill] sm:$0xff] %v11918_v44 }
 0x1b3   : > { %v4745_v1 = vrot.slane %v4717_v31, %v11174_v34  ;;  %v4747_v18 = vcombine.high %v4731_v61, %v4731_v61  ;;  %v7316_v24 = vcombine.low %v7308_v13, %v7315_v25  ;;  %v4748_v21 = vcombine.high %v4738_v9, %v4738_v9  ;;  %v11924_v63 = vpop.f32.mrf.mxu1  ;;  %v11926_v49 = vpop.f32.mrf.mxu0 }
 0x1b4   : > { %v5032_v22 = vrot.slane %v4738_v9, %v11246_v59  ;;  %v5036_v5 = vrot.slane %v4746_v45, %v11246_v59  ;;  %v7333_v15 = vcombine.low %v7325_v11, %v7332_v51  ;;  %v5044_v30 = vrot.slane %v4731_v61, %v11246_v59  ;;  %13419 = vst [vmem:[#allocation58_spill] sm:$0xff] %v11924_v63 }
 0x1b5   : > { %v4749_v7 = vcombine.high %v4745_v1, %v4745_v1  ;;  %v5048_v31 = vrot.slane %v4745_v1, %v11246_v59  ;;  %13420 = vst [vmem:[#allocation59_spill] sm:$0xff] %v11926_v49  ;;  %7684 = vst [vmem:[%s11588_s13 + $0x60] sm:$0xff] %v7316_v24  ;;  %v5040_v14 = vrot.slane %v4748_v21, %v11246_v59 }
 0x1b6   : > { %v5052_v13 = vrot.slane %v4747_v18, %v11246_v59  ;;  %v5250_v25 = vsel %vm5217_vm6, %v11354_v47, %v5028_v26  ;;  %v5251_v11 = vsel %vm5217_vm6, %v11366_v60, %v5032_v22  ;;  %7685 = vst [vmem:[%s11588_s13 + $0x68] sm:$0xff] %v7333_v15  ;;  %v13421_v9 = vcombine.high %v11354_v47, %v11354_v47  ;;  %v11945_v18 = vpop.f32.mrf.mxu1  ;;  %v11947_v26 = vpop.f32.mrf.mxu0 }
 0x1b7   : > { %v5056_v61 = vrot.slane %v4749_v7, %v11246_v59  ;;  %v5254_v51 = vsel %vm5217_vm6, %v11363_v41, %v5044_v30  ;;  %v5255_v1 = vsel %vm5217_vm6, %v11378_v12, %v5048_v31  ;;  %13422 = vst [vmem:[#allocation60_spill] sm:$0xff] %v11945_v18  ;;  %13423 = vst [vmem:[#allocation61_spill] sm:$0xff] %v11947_v26 }
 0x1b8   : > { %v5252_v45 = vsel %vm5217_vm6, %v13421_v9, %v5036_v5  ;;  %v13424_v24 = vcombine.high %v11366_v60, %v11366_v60  ;;  %v13425_v47 = vcombine.high %v11363_v41, %v11363_v41  ;;  %v6621_v22 = vmul.f32 %v11215_v16, %v5250_v25  ;;  %v11966_v9 = vpop.f32.mrf.mxu1  ;;  %v11968_v41 = vpop.f32.mrf.mxu0 }
 0x1b9   : > { %v6622_v5 = vmul.f32 %v11250_v32, %v5251_v11  ;;  %v13426_v15 = vcombine.high %v11378_v12, %v11378_v12  ;;  %v6623_v31 = vmul.f32 %v11220_v3, %v5252_v45  ;;  %13427 = vst [vmem:[#allocation62_spill] sm:$0xff] %v11966_v9  ;;  %13428 = vst [vmem:[#allocation63_spill] sm:$0xff] %v11968_v41 }
 0x1ba   : > { %v5253_v7 = vsel %vm5217_vm6, %v13424_v24, %v5040_v14  ;;  %v5256_v21 = vsel %vm5217_vm6, %v13425_v47, %v5052_v13  ;;  %v6625_v14 = vmul.f32 %v11215_v16, %v5254_v51  ;;  %v6626_v13 = vmul.f32 %v11250_v32, %v5255_v1  ;;  %v11980_v47 = vpop.f32.mrf.mxu0 }
 0x1bb   : > { %v5257_v30 = vsel %vm5217_vm6, %v13426_v15, %v5056_v61  ;;  %v6624_v60 = vmul.f32 %v11258_v50, %v5253_v7  ;;  %v6627_v25 = vmul.f32 %v11220_v3, %v5256_v21  ;;  %v6776_v12 = vadd.f32 %v11233_v23, %v6621_v22  ;;  %v11978_v7 = vpop.f32.mrf.mxu1  ;;  %13430 = vst [vmem:[#allocation65_spill] sm:$0xff] %v11980_v47 }
 0x1bc   : > { %v6628_v11 = vmul.f32 %v11258_v50, %v5257_v30  ;;  %v6777_v61 = vadd.f32 %v11271_v48, %v6622_v5  ;;  %v6778_v45 = vadd.f32 %v11236_v20, %v6623_v31  ;;  %v6780_v51 = vadd.f32 %v11233_v23, %v6625_v14  ;;  %13429 = vst [vmem:[#allocation64_spill] sm:$0xff] %v11978_v7  ;;  %v11985_v31 = vpop.f32.mrf.mxu0 }
 0x1bd   : > { %v6779_v24 = vadd.f32 %v11275_v33, %v6624_v60  ;;  %v6781_v1 = vadd.f32 %v11271_v48, %v6626_v13  ;;  %v6782_v21 = vadd.f32 %v11236_v20, %v6627_v25  ;;  %v6904_v30 = vmax.f32 %v6776_v12, 0.0  ;;  %13431 = vst [vmem:[#allocation66_spill] sm:$0xff] %v11985_v31  ;;  %v11989_v18 = vpop.f32.mrf.mxu1  ;;  %v13433_v13 = vld [vmem:[#allocation26_spill] sm:$0xff] }
 0x1be   : > { %v6783_v15 = vadd.f32 %v11275_v33, %v6628_v11  ;;  %v6905_v22 = vmax.f32 %v6777_v61, 0.0  ;;  %v6906_v9 = vmax.f32 %v6778_v45, 0.0  ;;  %v6908_v41 = vmax.f32 %v6780_v51, 0.0  ;;  %13432 = vst [vmem:[#allocation67_spill] sm:$0xff] %v11989_v18  ;;  %v11995_v61 = vpop.f32.mrf.mxu0 }
 0x1bf   : > { %v6907_v5 = vmax.f32 %v6779_v24, 0.0  ;;  %v6909_v60 = vmax.f32 %v6781_v1, 0.0  ;;  %v6910_v26 = vmax.f32 %v6782_v21, 0.0  ;;  %v4750_v7 = vcombine.high %v11902_v35, %v11902_v35  ;;  %13434 = vst [vmem:[#allocation26_spill] sm:$0xff] %v11995_v61  ;;  %v13435_v1 = vld [vmem:[#allocation29_spill] sm:$0xff]  ;;  %v13436_v21 = vld [vmem:[#allocation31_spill] sm:$0xff]  ;;  %v12002_v31 = vpop.f32.mrf.mxu1 }
 0x1c0   : > { %v6911_v14 = vmax.f32 %v6783_v15, 0.0  ;;  %v7368_v63 = vcombine.low %v6904_v30, %v6905_v22  ;;  %v4757_v12 = vrot.slane %v11902_v35, %v11174_v34  ;;  %v12000_v15 = vadd.f32 %v13436_v21, %v13435_v1  ;;  %13437 = vst [vmem:[#allocation29_spill] sm:$0xff] %v12002_v31  ;;  %v12007_v35 = vpop.f32.mrf.mxu0  ;;  %v13449_v61 = vld [vmem:[#allocation20_spill] sm:$0xff] }
 0x1c1   : > { %v7369_v11 = vcombine.low %v6906_v9, %v6907_v5  ;;  %v7385_v45 = vcombine.low %v6908_v41, %v6909_v60  ;;  %v4764_v51 = vrot.slane %v4750_v7, %v11174_v34  ;;  %13438 = vst [vmem:[#allocation31_spill] sm:$0xff] %v12007_v35  ;;  %v12012_v60 = vpop.f32.mrf.mxu1 }
 0x1c2   : > { %v7386_v24 = vcombine.low %v6910_v26, %v6911_v14  ;;  %v7376_v18 = vrot.slane %v7368_v63, %v11196_v40  ;;  %v4765_v9 = vcombine.high %v4757_v12, %v4757_v12  ;;  %v4773_v22 = vrot.slane %v4757_v12, %v11174_v34  ;;  %13439 = vst [vmem:[#allocation68_spill] sm:$0xff] %v12012_v60  ;;  %v12016_v12 = vpop.f32.mrf.mxu0 }
 0x1c3   : > { %v7383_v30 = vrot.slane %v7369_v11, %v11196_v40  ;;  %v7393_v26 = vrot.slane %v7385_v45, %v11196_v40  ;;  %v4766_v7 = vcombine.high %v4764_v51, %v4764_v51  ;;  %v4780_v5 = vrot.slane %v4764_v51, %v11174_v34  ;;  %13440 = vst [vmem:[#allocation69_spill] sm:$0xff] %v12016_v12  ;;  %v12020_v35 = vpop.f32.mrf.mxu1 }
 0x1c4   : > { %v7400_v41 = vrot.slane %v7386_v24, %v11196_v40  ;;  %v4787_v63 = vrot.slane %v4765_v9, %v11174_v34  ;;  %v4795_v11 = vcombine.high %v4773_v22, %v4773_v22  ;;  %v5060_v1 = vrot.slane %v4773_v22, %v11246_v59  ;;  %13441 = vst [vmem:[#allocation70_spill] sm:$0xff] %v12020_v35  ;;  %v13442_v9 = vld [vmem:[#allocation16_spill] sm:$0xff]  ;;  %v12027_v22 = vpop.f32.mrf.mxu0  ;;  %v13446_v35 = vld [vmem:[#allocation18_spill] sm:$0xff] }
 0x1c5   : > { %v7384_v14 = vcombine.low %v7376_v18, %v7383_v30  ;;  %v4794_v25 = vrot.slane %v4766_v7, %v11174_v34  ;;  %v4796_v45 = vcombine.high %v4780_v5, %v4780_v5  ;;  %v5076_v24 = vrot.slane %v4780_v5, %v11246_v59  ;;  %13443 = vst [vmem:[#allocation16_spill] sm:$0xff] %v12027_v22  ;;  %v13444_v5 = vld [vmem:[#allocation17_spill] sm:$0xff] }
 0x1c6   : > { %v7401_v21 = vcombine.low %v7393_v26, %v7400_v41  ;;  %v4797_v51 = vcombine.high %v4787_v63, %v4787_v63  ;;  %v5064_v18 = vrot.slane %v4787_v63, %v11246_v59  ;;  %v5068_v30 = vrot.slane %v4795_v11, %v11246_v59 }
 0x1c7   : > { %7688 = vst [vmem:[%s11588_s13 + $0x80] sm:$0xff] %v7384_v14  ;;  %v5258_v60 = vsel %vm5217_vm6, %v13442_v9, %v5060_v1  ;;  %v4798_v26 = vcombine.high %v4794_v25, %v4794_v25  ;;  %v5080_v41 = vrot.slane %v4794_v25, %v11246_v59  ;;  %v5084_v7 = vrot.slane %v4796_v45, %v11246_v59  ;;  %v12034_v14 = vpop.f32.mrf.mxu1  ;;  %v12044_v25 = vpop.f32.mrf.mxu0 }
 0x1c8   : > { %7689 = vst [vmem:[%s11588_s13 + $0x88] sm:$0xff] %v7401_v21  ;;  %v5262_v12 = vsel %vm5217_vm6, %v13444_v5, %v5076_v24  ;;  %13445 = vst [vmem:[#allocation17_spill] sm:$0xff] %v12034_v14  ;;  %v5072_v63 = vrot.slane %v4797_v51, %v11246_v59  ;;  %v5259_v11 = vsel %vm5217_vm6, %v13446_v35, %v5064_v18 }
 0x1c9   : > { %v13447_v1 = vcombine.high %v13442_v9, %v13442_v9  ;;  %v6637_v22 = vmul.f32 %v11215_v16, %v5258_v60  ;;  %13448 = vst [vmem:[#allocation18_spill] sm:$0xff] %v12044_v25  ;;  %v5088_v45 = vrot.slane %v4798_v26, %v11246_v59  ;;  %v5263_v24 = vsel %vm5217_vm6, %v13449_v61, %v5080_v41  ;;  %v12054_v31 = vpop.f32.mrf.mxu1 }
 0x1ca   : > { %v13450_v51 = vcombine.high %v13444_v5, %v13444_v5  ;;  %v6638_v18 = vmul.f32 %v11250_v32, %v5259_v11  ;;  %13451 = vst [vmem:[#allocation20_spill] sm:$0xff] %v12054_v31  ;;  %v6641_v26 = vmul.f32 %v11215_v16, %v5262_v12  ;;  %v6642_v41 = vmul.f32 %v11250_v32, %v5263_v24 }
 0x1cb   : > { %v5260_v21 = vsel %vm5217_vm6, %v13447_v1, %v5068_v30  ;;  %v13452_v30 = vcombine.high %v13446_v35, %v13446_v35  ;;  %v12063_v1 = vpop.f32.mrf.mxu0  ;;  %v6792_v35 = vadd.f32 %v11233_v23, %v6637_v22  ;;  %v13458_v22 = vld [vmem:[#allocation32_spill] sm:$0xff] }
 0x1cc   : > { %v5264_v14 = vsel %vm5217_vm6, %v13450_v51, %v5084_v7  ;;  %v6639_v9 = vmul.f32 %v11220_v3, %v5260_v21  ;;  %13453 = vst [vmem:[#allocation71_spill] sm:$0xff] %v12063_v1  ;;  %v13454_v7 = vcombine.high %v13449_v61, %v13449_v61  ;;  %v6793_v12 = vadd.f32 %v11271_v48, %v6638_v18 }
 0x1cd   : > { %v5261_v60 = vsel %vm5217_vm6, %v13452_v30, %v5072_v63  ;;  %v6643_v51 = vmul.f32 %v11220_v3, %v5264_v14  ;;  %v12072_v63 = vpop.f32.mrf.mxu1  ;;  %v6796_v30 = vadd.f32 %v11233_v23, %v6641_v26  ;;  %v12078_v1 = vpop.f32.mrf.mxu0  ;;  %v6920_v18 = vmax.f32 %v6792_v35, 0.0  ;;  %v13465_v35 = vld [vmem:[#allocation25_spill] sm:$0xff] }
 0x1ce   : > { %v5265_v5 = vsel %vm5217_vm6, %v13454_v7, %v5088_v45  ;;  %v6640_v11 = vmul.f32 %v11258_v50, %v5261_v60  ;;  %13455 = vst [vmem:[#allocation72_spill] sm:$0xff] %v12072_v63  ;;  %v6794_v24 = vadd.f32 %v11236_v20, %v6639_v9  ;;  %13456 = vst [vmem:[#allocation73_spill] sm:$0xff] %v12078_v1  ;;  %v13457_v60 = vld [vmem:[#allocation30_spill] sm:$0xff]  ;;  %v6921_v25 = vmax.f32 %v6793_v12, 0.0 }
 0x1cf   : > { %v6644_v21 = vmul.f32 %v11258_v50, %v5265_v5  ;;  %v6797_v45 = vadd.f32 %v11271_v48, %v6642_v41  ;;  %v6798_v14 = vadd.f32 %v11236_v20, %v6643_v51  ;;  %v9029_v7 = vadd.f32 %v13458_v22, %v13457_v60  ;;  %v12085_v63 = vpop.f32.mrf.mxu1  ;;  %v12088_v31 = vpop.f32.mrf.mxu0  ;;  %v13463_v22 = vld [vmem:[#allocation33_spill] sm:$0xff] }
 0x1d0   : > { %v6795_v61 = vadd.f32 %v11275_v33, %v6640_v11  ;;  %13459 = vst [vmem:[#allocation30_spill] sm:$0xff] %v12085_v63  ;;  %v6922_v9 = vmax.f32 %v6794_v24, 0.0  ;;  %13460 = vst [vmem:[#allocation32_spill] sm:$0xff] %v12088_v31  ;;  %v6924_v1 = vmax.f32 %v6796_v30, 0.0  ;;  %v13461_v11 = vld [vmem:[#allocation15_spill] sm:$0xff]  ;;  %v7436_v60 = vcombine.low %v6920_v18, %v6921_v25 }
 0x1d1   : > { %v6799_v5 = vadd.f32 %v11275_v33, %v6644_v21  ;;  %v6925_v47 = vmax.f32 %v6797_v45, 0.0  ;;  %v2209_v41 = vadd.f32 %v12000_v15, %v13461_v11  ;;  %v12092_v49 = vpop.f32.mrf.mxu1  ;;  %v6926_v51 = vmax.f32 %v6798_v14, 0.0  ;;  %v12096_v21 = vpop.f32.mrf.mxu0  ;;  %v13468_v11 = vld [vmem:[#allocation27_spill] sm:$0xff] }
 0x1d2   : > { %v6923_v26 = vmax.f32 %v6795_v61, 0.0  ;;  %13462 = vst [vmem:[#allocation15_spill] sm:$0xff] %v12092_v49  ;;  %v8992_v63 = vadd.f32 %v11581_v8, %v13463_v22  ;;  %13464 = vst [vmem:[#allocation33_spill] sm:$0xff] %v12096_v21  ;;  %v13466_v12 = vcombine.high %v13465_v35, %v13465_v35  ;;  %v9032_v8 = vadd.f32 %v11594_v43, %v11579_v2  ;;  %v13481_v21 = vld [vmem:[#allocation22_spill] sm:$0xff] }
 0x1d3   : > { %v6927_v44 = vmax.f32 %v6799_v5, 0.0  ;;  %v7453_v61 = vcombine.low %v6924_v1, %v6925_v47  ;;  %v2429_v45 = vadd.f32 %v9029_v7, %v2209_v41  ;;  %v12104_v15 = vpop.f32.mrf.mxu1  ;;  %v13469_v5 = vld [vmem:[#allocation21_spill] sm:$0xff]  ;;  %v12111_v22 = vpop.f32.mrf.mxu0  ;;  %v7444_v35 = vrot.slane %v7436_v60, %v11196_v40  ;;  %v13472_v7 = vld [vmem:[#allocation28_spill] sm:$0xff] }
 0x1d4   : > { %v12102_v24 = vrot.slane %v13466_v12, %v11174_v34  ;;  %v7437_v30 = vcombine.low %v6922_v9, %v6923_v26  ;;  %13467 = vst [vmem:[#allocation25_spill] sm:$0xff] %v12104_v15  ;;  %v2210_v18 = vadd.f32 %v8992_v63, %v13469_v5  ;;  %13470 = vst [vmem:[#allocation27_spill] sm:$0xff] %v12111_v22 }
 0x1d5   : > { %v7454_v25 = vcombine.low %v6926_v51, %v6927_v44  ;;  %v4799_v9 = vcombine.high %v2429_v45, %v2429_v45  ;;  %v4806_v47 = vrot.slane %v2429_v45, %v11174_v34  ;;  %v12116_v1 = vpop.f32.mrf.mxu1  ;;  %v7461_v63 = vrot.slane %v7453_v61, %v11196_v40  ;;  %v12131_v61 = vpop.f32.mrf.mxu0 }
 0x1d6   : > { %v7451_v12 = vrot.slane %v7437_v30, %v11196_v40  ;;  %13471 = vst [vmem:[#allocation21_spill] sm:$0xff] %v12116_v1  ;;  %v2430_v2 = vadd.f32 %v9032_v8, %v2210_v18  ;;  %13474 = vst [vmem:[#allocation74_spill] sm:$0xff] %v12131_v61 }
 0x1d7   : > { %v7468_v26 = vrot.slane %v7454_v25, %v11196_v40  ;;  %v4813_v41 = vrot.slane %v4799_v9, %v11174_v34  ;;  %v4814_v51 = vcombine.high %v4806_v47, %v4806_v47  ;;  %v4822_v60 = vrot.slane %v4806_v47, %v11174_v34  ;;  %v12124_v30 = vpop.f32.mrf.mxu1  ;;  %v12153_v61 = vpop.f32.mrf.mxu0 }
 0x1d8   : > { %v7452_v43 = vcombine.low %v7444_v35, %v7451_v12  ;;  %13473 = vst [vmem:[#allocation28_spill] sm:$0xff] %v12124_v30  ;;  %v4848_v14 = vcombine.high %v2430_v2, %v2430_v2  ;;  %v12129_v44 = vrot.slane %v2430_v2, %v11174_v34 }
 0x1d9   : > { %v7469_v5 = vcombine.low %v7461_v63, %v7468_v26  ;;  %v4815_v25 = vcombine.high %v4813_v41, %v4813_v41  ;;  %v4829_v18 = vrot.slane %v4813_v41, %v11174_v34  ;;  %v4836_v8 = vrot.slane %v4814_v51, %v11174_v34  ;;  %v12136_v12 = vpop.f32.mrf.mxu1  ;;  %v12184_v49 = vpop.f32.mrf.mxu0 }
 0x1da   : > { %7692 = vst [vmem:[%s11588_s13 + $0xa0] sm:$0xff] %v7452_v43  ;;  %v4844_v35 = vcombine.high %v4822_v60, %v4822_v60  ;;  %13475 = vst [vmem:[#allocation75_spill] sm:$0xff] %v12136_v12  ;;  %v5092_v9 = vrot.slane %v4822_v60, %v11246_v59  ;;  %v4862_v47 = vrot.slane %v4848_v14, %v11174_v34  ;;  %v13476_v60 = vld [vmem:[#allocation19_spill] sm:$0xff] }
 0x1db   : > { %7693 = vst [vmem:[%s11588_s13 + $0xa8] sm:$0xff] %v7469_v5  ;;  %v4863_v63 = vcombine.high %v12129_v44, %v12129_v44  ;;  %v12145_v26 = vrot.slane %v12129_v44, %v11174_v34  ;;  %v4843_v2 = vrot.slane %v4815_v25, %v11174_v34  ;;  %v4845_v43 = vcombine.high %v4829_v18, %v4829_v18  ;;  %v12155_v30 = vpop.f32.mrf.mxu1 }
 0x1dc   : > { %v4846_v41 = vcombine.high %v4836_v8, %v4836_v8  ;;  %v5096_v51 = vrot.slane %v4836_v8, %v11246_v59  ;;  %v5100_v45 = vrot.slane %v4844_v35, %v11246_v59  ;;  %v5108_v5 = vrot.slane %v4829_v18, %v11246_v59  ;;  %13477 = vst [vmem:[#allocation19_spill] sm:$0xff] %v12153_v61  ;;  %v13479_v8 = vld [vmem:[#allocation23_spill] sm:$0xff] }
 0x1dd   : > { %v5266_v14 = vsel %vm5217_vm6, %v13476_v60, %v5092_v9  ;;  %v4864_v12 = vcombine.high %v4862_v47, %v4862_v47  ;;  %13478 = vst [vmem:[#allocation76_spill] sm:$0xff] %v12155_v30  ;;  %v4847_v44 = vcombine.high %v4843_v2, %v4843_v2  ;;  %v5112_v25 = vrot.slane %v4843_v2, %v11246_v59 }
 0x1de   : > { %v5104_v1 = vrot.slane %v4846_v41, %v11246_v59  ;;  %v5116_v22 = vrot.slane %v4845_v43, %v11246_v59  ;;  %v5267_v35 = vsel %vm5217_vm6, %v13479_v8, %v5096_v51  ;;  %v13480_v18 = vcombine.high %v13476_v60, %v13476_v60  ;;  %v13483_v41 = vld [vmem:[#allocation24_spill] sm:$0xff]  ;;  %13485 = vst [vmem:[#allocation23_spill] sm:$0xff] %v12184_v49  ;;  %v12203_v49 = vpop.f32.mrf.mxu0 }
 0x1df   : > { %v5270_v61 = vsel %vm5217_vm6, %v13481_v21, %v5108_v5  ;;  %v6653_v30 = vmul.f32 %v11215_v16, %v5266_v14  ;;  %v5120_v15 = vrot.slane %v4847_v44, %v11246_v59  ;;  %v13482_v2 = vcombine.high %v13479_v8, %v13479_v8  ;;  %v12186_v8 = vpop.f32.mrf.mxu1 }
 0x1e0   : > { %v5268_v9 = vsel %vm5217_vm6, %v13480_v18, %v5100_v45  ;;  %v5271_v51 = vsel %vm5217_vm6, %v13483_v41, %v5112_v25  ;;  %v13484_v60 = vcombine.high %v13481_v21, %v13481_v21  ;;  %v6654_v18 = vmul.f32 %v11250_v32, %v5267_v35  ;;  %13486 = vst [vmem:[#allocation22_spill] sm:$0xff] %v12186_v8 }
 0x1e1   : > { %v5269_v43 = vsel %vm5217_vm6, %v13482_v2, %v5104_v1  ;;  %v6655_v5 = vmul.f32 %v11220_v3, %v5268_v9  ;;  %v6657_v44 = vmul.f32 %v11215_v16, %v5270_v61  ;;  %v13487_v1 = vcombine.high %v13483_v41, %v13483_v41 }
 0x1e2   : > { %v5272_v45 = vsel %vm5217_vm6, %v13484_v60, %v5116_v22  ;;  %v6656_v14 = vmul.f32 %v11258_v50, %v5269_v43  ;;  %v6658_v21 = vmul.f32 %v11250_v32, %v5271_v51  ;;  %v6808_v35 = vadd.f32 %v11233_v23, %v6653_v30 }
 0x1e3   : > { %v5273_v25 = vsel %vm5217_vm6, %v13487_v1, %v5120_v15  ;;  %v6659_v22 = vmul.f32 %v11220_v3, %v5272_v45  ;;  %v6809_v2 = vadd.f32 %v11271_v48, %v6654_v18  ;;  %v6810_v61 = vadd.f32 %v11236_v20, %v6655_v5 }
 0x1e4   : > { %v6660_v9 = vmul.f32 %v11258_v50, %v5273_v25  ;;  %v6811_v43 = vadd.f32 %v11275_v33, %v6656_v14  ;;  %v6812_v60 = vadd.f32 %v11233_v23, %v6657_v44  ;;  %v6813_v41 = vadd.f32 %v11271_v48, %v6658_v21  ;;  %v12205_v25 = vpop.f32.mrf.mxu1 }
 0x1e5   : > { %v6814_v15 = vadd.f32 %v11236_v20, %v6659_v22  ;;  %v6936_v1 = vmax.f32 %v6808_v35, 0.0  ;;  %v6937_v45 = vmax.f32 %v6809_v2, 0.0  ;;  %v6938_v8 = vmax.f32 %v6810_v61, 0.0 }
 0x1e6   : > { %v6815_v51 = vadd.f32 %v11275_v33, %v6660_v9  ;;  %v6939_v30 = vmax.f32 %v6811_v43, 0.0  ;;  %v6940_v18 = vmax.f32 %v6812_v60, 0.0  ;;  %v6941_v5 = vmax.f32 %v6813_v41, 0.0 }
 0x1e7   : > { %v6942_v31 = vmax.f32 %v6814_v15, 0.0  ;;  %v4878_v14 = vrot.slane %v4862_v47, %v11174_v34  ;;  %v7504_v57 = vcombine.low %v6936_v1, %v6937_v45  ;;  %v4885_v22 = vrot.slane %v4863_v63, %v11174_v34  ;;  %v12214_v47 = vpop.f32.mrf.mxu0  ;;  %v12216_v1 = vpop.f32.mrf.mxu1 }
 0x1e8   : > { %v6943_v44 = vmax.f32 %v6815_v51, 0.0  ;;  %v7505_v21 = vcombine.low %v6938_v8, %v6939_v30  ;;  %v7521_v35 = vcombine.low %v6940_v18, %v6941_v5  ;;  %v4892_v9 = vrot.slane %v4864_v12, %v11174_v34 }
 0x1e9   : > { %v4893_v2 = vcombine.high %v12145_v26, %v12145_v26  ;;  %v4894_v61 = vcombine.high %v4878_v14, %v4878_v14  ;;  %v7512_v43 = vrot.slane %v7504_v57, %v11196_v40  ;;  %v4895_v15 = vcombine.high %v4885_v22, %v4885_v22 }
 0x1ea   : > { %v7519_v60 = vrot.slane %v7505_v21, %v11196_v40  ;;  %v7522_v41 = vcombine.low %v6942_v31, %v6943_v44  ;;  %v7529_v63 = vrot.slane %v7521_v35, %v11196_v40  ;;  %v4896_v8 = vcombine.high %v4892_v9, %v4892_v9 }
 0x1eb   : > { %v5124_v12 = vrot.slane %v12145_v26, %v11246_v59  ;;  %v5128_v51 = vrot.slane %v4885_v22, %v11246_v59  ;;  %v5132_v30 = vrot.slane %v4893_v2, %v11246_v59  ;;  %v5136_v31 = vrot.slane %v4895_v15, %v11246_v59 }
 0x1ec   : > { %v7520_v45 = vcombine.low %v7512_v43, %v7519_v60  ;;  %v7536_v57 = vrot.slane %v7522_v41, %v11196_v40  ;;  %v5140_v18 = vrot.slane %v4878_v14, %v11246_v59  ;;  %v5144_v5 = vrot.slane %v4892_v9, %v11246_v59  ;;  %v12238_v14 = vpop.f32.mrf.mxu0  ;;  %v12240_v9 = vpop.f32.mrf.mxu1 }
 0x1ed   : > { %v5148_v44 = vrot.slane %v4894_v61, %v11246_v59  ;;  %v5152_v21 = vrot.slane %v4896_v8, %v11246_v59  ;;  %v5274_v26 = vsel %vm5217_vm6, %v13433_v13, %v5124_v12  ;;  %v5275_v22 = vsel %vm5217_vm6, %v13472_v7, %v5128_v51 }
 0x1ee   : > { %v7537_v35 = vcombine.low %v7529_v63, %v7536_v57  ;;  %7696 = vst [vmem:[%s11588_s13 + $0xc0] sm:$0xff] %v7520_v45  ;;  %v13488_v2 = vcombine.high %v13433_v13, %v13433_v13  ;;  %v13489_v61 = vcombine.high %v13472_v7, %v13472_v7  ;;  %v5278_v41 = vsel %vm5217_vm6, %v13468_v11, %v5140_v18 }
 0x1ef   : > { %v5279_v15 = vsel %vm5217_vm6, %v12102_v24, %v5144_v5  ;;  %v13490_v13 = vcombine.high %v13468_v11, %v13468_v11  ;;  %v13491_v8 = vcombine.high %v12102_v24, %v12102_v24  ;;  %v6669_v7 = vmul.f32 %v11215_v16, %v5274_v26 }
 0x1f0   : > { %v5276_v43 = vsel %vm5217_vm6, %v13488_v2, %v5132_v30  ;;  %v5277_v60 = vsel %vm5217_vm6, %v13489_v61, %v5136_v31  ;;  %7697 = vst [vmem:[%s11588_s13 + $0xc8] sm:$0xff] %v7537_v35  ;;  %v6670_v51 = vmul.f32 %v11250_v32, %v5275_v22  ;;  %v6673_v30 = vmul.f32 %v11215_v16, %v5278_v41  ;;  %v12272_v35 = vpop.f32.mrf.mxu1 }
 0x1f1   : > { %v5280_v63 = vsel %vm5217_vm6, %v13490_v13, %v5148_v44  ;;  %v5281_v12 = vsel %vm5217_vm6, %v13491_v8, %v5152_v21  ;;  %v6671_v45 = vmul.f32 %v11220_v3, %v5276_v43  ;;  %v6672_v57 = vmul.f32 %v11258_v50, %v5277_v60  ;;  %v12270_v21 = vpop.f32.mrf.mxu0 }
 0x1f2   : > { %v6674_v11 = vmul.f32 %v11250_v32, %v5279_v15  ;;  %v6675_v31 = vmul.f32 %v11220_v3, %v5280_v63  ;;  %v6676_v18 = vmul.f32 %v11258_v50, %v5281_v12  ;;  %v6824_v24 = vadd.f32 %v11233_v23, %v6669_v7  ;;  %v13493_v50 = vld [vmem:[#allocation36_spill] sm:$0xff] }
 0x1f3   : > { %v6825_v5 = vadd.f32 %v11271_v48, %v6670_v51  ;;  %v6826_v44 = vadd.f32 %v11236_v20, %v6671_v45  ;;  %v6827_v26 = vadd.f32 %v11275_v33, %v6672_v57  ;;  %v6828_v22 = vadd.f32 %v11233_v23, %v6673_v30  ;;  %v13492_v45 = vld [vmem:[#allocation34_spill] sm:$0xff]  ;;  %v12281_v3 = vpop.f32.mrf.mxu0  ;;  %v12283_v30 = vpop.f32.mrf.mxu1  ;;  %v13571_v23 = vld [vmem:[#allocation28_spill] sm:$0xff] }
 0x1f4   : > { %v6829_v2 = vadd.f32 %v11271_v48, %v6674_v11  ;;  %v6830_v43 = vadd.f32 %v11236_v20, %v6675_v31  ;;  %v6831_v61 = vadd.f32 %v11275_v33, %v6676_v18  ;;  %v6952_v60 = vmax.f32 %v6824_v24, 0.0  ;;  %v13494_v20 = vld [vmem:[#allocation35_spill] sm:$0xff]  ;;  %v13495_v18 = vld [vmem:[#allocation37_spill] sm:$0xff] }
 0x1f5   : > { %v6953_v41 = vmax.f32 %v6825_v5, 0.0  ;;  %v6954_v15 = vmax.f32 %v6826_v44, 0.0  ;;  %v6955_v13 = vmax.f32 %v6827_v26, 0.0  ;;  %v6956_v63 = vmax.f32 %v6828_v22, 0.0  ;;  %v13496_v5 = vld [vmem:[#allocation38_spill] sm:$0xff]  ;;  %v13497_v22 = vld [vmem:[#allocation39_spill] sm:$0xff] }
 0x1f6   : > { %v6957_v8 = vmax.f32 %v6829_v2, 0.0  ;;  %v6958_v12 = vmax.f32 %v6830_v43, 0.0  ;;  %v6959_v7 = vmax.f32 %v6831_v61, 0.0  ;;  %v9051_v57 = vadd.f32 %v13493_v50, %v13492_v45  ;;  %v13502_v45 = vld [vmem:[#allocation44_spill] sm:$0xff]  ;;  %v13570_v48 = vld [vmem:[#allocation21_spill] sm:$0xff] }
 0x1f7   : > { %v7572_v51 = vcombine.low %v6952_v60, %v6953_v41  ;;  %v7573_v11 = vcombine.low %v6954_v15, %v6955_v13  ;;  %v9091_v24 = vadd.f32 %v13495_v18, %v13494_v20  ;;  %v9054_v44 = vadd.f32 %v11649_v27, %v13496_v5 }
 0x1f8   : > { %v7589_v31 = vcombine.low %v6956_v63, %v6957_v8  ;;  %v7590_v26 = vcombine.low %v6958_v12, %v6959_v7  ;;  %v9094_v2 = vadd.f32 %v11651_v58, %v13497_v22  ;;  %v9057_v43 = vadd.f32 %v11665_v42, %v11653_v55  ;;  %v12307_v42 = vpop.f32.mrf.mxu0  ;;  %v13499_v63 = vld [vmem:[#allocation42_spill] sm:$0xff]  ;;  %v13500_v12 = vld [vmem:[#allocation41_spill] sm:$0xff]  ;;  %v13501_v7 = vld [vmem:[#allocation43_spill] sm:$0xff] }
 0x1f9   : > { %v9097_v50 = vadd.f32 %v11676_v19, %v11663_v39  ;;  %v7580_v61 = vrot.slane %v7572_v51, %v11196_v40  ;;  %v7587_v60 = vrot.slane %v7573_v11, %v11196_v40  ;;  %v9060_v20 = vadd.f32 %v11691_v6, %v11678_v17  ;;  %v12309_v19 = vpop.f32.mrf.mxu1  ;;  %v13506_v22 = vld [vmem:[#allocation12_spill] sm:$0xff] }
 0x1fa   : > { %v9100_v27 = vadd.f32 %v11709_v0, %v11689_v62  ;;  %v7597_v41 = vrot.slane %v7589_v31, %v11196_v40  ;;  %v7604_v58 = vrot.slane %v7590_v26, %v11196_v40  ;;  %v9063_v55 = vadd.f32 %v11727_v37, %v11711_v10  ;;  %v13498_v0 = vld [vmem:[#allocation40_spill] sm:$0xff]  ;;  %v12325_v18 = vpop.f32.mrf.mxu0  ;;  %v13505_v26 = vld [vmem:[#allocation13_spill] sm:$0xff] }
 0x1fb   : > { %v9103_v39 = vadd.f32 %v11737_v54, %v11725_v46  ;;  %v7588_v15 = vcombine.low %v7580_v61, %v7587_v60  ;;  %v2789_v6 = vadd.f32 %v9091_v24, %v9051_v57  ;;  %v2792_v13 = vadd.f32 %v9094_v2, %v9054_v44  ;;  %v13503_v57 = vld [vmem:[#allocation46_spill] sm:$0xff]  ;;  %v12327_v24 = vpop.f32.mrf.mxu1  ;;  %v13504_v44 = vld [vmem:[#allocation52_spill] sm:$0xff]  ;;  %v13508_v2 = vld [vmem:[#allocation45_spill] sm:$0xff] }
 0x1fc   : > { %v7605_v17 = vcombine.low %v7597_v41, %v7604_v58  ;;  %v2797_v62 = vadd.f32 %v9097_v50, %v9057_v43  ;;  %v9066_v8 = vadd.f32 %v13499_v63, %v13498_v0  ;;  %v9106_v51 = vadd.f32 %v13501_v7, %v13500_v12  ;;  %v13509_v43 = vld [vmem:[#allocation47_spill] sm:$0xff]  ;;  %v13516_v0 = vld [vmem:[#allocation49_spill] sm:$0xff] }
 0x1fd   : > { %7700 = vst [vmem:[%s11588_s13 + $0xe0] sm:$0xff] %v7588_v15  ;;  %v9131_v10 = vadd.f32 %v11824_v53, %v11813_v52  ;;  %v9134_v46 = vadd.f32 %v11865_v29, %v11841_v38  ;;  %v2800_v37 = vadd.f32 %v9100_v27, %v9060_v20  ;;  %v2805_v54 = vadd.f32 %v9103_v39, %v9063_v55  ;;  %v13507_v38 = vld [vmem:[#allocation14_spill] sm:$0xff]  ;;  %v13512_v55 = vld [vmem:[#allocation57_spill] sm:$0xff]  ;;  %v13513_v39 = vld [vmem:[#allocation59_spill] sm:$0xff] }
 0x1fe   : > { %7701 = vst [vmem:[%s11588_s13 + $0xe8] sm:$0xff] %v7605_v17  ;;  %v9069_v11 = vadd.f32 %v13503_v57, %v13502_v45  ;;  %v9137_v31 = vadd.f32 %v11886_v28, %v11877_v4  ;;  %v9171_v52 = vadd.f32 %v13505_v26, %v13504_v44  ;;  %v9174_v29 = vadd.f32 %v13507_v38, %v13506_v22  ;;  %v13510_v4 = vld [vmem:[#allocation53_spill] sm:$0xff]  ;;  %v13511_v28 = vld [vmem:[#allocation55_spill] sm:$0xff]  ;;  %v13514_v17 = vld [vmem:[#allocation48_spill] sm:$0xff] }
 0x1ff   : > { %v3019_v5 = vadd.f32 %v9131_v10, %v2789_v6  ;;  %v3020_v53 = vadd.f32 %v9134_v46, %v2792_v13  ;;  %v9109_v50 = vadd.f32 %v13509_v43, %v13508_v2  ;;  %v9177_v60 = vadd.f32 %v11894_v56, %v11884_v36  ;;  %v13515_v6 = vld [vmem:[#allocation50_spill] sm:$0xff]  ;;  %v13517_v63 = vld [vmem:[#allocation51_spill] sm:$0xff]  ;;  %v12349_v36 = vpop.f32.mrf.mxu0  ;;  %v12351_v56 = vpop.f32.mrf.mxu1  ;;  %v13521_v26 = vld [vmem:[#allocation56_spill] sm:$0xff] }
 0x200   : > { %v3021_v61 = vadd.f32 %v9137_v31, %v2797_v62  ;;  %v9140_v20 = vadd.f32 %v13511_v28, %v13510_v4  ;;  %v2808_v27 = vadd.f32 %v9106_v51, %v9066_v8  ;;  %v9143_v15 = vadd.f32 %v13513_v39, %v13512_v55  ;;  %v13518_v62 = vld [vmem:[#allocation65_spill] sm:$0xff]  ;;  %v13519_v10 = vld [vmem:[#allocation66_spill] sm:$0xff]  ;;  %v13523_v22 = vld [vmem:[#allocation60_spill] sm:$0xff] }
 0x201   : > { %v3227_v41 = vadd.f32 %v9171_v52, %v3019_v5  ;;  %v3228_v58 = vadd.f32 %v9174_v29, %v3020_v53  ;;  %v9072_v13 = vadd.f32 %v13515_v6, %v13514_v17  ;;  %v9112_v12 = vadd.f32 %v13517_v63, %v13516_v0  ;;  %v13520_v44 = vld [vmem:[#allocation54_spill] sm:$0xff]  ;;  %v12370_v55 = vpop.f32.mrf.mxu1  ;;  %v13568_v40 = vld [vmem:[#allocation33_spill] sm:$0xff] }
 0x202   : > { %v3229_v7 = vadd.f32 %v9177_v60, %v3021_v61  ;;  %v12347_v46 = vadd.f32 %v13519_v10, %v13518_v62  ;;  %v3022_v5 = vadd.f32 %v9140_v20, %v2800_v37  ;;  %v9180_v52 = vadd.f32 %v13521_v26, %v13520_v44  ;;  %v13522_v53 = vld [vmem:[#allocation58_spill] sm:$0xff]  ;;  %v13524_v37 = vld [vmem:[#allocation61_spill] sm:$0xff]  ;;  %v13525_v20 = vld [vmem:[#allocation63_spill] sm:$0xff] }
 0x203   : > { %v5290_v8 = vcombine.high %v3227_v41, %v3227_v41  ;;  %v5297_v51 = vrot.slane %v3227_v41, %v11174_v34  ;;  %v5339_v45 = vcombine.high %v3228_v58, %v3228_v58  ;;  %v5346_v57 = vrot.slane %v3228_v58, %v11174_v34  ;;  %v12368_v58 = vpop.f32.mrf.mxu0 }
 0x204   : > { %v5388_v31 = vcombine.high %v3229_v7, %v3229_v7  ;;  %v9183_v38 = vadd.f32 %v13523_v22, %v13522_v53  ;;  %v3023_v61 = vadd.f32 %v9143_v15, %v2805_v54  ;;  %v5395_v4 = vrot.slane %v3229_v7, %v11174_v34  ;;  %v12392_v53 = vpop.f32.mrf.mxu1 }
 0x205   : > { %v5304_v29 = vrot.slane %v5290_v8, %v11174_v34  ;;  %v5305_v2 = vcombine.high %v5297_v51, %v5297_v51  ;;  %v5353_v43 = vrot.slane %v5339_v45, %v11174_v34  ;;  %v12362_v60 = vrot.slane %v5297_v51, %v11174_v34  ;;  %v13528_v51 = vld [vmem:[#allocation62_spill] sm:$0xff]  ;;  %v13529_v45 = vld [vmem:[#allocation64_spill] sm:$0xff] }
 0x206   : > { %v5402_v28 = vrot.slane %v5388_v31, %v11174_v34  ;;  %v9146_v41 = vadd.f32 %v13525_v20, %v13524_v37  ;;  %v5354_v6 = vcombine.high %v5346_v57, %v5346_v57  ;;  %v12376_v54 = vrot.slane %v5346_v57, %v11174_v34 }
 0x207   : > { %v5306_v39 = vcombine.high %v5304_v29, %v5304_v29  ;;  %v12373_v17 = vrot.slane %v5304_v29, %v11174_v34  ;;  %v2813_v15 = vadd.f32 %v9109_v50, %v9069_v11  ;;  %v12379_v0 = vrot.slane %v5305_v2, %v11174_v34  ;;  %v12390_v50 = vpop.f32.mrf.mxu0 }
 0x208   : > { %13526 = vst [vmem:[#allocation24_spill] sm:$0xff] %v12376_v54  ;;  %v5355_v63 = vcombine.high %v5353_v43, %v5353_v43  ;;  %v3230_v7 = vadd.f32 %v9180_v52, %v3022_v5  ;;  %v12381_v62 = vadd.f32 %v9112_v12, %v9072_v13  ;;  %v12384_v10 = vrot.slane %v5353_v43, %v11174_v34  ;;  %v13537_v12 = vld [vmem:[#allocation67_spill] sm:$0xff] }
 0x209   : > { %v3231_v8 = vadd.f32 %v9183_v38, %v3023_v61  ;;  %v9186_v31 = vadd.f32 %v13529_v45, %v13528_v51  ;;  %v5403_v57 = vcombine.high %v5395_v4, %v5395_v4  ;;  %v5404_v26 = vcombine.high %v5402_v28, %v5402_v28 }
 0x20a   : > { %13527 = vst [vmem:[#allocation34_spill] sm:$0xff] %v12384_v10  ;;  %v3024_v11 = vadd.f32 %v9146_v41, %v2808_v27  ;;  %v12395_v13 = vrot.slane %v5306_v39, %v11174_v34  ;;  %v12400_v5 = vrot.slane %v5354_v6, %v11174_v34  ;;  %v12407_v27 = vrot.slane %v5355_v63, %v11174_v34  ;;  %v12426_v63 = vpop.f32.mrf.mxu0 }
 0x20b   : > { %v5437_v38 = vcombine.high %v3230_v7, %v3230_v7  ;;  %v5444_v29 = vrot.slane %v3230_v7, %v11174_v34  ;;  %v12413_v43 = vrot.slane %v5395_v4, %v11174_v34  ;;  %v12416_v61 = vrot.slane %v5402_v28, %v11174_v34  ;;  %v12428_v7 = vpop.f32.mrf.mxu1 }
 0x20c   : > { %13530 = vst [vmem:[#allocation36_spill] sm:$0xff] %v12400_v5  ;;  %13531 = vst [vmem:[#allocation35_spill] sm:$0xff] %v12407_v27  ;;  %v5486_v37 = vcombine.high %v3231_v8, %v3231_v8  ;;  %v12419_v20 = vrot.slane %v5403_v57, %v11174_v34  ;;  %v12422_v41 = vrot.slane %v5404_v26, %v11174_v34  ;;  %v13538_v26 = vld [vmem:[#allocation29_spill] sm:$0xff]  ;;  %v12449_v44 = vpop.f32.mrf.mxu0 }
 0x20d   : > { %13532 = vst [vmem:[#allocation37_spill] sm:$0xff] %v12413_v43  ;;  %13533 = vst [vmem:[#allocation38_spill] sm:$0xff] %v12416_v61  ;;  %v5451_v39 = vrot.slane %v5437_v38, %v11174_v34  ;;  %v5493_v6 = vrot.slane %v3231_v8, %v11174_v34  ;;  %v5452_v4 = vcombine.high %v5444_v29, %v5444_v29  ;;  %v12451_v8 = vpop.f32.mrf.mxu1  ;;  %v13548_v43 = vld [vmem:[#allocation68_spill] sm:$0xff]  ;;  %v13564_v5 = vld [vmem:[#allocation73_spill] sm:$0xff] }
 0x20e   : > { %13534 = vst [vmem:[#allocation39_spill] sm:$0xff] %v12419_v20  ;;  %13535 = vst [vmem:[#allocation40_spill] sm:$0xff] %v12422_v41  ;;  %v12431_v51 = vrot.slane %v5444_v29, %v11174_v34  ;;  %v5500_v28 = vrot.slane %v5486_v37, %v11174_v34  ;;  %v3232_v45 = vadd.f32 %v9186_v31, %v3024_v11  ;;  %v13546_v41 = vld [vmem:[#allocation31_spill] sm:$0xff] }
 0x20f   : > { %v3025_v38 = vadd.f32 %v12347_v46, %v2813_v15  ;;  %v5453_v52 = vcombine.high %v5451_v39, %v5451_v39  ;;  %v5501_v37 = vcombine.high %v5493_v6, %v5493_v6  ;;  %v9189_v22 = vadd.f32 %v13538_v26, %v13537_v12  ;;  %v13545_v46 = vld [vmem:[#allocation26_spill] sm:$0xff] }
 0x210   : > { %13536 = vst [vmem:[#allocation42_spill] sm:$0xff] %v12431_v51  ;;  %v5502_v11 = vcombine.high %v5500_v28, %v5500_v28  ;;  %v5535_v57 = vcombine.high %v3232_v45, %v3232_v45  ;;  %v12456_v15 = vrot.slane %v5451_v39, %v11174_v34  ;;  %v12459_v29 = vrot.slane %v5452_v4, %v11174_v34 }
 0x211   : > { %v12464_v2 = vrot.slane %v5493_v6, %v11174_v34  ;;  %v5542_v12 = vrot.slane %v3232_v45, %v11174_v34  ;;  %v3233_v61 = vadd.f32 %v9189_v22, %v3025_v38  ;;  %v12469_v20 = vrot.slane %v5453_v52, %v11174_v34  ;;  %v12484_v38 = vpop.f32.mrf.mxu0  ;;  %v12486_v52 = vpop.f32.mrf.mxu1 }
 0x212   : > { %13539 = vst [vmem:[#allocation41_spill] sm:$0xff] %v12456_v15  ;;  %13540 = vst [vmem:[#allocation43_spill] sm:$0xff] %v12459_v29  ;;  %v5549_v26 = vrot.slane %v5535_v57, %v11174_v34  ;;  %v12472_v39 = vrot.slane %v5500_v28, %v11174_v34  ;;  %v12475_v4 = vrot.slane %v5501_v37, %v11174_v34  ;;  %v13549_v57 = vld [vmem:[#allocation70_spill] sm:$0xff]  ;;  %v13562_v15 = vld [vmem:[#allocation72_spill] sm:$0xff] }
 0x213   : > { %13541 = vst [vmem:[#allocation44_spill] sm:$0xff] %v12464_v2  ;;  %13542 = vst [vmem:[#allocation46_spill] sm:$0xff] %v12469_v20  ;;  %v9152_v31 = vadd.f32 %v13546_v41, %v13545_v46  ;;  %v12480_v6 = vrot.slane %v5502_v11, %v11174_v34  ;;  %v5550_v51 = vcombine.high %v5542_v12, %v5542_v12  ;;  %v9341_v11 = vpop.f32.mrf.mxu1 }
 0x214   : > { %13543 = vst [vmem:[#allocation52_spill] sm:$0xff] %v12472_v39  ;;  %13544 = vst [vmem:[#allocation13_spill] sm:$0xff] %v12475_v4  ;;  %v5551_v45 = vcombine.high %v5549_v26, %v5549_v26  ;;  %v9192_v22 = vadd.f32 %v13549_v57, %v13548_v43  ;;  %v12489_v28 = vrot.slane %v5542_v12, %v11174_v34  ;;  %v13558_v39 = vld [vmem:[#allocation17_spill] sm:$0xff]  ;;  %v13559_v4 = vld [vmem:[#allocation20_spill] sm:$0xff] }
 0x215   : > { %13547 = vst [vmem:[#allocation12_spill] sm:$0xff] %v12480_v6  ;;  %v5584_v37 = vcombine.high %v3233_v61, %v3233_v61  ;;  %v5591_v27 = vrot.slane %v3233_v61, %v11174_v34  ;;  %v3026_v41 = vadd.f32 %v9152_v31, %v12381_v62  ;;  %v12500_v57 = vrot.slane %v5549_v26, %v11174_v34  ;;  %v13565_v6 = vld [vmem:[#allocation32_spill] sm:$0xff] }
 0x216   : > { %13550 = vst [vmem:[#allocation14_spill] sm:$0xff] %v12489_v28  ;;  %v12503_v12 = vrot.slane %v5550_v51, %v11174_v34  ;;  %v12506_v10 = vrot.slane %v5551_v45, %v11174_v34  ;;  %v9301_v51 = vpop.f32.mrf.mxu0  ;;  %v9251_v26 = vadd.f32 %v13559_v4, %v13558_v39  ;;  %v13563_v39 = vld [vmem:[#allocation30_spill] sm:$0xff]  ;;  %v9342_v45 = vpop.f32.mrf.mxu1 }
 0x217   : > { %13551 = vst [vmem:[#allocation45_spill] sm:$0xff] %v12500_v57  ;;  %v5598_v62 = vrot.slane %v5584_v37, %v11174_v34  ;;  %v3234_v61 = vadd.f32 %v9192_v22, %v3026_v41  ;;  %v5599_v2 = vcombine.high %v5591_v27, %v5591_v27  ;;  %v12520_v22 = vrot.slane %v5591_v27, %v11174_v34  ;;  %v13555_v37 = vld [vmem:[#allocation69_spill] sm:$0xff]  ;;  %v13556_v41 = vld [vmem:[#allocation16_spill] sm:$0xff]  ;;  %v13566_v27 = vld [vmem:[#allocation15_spill] sm:$0xff] }
 0x218   : > { %13552 = vst [vmem:[#allocation47_spill] sm:$0xff] %v12503_v12  ;;  %13553 = vst [vmem:[#allocation53_spill] sm:$0xff] %v12506_v10  ;;  %v9211_v31 = vadd.f32 %v13556_v41, %v13555_v37  ;;  %v13561_v41 = vld [vmem:[#allocation71_spill] sm:$0xff]  ;;  %v9254_v4 = vadd.f32 %v13563_v39, %v13562_v15  ;;  %v9217_v57 = vadd.f32 %v13565_v6, %v13564_v5  ;;  %v9302_v54 = vpop.f32.mrf.mxu0  ;;  %v9344_v6 = vpop.f32.mrf.mxu1 }
 0x219   : > { %13554 = vst [vmem:[#allocation55_spill] sm:$0xff] %v12520_v22  ;;  %v5600_v20 = vcombine.high %v5598_v62, %v5598_v62  ;;  %v12525_v46 = vrot.slane %v5598_v62, %v11174_v34  ;;  %v5633_v43 = vcombine.high %v3234_v61, %v3234_v61  ;;  %v12536_v28 = vrot.slane %v3234_v61, %v11174_v34  ;;  %v13560_v62 = vld [vmem:[#allocation18_spill] sm:$0xff]  ;;  %v13567_v61 = vld [vmem:[#allocation25_spill] sm:$0xff]  ;;  %v13575_v39 = vld [vmem:[#allocation19_spill] sm:$0xff] }
 0x21a   : > { %v9214_v29 = vadd.f32 %v13561_v41, %v13560_v62  ;;  %v12548_v12 = vrot.slane %v5599_v2, %v11174_v34  ;;  %v9257_v10 = vadd.f32 %v13567_v61, %v13566_v27  ;;  %v9260_v62 = vadd.f32 %v13571_v23, %v13570_v48  ;;  %v13576_v48 = vld [vmem:[#allocation75_spill] sm:$0xff] }
 0x21b   : > { %13557 = vst [vmem:[#allocation57_spill] sm:$0xff] %v12525_v46  ;;  %v12539_v37 = vrot.slane %v5633_v43, %v11174_v34  ;;  %v13569_v43 = vld [vmem:[#allocation27_spill] sm:$0xff]  ;;  %v12557_v41 = vrot.slane %v5600_v20, %v11174_v34  ;;  %v3593_v2 = vadd.f32 %v9251_v26, %v9211_v31  ;;  %v12567_v27 = vrot.slane %v12536_v28, %v11174_v34  ;;  %v13577_v20 = vld [vmem:[#allocation76_spill] sm:$0xff]  ;;  %v9304_v26 = vpop.f32.mrf.mxu0 }
 0x21c   : > { %v9220_v33 = vadd.f32 %v13569_v43, %v13568_v40  ;;  %v13574_v40 = vld [vmem:[#allocation74_spill] sm:$0xff]  ;;  %v9263_v61 = vadd.f32 %v13577_v20, %v13576_v48  ;;  %v3596_v5 = vadd.f32 %v9254_v4, %v9214_v29  ;;  %v3601_v22 = vadd.f32 %v9257_v10, %v9217_v57  ;;  %v13578_v15 = vld [vmem:[#allocation23_spill] sm:$0xff] }
 0x21d   : > { %13572 = vst [vmem:[#allocation59_spill] sm:$0xff] %v12557_v41  ;;  %13573 = vst [vmem:[#allocation48_spill] sm:$0xff] %v12567_v27  ;;  %v9223_v23 = vadd.f32 %v13575_v39, %v13574_v40  ;;  %v5649_v43 = vcombine.high %v12539_v37, %v12539_v37  ;;  %v9226_v31 = vadd.f32 %v12203_v49, %v13578_v15  ;;  %v13579_v41 = vld [vmem:[#allocation22_spill] sm:$0xff] }
 0x21e   : > { %v3604_v46 = vadd.f32 %v9260_v62, %v9220_v33  ;;  %v9266_v27 = vadd.f32 %v12205_v25, %v13579_v41  ;;  %v9229_v40 = vadd.f32 %v12238_v14, %v12214_v47  ;;  %v9269_v39 = vadd.f32 %v12240_v9, %v12216_v1 }
 0x21f   : > { %v3609_v48 = vadd.f32 %v9263_v61, %v9223_v23  ;;  %v9232_v29 = vadd.f32 %v12281_v3, %v12270_v21  ;;  %v9272_v10 = vadd.f32 %v12283_v30, %v12272_v35  ;;  %v9291_v49 = vadd.f32 %v12325_v18, %v12307_v42  ;;  %v9305_v21 = vpop.f32.mrf.mxu0  ;;  %v9345_v35 = vpop.f32.mrf.mxu1 }
 0x220   : > { %v3612_v33 = vadd.f32 %v9266_v27, %v9226_v31  ;;  %v12589_v57 = vadd.f32 %v9269_v39, %v9229_v40  ;;  %v9331_v25 = vadd.f32 %v12327_v24, %v12309_v19  ;;  %v9294_v47 = vadd.f32 %v12368_v58, %v12349_v36 }
 0x221   : > { %v12595_v1 = vadd.f32 %v9272_v10, %v9232_v29  ;;  %v3817_v14 = vadd.f32 %v9291_v49, %v3593_v2  ;;  %v9334_v3 = vadd.f32 %v12370_v55, %v12351_v56  ;;  %v9297_v9 = vadd.f32 %v12426_v63, %v12390_v50 }
 0x222   : > { %v3818_v30 = vadd.f32 %v9294_v47, %v3596_v5  ;;  %v9337_v42 = vadd.f32 %v12428_v7, %v12392_v53  ;;  %v9300_v19 = vadd.f32 %v12484_v38, %v12449_v44  ;;  %v9340_v18 = vadd.f32 %v12486_v52, %v12451_v8 }
 0x223   : > { %v4025_v24 = vadd.f32 %v9331_v25, %v3817_v14  ;;  %v3819_v36 = vadd.f32 %v9297_v9, %v3601_v22  ;;  %v9303_v58 = vadd.f32 %v9302_v54, %v9301_v51  ;;  %v12607_v4 = vadd.f32 %v9342_v45, %v9341_v11 }
 0x224   : > { %v4026_v56 = vadd.f32 %v9334_v3, %v3818_v30  ;;  %v3820_v55 = vadd.f32 %v9300_v19, %v3604_v46  ;;  %v9306_v50 = vadd.f32 %v9305_v21, %v9304_v26  ;;  %v12609_v63 = vadd.f32 %v9345_v35, %v9344_v6 }
 0x225   : > { %v5754_v62 = vcombine.high %v4025_v24, %v4025_v24  ;;  %v5761_v41 = vrot.slane %v4025_v24, %v11174_v34  ;;  %v12612_v53 = vadd.f32 %v9337_v42, %v3819_v36  ;;  %v12614_v7 = vadd.f32 %v9303_v58, %v3609_v48 }
 0x226   : > { %v5803_v44 = vcombine.high %v4026_v56, %v4026_v56  ;;  %v5810_v8 = vrot.slane %v4026_v56, %v11174_v34  ;;  %v12617_v38 = vadd.f32 %v9340_v18, %v3820_v55  ;;  %v12619_v54 = vadd.f32 %v9306_v50, %v3612_v33  ;;  %v13583_v50 = vld [vmem:[#allocation6_spill] sm:$0xff] }
 0x227   : > { %v5768_v52 = vrot.slane %v5754_v62, %v11174_v34  ;;  %v5769_v11 = vcombine.high %v5761_v41, %v5761_v41  ;;  %v5777_v46 = vrot.slane %v5761_v41, %v11174_v34  ;;  %v5852_v51 = vcombine.high %v12612_v53, %v12612_v53  ;;  %v13584_v41 = vld [vmem:[#allocation9_spill] sm:$0xff] }
 0x228   : > { %v5817_v45 = vrot.slane %v5803_v44, %v11174_v34  ;;  %v5818_v22 = vcombine.high %v5810_v8, %v5810_v8  ;;  %v12627_v5 = vrot.slane %v5810_v8, %v11174_v34  ;;  %v12631_v15 = vrot.slane %v12612_v53, %v11174_v34 }
 0x229   : > { %v5770_v2 = vcombine.high %v5768_v52, %v5768_v52  ;;  %v5784_v6 = vrot.slane %v5768_v52, %v11174_v34  ;;  %v5791_v27 = vrot.slane %v5769_v11, %v11174_v34  ;;  %v5799_v23 = vcombine.high %v5777_v46, %v5777_v46 }
 0x22a   : > { %v6149_v20 = vrot.slane %v5777_v46, %v11246_v59  ;;  %v5819_v61 = vcombine.high %v5817_v45, %v5817_v45  ;;  %v12637_v31 = vrot.slane %v5817_v45, %v11174_v34  ;;  %v12640_v26 = vrot.slane %v5818_v22, %v11174_v34 }
 0x22b   : > { %v5798_v40 = vrot.slane %v5770_v2, %v11174_v34  ;;  %v5800_v39 = vcombine.high %v5784_v6, %v5784_v6  ;;  %v5801_v48 = vcombine.high %v5791_v27, %v5791_v27  ;;  %v6153_v29 = vrot.slane %v5791_v27, %v11246_v59  ;;  %v13587_v2 = vld [vmem:[#allocation10_spill] sm:$0xff]  ;;  %v13588_v27 = vld [vmem:[#allocation8_spill] sm:$0xff] }
 0x22c   : > { %v6157_v10 = vrot.slane %v5799_v23, %v11246_v59  ;;  %v6165_v49 = vrot.slane %v5784_v6, %v11246_v59  ;;  %v6466_v33 = vsel %vm5217_vm6, %v12362_v60, %v6149_v20  ;;  %v12649_v25 = vrot.slane %v5819_v61, %v11174_v34  ;;  %v13589_v20 = vld [vmem:[#allocation11_spill] sm:$0xff] }
 0x22d   : > { %v5802_v47 = vcombine.high %v5798_v40, %v5798_v40  ;;  %v6161_v14 = vrot.slane %v5801_v48, %v11246_v59  ;;  %v6169_v3 = vrot.slane %v5798_v40, %v11246_v59  ;;  %v6173_v9 = vrot.slane %v5800_v39, %v11246_v59 }
 0x22e   : > { %v6467_v21 = vsel %vm5217_vm6, %v12379_v0, %v6153_v29  ;;  %v13580_v35 = vcombine.high %v12362_v60, %v12362_v60  ;;  %v6470_v42 = vsel %vm5217_vm6, %v12373_v17, %v6165_v49  ;;  %v6565_v19 = vmul.f32 %v11215_v16, %v6466_v33 }
 0x22f   : > { %v6177_v18 = vrot.slane %v5802_v47, %v11246_v59  ;;  %v13581_v24 = vcombine.high %v12379_v0, %v12379_v0  ;;  %v6471_v58 = vsel %vm5217_vm6, %v12395_v13, %v6169_v3  ;;  %v13582_v60 = vcombine.high %v12373_v17, %v12373_v17  ;;  %v13586_v17 = vld [vmem:[#allocation7_spill] sm:$0xff] }
 0x230   : > { %v6468_v30 = vsel %vm5217_vm6, %v13580_v35, %v6157_v10  ;;  %v6566_v55 = vmul.f32 %v11250_v32, %v6467_v21  ;;  %v6569_v8 = vmul.f32 %v11215_v16, %v6470_v42  ;;  %v13585_v0 = vcombine.high %v12395_v13, %v12395_v13 }
 0x231   : > { %v6469_v36 = vsel %vm5217_vm6, %v13581_v24, %v6161_v14  ;;  %v6472_v56 = vsel %vm5217_vm6, %v13582_v60, %v6173_v9  ;;  %v6567_v62 = vmul.f32 %v13583_v50, %v6468_v30  ;;  %v6570_v11 = vmul.f32 %v11250_v32, %v6471_v58  ;;  %v13590_v58 = vld [vmem:[#allocation5_spill] sm:$0xff] }
 0x232   : > { %v6568_v44 = vmul.f32 %v13584_v41, %v6469_v36  ;;  %v6473_v52 = vsel %vm5217_vm6, %v13585_v0, %v6177_v18  ;;  %v6571_v46 = vmul.f32 %v13583_v50, %v6472_v56  ;;  %v6720_v45 = vadd.f32 %v13586_v17, %v6565_v19 }
 0x233   : > { %v6572_v22 = vmul.f32 %v13584_v41, %v6473_v52  ;;  %v6721_v6 = vadd.f32 %v13587_v2, %v6566_v55  ;;  %v6722_v23 = vadd.f32 %v13588_v27, %v6567_v62  ;;  %v6724_v40 = vadd.f32 %v13586_v17, %v6569_v8 }
 0x234   : > { %v6723_v61 = vadd.f32 %v13589_v20, %v6568_v44  ;;  %v6725_v13 = vadd.f32 %v13587_v2, %v6570_v11  ;;  %v6726_v39 = vadd.f32 %v13588_v27, %v6571_v46  ;;  %v6848_v48 = vmax.f32 %v6720_v45, 0.0 }
 0x235   : > { %v6727_v29 = vadd.f32 %v13589_v20, %v6572_v22  ;;  %v6849_v10 = vmax.f32 %v6721_v6, 0.0  ;;  %v6850_v49 = vmax.f32 %v6722_v23, 0.0  ;;  %v6852_v47 = vmax.f32 %v6724_v40, 0.0  ;;  %v13591_v22 = vld [vmem:[#allocation24_spill] sm:$0xff] }
 0x236   : > { %v6851_v33 = vmax.f32 %v6723_v61, 0.0  ;;  %v6853_v14 = vmax.f32 %v6725_v13, 0.0  ;;  %v6854_v3 = vmax.f32 %v6726_v39, 0.0  ;;  %v5848_v9 = vcombine.high %v12627_v5, %v12627_v5  ;;  %v13592_v23 = vld [vmem:[#allocation36_spill] sm:$0xff] }
 0x237   : > { %v6855_v21 = vmax.f32 %v6727_v29, 0.0  ;;  %v7130_v35 = vcombine.low %v6848_v48, %v6849_v10  ;;  %v5849_v42 = vcombine.high %v12637_v31, %v12637_v31  ;;  %v5850_v18 = vcombine.high %v12640_v26, %v12640_v26  ;;  %v13595_v48 = vld [vmem:[#allocation34_spill] sm:$0xff]  ;;  %v13596_v10 = vld [vmem:[#allocation35_spill] sm:$0xff] }
 0x238   : > { %v7131_v30 = vcombine.low %v6850_v49, %v6851_v33  ;;  %v7147_v19 = vcombine.low %v6852_v47, %v6853_v14  ;;  %v5851_v24 = vcombine.high %v12649_v25, %v12649_v25  ;;  %v6181_v36 = vrot.slane %v12627_v5, %v11246_v59 }
 0x239   : > { %v7138_v60 = vrot.slane %v7130_v35, %v13590_v58  ;;  %v7148_v55 = vcombine.low %v6854_v3, %v6855_v21  ;;  %v6185_v62 = vrot.slane %v12640_v26, %v11246_v59  ;;  %v6189_v8 = vrot.slane %v5848_v9, %v11246_v59 }
 0x23a   : > { %v7145_v56 = vrot.slane %v7131_v30, %v13590_v58  ;;  %v7155_v44 = vrot.slane %v7147_v19, %v13590_v58  ;;  %v6193_v0 = vrot.slane %v5850_v18, %v11246_v59  ;;  %v6197_v52 = vrot.slane %v12637_v31, %v11246_v59 }
 0x23b   : > { %v7162_v5 = vrot.slane %v7148_v55, %v13590_v58  ;;  %v6201_v46 = vrot.slane %v12649_v25, %v11246_v59  ;;  %v6205_v45 = vrot.slane %v5849_v42, %v11246_v59  ;;  %v6209_v26 = vrot.slane %v5851_v24, %v11246_v59 }
 0x23c   : > { %v7146_v11 = vcombine.low %v7138_v60, %v7145_v56  ;;  %v6474_v6 = vsel %vm5217_vm6, %v13591_v22, %v6181_v36  ;;  %v6475_v61 = vsel %vm5217_vm6, %v13592_v23, %v6185_v62  ;;  %v13593_v31 = vcombine.high %v13591_v22, %v13591_v22 }
 0x23d   : > { %v7163_v13 = vcombine.low %v7155_v44, %v7162_v5  ;;  %v13594_v25 = vcombine.high %v13592_v23, %v13592_v23  ;;  %v6478_v29 = vsel %vm5217_vm6, %v13595_v48, %v6197_v52  ;;  %v6479_v49 = vsel %vm5217_vm6, %v13596_v10, %v6201_v46 }
 0x23e   : > { %v6476_v40 = vsel %vm5217_vm6, %v13593_v31, %v6189_v8  ;;  %7674 = vst [vmem:[%s11588_s13 + $0x10] sm:$0xff] %v7146_v11  ;;  %v13597_v33 = vcombine.high %v13595_v48, %v13595_v48  ;;  %v13598_v14 = vcombine.high %v13596_v10, %v13596_v10  ;;  %v6581_v9 = vmul.f32 %v11215_v16, %v6474_v6 }
 0x23f   : > { %v6477_v39 = vsel %vm5217_vm6, %v13594_v25, %v6193_v0  ;;  %v6582_v21 = vmul.f32 %v11250_v32, %v6475_v61  ;;  %7675 = vst [vmem:[%s11588_s13 + $0x18] sm:$0xff] %v7163_v13  ;;  %v6583_v35 = vmul.f32 %v13583_v50, %v6476_v40  ;;  %v6585_v42 = vmul.f32 %v11215_v16, %v6478_v29 }
 0x240   : > { %v6480_v47 = vsel %vm5217_vm6, %v13597_v33, %v6205_v45  ;;  %v6481_v3 = vsel %vm5217_vm6, %v13598_v14, %v6209_v26  ;;  %v6584_v30 = vmul.f32 %v13584_v41, %v6477_v39  ;;  %v6586_v19 = vmul.f32 %v11250_v32, %v6479_v49 }
 0x241   : > { %v6587_v18 = vmul.f32 %v13583_v50, %v6480_v47  ;;  %v6588_v24 = vmul.f32 %v13584_v41, %v6481_v3  ;;  %v6736_v36 = vadd.f32 %v13586_v17, %v6581_v9  ;;  %v6737_v60 = vadd.f32 %v13587_v2, %v6582_v21 }
 0x242   : > { %v6738_v56 = vadd.f32 %v13588_v27, %v6583_v35  ;;  %v6739_v55 = vadd.f32 %v13589_v20, %v6584_v30  ;;  %v6740_v62 = vadd.f32 %v13586_v17, %v6585_v42  ;;  %v6741_v44 = vadd.f32 %v13587_v2, %v6586_v19 }
 0x243   : > { %v6742_v8 = vadd.f32 %v13588_v27, %v6587_v18  ;;  %v6743_v0 = vadd.f32 %v13589_v20, %v6588_v24  ;;  %v6864_v52 = vmax.f32 %v6736_v36, 0.0  ;;  %v6865_v11 = vmax.f32 %v6737_v60, 0.0 }
 0x244   : > { %v6866_v5 = vmax.f32 %v6738_v56, 0.0  ;;  %v6867_v46 = vmax.f32 %v6739_v55, 0.0  ;;  %v6868_v45 = vmax.f32 %v6740_v62, 0.0  ;;  %v6869_v26 = vmax.f32 %v6741_v44, 0.0  ;;  %v13599_v56 = vld [vmem:[#allocation37_spill] sm:$0xff]  ;;  %v13600_v62 = vld [vmem:[#allocation39_spill] sm:$0xff] }
 0x245   : > { %v6870_v22 = vmax.f32 %v6742_v8, 0.0  ;;  %v6871_v6 = vmax.f32 %v6743_v0, 0.0  ;;  %v7198_v23 = vcombine.low %v6864_v52, %v6865_v11  ;;  %v5866_v61 = vrot.slane %v5852_v51, %v11174_v34  ;;  %v13602_v11 = vld [vmem:[#allocation38_spill] sm:$0xff] }
 0x246   : > { %v7199_v31 = vcombine.low %v6866_v5, %v6867_v46  ;;  %v7215_v40 = vcombine.low %v6868_v45, %v6869_v26  ;;  %v5867_v13 = vcombine.high %v12631_v15, %v12631_v15  ;;  %v5875_v25 = vrot.slane %v12631_v15, %v11174_v34  ;;  %v13603_v46 = vld [vmem:[#allocation40_spill] sm:$0xff] }
 0x247   : > { %v7206_v39 = vrot.slane %v7198_v23, %v13590_v58  ;;  %v7216_v48 = vcombine.low %v6870_v22, %v6871_v6  ;;  %v5868_v29 = vcombine.high %v5866_v61, %v5866_v61  ;;  %v5882_v10 = vrot.slane %v5866_v61, %v11174_v34 }
 0x248   : > { %v7213_v49 = vrot.slane %v7199_v31, %v13590_v58  ;;  %v7223_v53 = vrot.slane %v7215_v40, %v13590_v58  ;;  %v5889_v51 = vrot.slane %v5867_v13, %v11174_v34  ;;  %v5897_v33 = vcombine.high %v5875_v25, %v5875_v25 }
 0x249   : > { %v7230_v47 = vrot.slane %v7216_v48, %v13590_v58  ;;  %v5896_v14 = vrot.slane %v5868_v29, %v11174_v34  ;;  %v5898_v15 = vcombine.high %v5882_v10, %v5882_v10  ;;  %v6213_v3 = vrot.slane %v5875_v25, %v11246_v59 }
 0x24a   : > { %v7214_v9 = vcombine.low %v7206_v39, %v7213_v49  ;;  %v5899_v21 = vcombine.high %v5889_v51, %v5889_v51  ;;  %v6217_v35 = vrot.slane %v5889_v51, %v11246_v59  ;;  %v6221_v30 = vrot.slane %v5897_v33, %v11246_v59 }
 0x24b   : > { %v7231_v42 = vcombine.low %v7223_v53, %v7230_v47  ;;  %v5900_v19 = vcombine.high %v5896_v14, %v5896_v14  ;;  %v6229_v18 = vrot.slane %v5882_v10, %v11246_v59  ;;  %v6233_v24 = vrot.slane %v5896_v14, %v11246_v59 }
 0x24c   : > { %7678 = vst [vmem:[%s11588_s13 + $0x30] sm:$0xff] %v7214_v9  ;;  %v6225_v36 = vrot.slane %v5899_v21, %v11246_v59  ;;  %v6237_v60 = vrot.slane %v5898_v15, %v11246_v59  ;;  %v6482_v55 = vsel %vm5217_vm6, %v13599_v56, %v6213_v3  ;;  %v6483_v44 = vsel %vm5217_vm6, %v13600_v62, %v6217_v35 }
 0x24d   : > { %7679 = vst [vmem:[%s11588_s13 + $0x38] sm:$0xff] %v7231_v42  ;;  %v6241_v8 = vrot.slane %v5900_v19, %v11246_v59  ;;  %v13601_v0 = vcombine.high %v13599_v56, %v13599_v56  ;;  %v6486_v5 = vsel %vm5217_vm6, %v13602_v11, %v6229_v18  ;;  %v6487_v45 = vsel %vm5217_vm6, %v13603_v46, %v6233_v24 }
 0x24e   : > { %v13604_v26 = vcombine.high %v13600_v62, %v13600_v62  ;;  %v13605_v6 = vcombine.high %v13602_v11, %v13602_v11  ;;  %v6597_v61 = vmul.f32 %v11215_v16, %v6482_v55  ;;  %v6598_v31 = vmul.f32 %v11250_v32, %v6483_v44 }
 0x24f   : > { %v6484_v52 = vsel %vm5217_vm6, %v13601_v0, %v6221_v30  ;;  %v13606_v40 = vcombine.high %v13603_v46, %v13603_v46  ;;  %v6601_v48 = vmul.f32 %v11215_v16, %v6486_v5  ;;  %v6602_v29 = vmul.f32 %v11250_v32, %v6487_v45 }
 0x250   : > { %v6485_v22 = vsel %vm5217_vm6, %v13604_v26, %v6225_v36  ;;  %v6488_v23 = vsel %vm5217_vm6, %v13605_v6, %v6237_v60  ;;  %v6599_v25 = vmul.f32 %v13583_v50, %v6484_v52  ;;  %v6752_v53 = vadd.f32 %v13586_v17, %v6597_v61 }
 0x251   : > { %v6489_v13 = vsel %vm5217_vm6, %v13606_v40, %v6241_v8  ;;  %v6600_v39 = vmul.f32 %v13584_v41, %v6485_v22  ;;  %v6603_v10 = vmul.f32 %v13583_v50, %v6488_v23  ;;  %v6753_v51 = vadd.f32 %v13587_v2, %v6598_v31 }
 0x252   : > { %v6604_v49 = vmul.f32 %v13584_v41, %v6489_v13  ;;  %v6754_v33 = vadd.f32 %v13588_v27, %v6599_v25  ;;  %v6756_v14 = vadd.f32 %v13586_v17, %v6601_v48  ;;  %v6757_v15 = vadd.f32 %v13587_v2, %v6602_v29  ;;  %v13607_v29 = vld [vmem:[#allocation42_spill] sm:$0xff] }
 0x253   : > { %v6755_v47 = vadd.f32 %v13589_v20, %v6600_v39  ;;  %v6758_v3 = vadd.f32 %v13588_v27, %v6603_v10  ;;  %v6880_v21 = vmax.f32 %v6752_v53, 0.0  ;;  %v6881_v35 = vmax.f32 %v6753_v51, 0.0 }
 0x254   : > { %v6759_v9 = vadd.f32 %v13589_v20, %v6604_v49  ;;  %v6882_v30 = vmax.f32 %v6754_v33, 0.0  ;;  %v6884_v19 = vmax.f32 %v6756_v14, 0.0  ;;  %v6885_v18 = vmax.f32 %v6757_v15, 0.0  ;;  %v13608_v33 = vld [vmem:[#allocation41_spill] sm:$0xff]  ;;  %v13609_v15 = vld [vmem:[#allocation43_spill] sm:$0xff] }
 0x255   : > { %v6883_v42 = vmax.f32 %v6755_v47, 0.0  ;;  %v6886_v24 = vmax.f32 %v6758_v3, 0.0  ;;  %v5901_v60 = vcombine.high %v12617_v38, %v12617_v38  ;;  %v7266_v56 = vcombine.low %v6880_v21, %v6881_v35 }
 0x256   : > { %v6887_v36 = vmax.f32 %v6759_v9, 0.0  ;;  %v5908_v62 = vrot.slane %v12617_v38, %v11174_v34  ;;  %v12830_v44 = vadd.f32 %v12607_v4, %v12614_v7  ;;  %v7283_v8 = vcombine.low %v6884_v19, %v6885_v18 }
 0x257   : > { %v7267_v55 = vcombine.low %v6882_v30, %v6883_v42  ;;  %v5915_v52 = vrot.slane %v5901_v60, %v11174_v34  ;;  %v12835_v11 = vadd.f32 %v12609_v63, %v12619_v54  ;;  %v7274_v5 = vrot.slane %v7266_v56, %v13590_v58  ;;  %v13611_v42 = vld [vmem:[#allocation46_spill] sm:$0xff] }
 0x258   : > { %v7284_v0 = vcombine.low %v6886_v24, %v6887_v36  ;;  %v5916_v45 = vcombine.high %v5908_v62, %v5908_v62  ;;  %v5924_v38 = vrot.slane %v5908_v62, %v11174_v34  ;;  %v7291_v26 = vrot.slane %v7283_v8, %v13590_v58 }
 0x259   : > { %v7281_v46 = vrot.slane %v7267_v55, %v13590_v58  ;;  %v5917_v7 = vcombine.high %v5915_v52, %v5915_v52  ;;  %v5931_v22 = vrot.slane %v5915_v52, %v11174_v34  ;;  %v13610_v9 = vcombine.high %v13607_v29, %v13607_v29 }
 0x25a   : > { %v7298_v4 = vrot.slane %v7284_v0, %v13590_v58  ;;  %v5938_v63 = vrot.slane %v5916_v45, %v11174_v34  ;;  %v5946_v54 = vcombine.high %v5924_v38, %v5924_v38  ;;  %v6245_v23 = vrot.slane %v5924_v38, %v11246_v59 }
 0x25b   : > { %v7282_v6 = vcombine.low %v7274_v5, %v7281_v46  ;;  %v5945_v31 = vrot.slane %v5917_v7, %v11174_v34  ;;  %v5947_v40 = vcombine.high %v5931_v22, %v5931_v22  ;;  %v6261_v13 = vrot.slane %v5931_v22, %v11246_v59 }
 0x25c   : > { %v7299_v61 = vcombine.low %v7291_v26, %v7298_v4  ;;  %v5948_v25 = vcombine.high %v5938_v63, %v5938_v63  ;;  %v6249_v39 = vrot.slane %v5938_v63, %v11246_v59  ;;  %v6253_v48 = vrot.slane %v5946_v54, %v11246_v59 }
 0x25d   : > { %7682 = vst [vmem:[%s11588_s13 + $0x50] sm:$0xff] %v7282_v6  ;;  %v6490_v10 = vsel %vm5217_vm6, %v13607_v29, %v6245_v23  ;;  %v5949_v49 = vcombine.high %v5945_v31, %v5945_v31  ;;  %v6265_v53 = vrot.slane %v5945_v31, %v11246_v59  ;;  %v6269_v51 = vrot.slane %v5947_v40, %v11246_v59 }
 0x25e   : > { %7683 = vst [vmem:[%s11588_s13 + $0x58] sm:$0xff] %v7299_v61  ;;  %v6494_v47 = vsel %vm5217_vm6, %v13608_v33, %v6261_v13  ;;  %v6257_v14 = vrot.slane %v5948_v25, %v11246_v59  ;;  %v6491_v3 = vsel %vm5217_vm6, %v13609_v15, %v6249_v39  ;;  %v6492_v21 = vsel %vm5217_vm6, %v13610_v9, %v6253_v48 }
 0x25f   : > { %v6613_v35 = vmul.f32 %v11215_v16, %v6490_v10  ;;  %v6273_v30 = vrot.slane %v5949_v49, %v11246_v59  ;;  %v6495_v19 = vsel %vm5217_vm6, %v13611_v42, %v6265_v53  ;;  %v13612_v18 = vcombine.high %v13608_v33, %v13608_v33 }
 0x260   : > { %v6614_v36 = vmul.f32 %v11250_v32, %v6491_v3  ;;  %v13613_v60 = vcombine.high %v13609_v15, %v13609_v15  ;;  %v6615_v55 = vmul.f32 %v13583_v50, %v6492_v21  ;;  %v6617_v62 = vmul.f32 %v11215_v16, %v6494_v47 }
 0x261   : > { %v6496_v24 = vsel %vm5217_vm6, %v13612_v18, %v6269_v51  ;;  %v6618_v8 = vmul.f32 %v11250_v32, %v6495_v19  ;;  %v13614_v0 = vcombine.high %v13611_v42, %v13611_v42  ;;  %v6768_v45 = vadd.f32 %v13586_v17, %v6613_v35 }
 0x262   : > { %v6493_v56 = vsel %vm5217_vm6, %v13613_v60, %v6257_v14  ;;  %v6619_v46 = vmul.f32 %v13583_v50, %v6496_v24  ;;  %v6769_v26 = vadd.f32 %v13587_v2, %v6614_v36  ;;  %v6770_v4 = vadd.f32 %v13588_v27, %v6615_v55 }
 0x263   : > { %v6497_v52 = vsel %vm5217_vm6, %v13614_v0, %v6273_v30  ;;  %v6616_v5 = vmul.f32 %v13584_v41, %v6493_v56  ;;  %v6772_v7 = vadd.f32 %v13586_v17, %v6617_v62  ;;  %v6773_v6 = vadd.f32 %v13587_v2, %v6618_v8 }
 0x264   : > { %v6620_v38 = vmul.f32 %v13584_v41, %v6497_v52  ;;  %v6774_v63 = vadd.f32 %v13588_v27, %v6619_v46  ;;  %v6896_v54 = vmax.f32 %v6768_v45, 0.0  ;;  %v6897_v61 = vmax.f32 %v6769_v26, 0.0  ;;  %v13615_v26 = vld [vmem:[#allocation44_spill] sm:$0xff] }
 0x265   : > { %v6771_v22 = vadd.f32 %v13589_v20, %v6616_v5  ;;  %v6898_v31 = vmax.f32 %v6770_v4, 0.0  ;;  %v6900_v40 = vmax.f32 %v6772_v7, 0.0  ;;  %v6901_v25 = vmax.f32 %v6773_v6, 0.0 }
 0x266   : > { %v6775_v23 = vadd.f32 %v13589_v20, %v6620_v38  ;;  %v6902_v39 = vmax.f32 %v6774_v63, 0.0  ;;  %v5950_v48 = vcombine.high %v12830_v44, %v12830_v44  ;;  %v7334_v10 = vcombine.low %v6896_v54, %v6897_v61 }
 0x267   : > { %v6899_v13 = vmax.f32 %v6771_v22, 0.0  ;;  %v5957_v49 = vrot.slane %v12830_v44, %v11174_v34  ;;  %v5999_v53 = vcombine.high %v12835_v11, %v12835_v11  ;;  %v7351_v33 = vcombine.low %v6900_v40, %v6901_v25  ;;  %v13616_v22 = vld [vmem:[#allocation13_spill] sm:$0xff]  ;;  %v13619_v40 = vld [vmem:[#allocation12_spill] sm:$0xff] }
 0x268   : > { %v6903_v29 = vmax.f32 %v6775_v23, 0.0  ;;  %v5964_v47 = vrot.slane %v5950_v48, %v11174_v34  ;;  %v12904_v14 = vrot.slane %v12835_v11, %v11174_v34  ;;  %v7342_v15 = vrot.slane %v7334_v10, %v13590_v58  ;;  %v13618_v23 = vld [vmem:[#allocation52_spill] sm:$0xff] }
 0x269   : > { %v7335_v51 = vcombine.low %v6898_v31, %v6899_v13  ;;  %v5965_v9 = vcombine.high %v5957_v49, %v5957_v49  ;;  %v5973_v21 = vrot.slane %v5957_v49, %v11174_v34  ;;  %v7359_v44 = vrot.slane %v7351_v33, %v13590_v58 }
 0x26a   : > { %v7352_v3 = vcombine.low %v6902_v39, %v6903_v29  ;;  %v5966_v30 = vcombine.high %v5964_v47, %v5964_v47  ;;  %v5980_v42 = vrot.slane %v5964_v47, %v11174_v34  ;;  %v13617_v63 = vcombine.high %v13615_v26, %v13615_v26  ;;  %v9307_v47 = vpop.f32.mrf.mxu0 }
 0x26b   : > { %v7349_v35 = vrot.slane %v7335_v51, %v13590_v58  ;;  %v5987_v18 = vrot.slane %v5965_v9, %v11174_v34  ;;  %v5995_v24 = vcombine.high %v5973_v21, %v5973_v21  ;;  %v6277_v36 = vrot.slane %v5973_v21, %v11246_v59 }
 0x26c   : > { %v7366_v19 = vrot.slane %v7352_v3, %v13590_v58  ;;  %v5994_v56 = vrot.slane %v5966_v30, %v11174_v34  ;;  %v5996_v55 = vcombine.high %v5980_v42, %v5980_v42  ;;  %v6293_v62 = vrot.slane %v5980_v42, %v11246_v59 }
 0x26d   : > { %v7350_v60 = vcombine.low %v7342_v15, %v7349_v35  ;;  %v5997_v0 = vcombine.high %v5987_v18, %v5987_v18  ;;  %v6281_v52 = vrot.slane %v5987_v18, %v11246_v59  ;;  %v6285_v5 = vrot.slane %v5995_v24, %v11246_v59 }
 0x26e   : > { %v7367_v8 = vcombine.low %v7359_v44, %v7366_v19  ;;  %v5998_v46 = vcombine.high %v5994_v56, %v5994_v56  ;;  %v6297_v45 = vrot.slane %v5994_v56, %v11246_v59  ;;  %v6301_v38 = vrot.slane %v5996_v55, %v11246_v59 }
 0x26f   : > { %7686 = vst [vmem:[%s11588_s13 + $0x70] sm:$0xff] %v7350_v60  ;;  %v6498_v4 = vsel %vm5217_vm6, %v13615_v26, %v6277_v36  ;;  %v6289_v7 = vrot.slane %v5997_v0, %v11246_v59  ;;  %v6499_v6 = vsel %vm5217_vm6, %v13616_v22, %v6281_v52  ;;  %v6500_v54 = vsel %vm5217_vm6, %v13617_v63, %v6285_v5  ;;  %v9308_v0 = vpop.f32.mrf.mxu0 }
 0x270   : > { %7687 = vst [vmem:[%s11588_s13 + $0x78] sm:$0xff] %v7367_v8  ;;  %v6502_v61 = vsel %vm5217_vm6, %v13618_v23, %v6293_v62  ;;  %v6305_v31 = vrot.slane %v5998_v46, %v11246_v59  ;;  %v6503_v13 = vsel %vm5217_vm6, %v13619_v40, %v6297_v45  ;;  %v13620_v25 = vcombine.high %v13618_v23, %v13618_v23 }
 0x271   : > { %v6629_v48 = vmul.f32 %v11215_v16, %v6498_v4  ;;  %v13621_v29 = vcombine.high %v13616_v22, %v13616_v22  ;;  %v6630_v49 = vmul.f32 %v11250_v32, %v6499_v6  ;;  %v6631_v51 = vmul.f32 %v13583_v50, %v6500_v54 }
 0x272   : > { %v6504_v39 = vsel %vm5217_vm6, %v13620_v25, %v6301_v38  ;;  %v6633_v33 = vmul.f32 %v11215_v16, %v6502_v61  ;;  %v13622_v15 = vcombine.high %v13619_v40, %v13619_v40  ;;  %v6634_v21 = vmul.f32 %v11250_v32, %v6503_v13  ;;  %v9347_v13 = vpop.f32.mrf.mxu1 }
 0x273   : > { %v6501_v10 = vsel %vm5217_vm6, %v13621_v29, %v6289_v7  ;;  %v6635_v35 = vmul.f32 %v13583_v50, %v6504_v39  ;;  %v6784_v30 = vadd.f32 %v13586_v17, %v6629_v48  ;;  %v6785_v42 = vadd.f32 %v13587_v2, %v6630_v49 }
 0x274   : > { %v6505_v3 = vsel %vm5217_vm6, %v13622_v15, %v6305_v31  ;;  %v6632_v9 = vmul.f32 %v13584_v41, %v6501_v10  ;;  %v6786_v19 = vadd.f32 %v13588_v27, %v6631_v51  ;;  %v6788_v24 = vadd.f32 %v13586_v17, %v6633_v33 }
 0x275   : > { %v6636_v44 = vmul.f32 %v13584_v41, %v6505_v3  ;;  %v6789_v36 = vadd.f32 %v13587_v2, %v6634_v21  ;;  %v6790_v60 = vadd.f32 %v13588_v27, %v6635_v35  ;;  %v6912_v55 = vmax.f32 %v6784_v30, 0.0  ;;  %v9348_v35 = vpop.f32.mrf.mxu1 }
 0x276   : > { %v6787_v18 = vadd.f32 %v13589_v20, %v6632_v9  ;;  %v6913_v62 = vmax.f32 %v6785_v42, 0.0  ;;  %v6914_v8 = vmax.f32 %v6786_v19, 0.0  ;;  %v6916_v5 = vmax.f32 %v6788_v24, 0.0  ;;  %v13623_v42 = vld [vmem:[#allocation14_spill] sm:$0xff] }
 0x277   : > { %v6791_v56 = vadd.f32 %v13589_v20, %v6636_v44  ;;  %v6917_v46 = vmax.f32 %v6789_v36, 0.0  ;;  %v6918_v45 = vmax.f32 %v6790_v60, 0.0  ;;  %v6013_v4 = vrot.slane %v5999_v53, %v11174_v34 }
 0x278   : > { %v6915_v52 = vmax.f32 %v6787_v18, 0.0  ;;  %v7402_v26 = vcombine.low %v6912_v55, %v6913_v62  ;;  %v6014_v7 = vcombine.high %v12904_v14, %v12904_v14  ;;  %v6022_v63 = vrot.slane %v12904_v14, %v11174_v34  ;;  %v13624_v18 = vld [vmem:[#allocation47_spill] sm:$0xff]  ;;  %v13626_v55 = vld [vmem:[#allocation45_spill] sm:$0xff] }
 0x279   : > { %v6919_v38 = vmax.f32 %v6791_v56, 0.0  ;;  %v7419_v6 = vcombine.low %v6916_v5, %v6917_v46  ;;  %v12972_v54 = vadd.f32 %v9308_v0, %v9307_v47  ;;  %v6015_v31 = vcombine.high %v6013_v4, %v6013_v4 }
 0x27a   : > { %v7403_v22 = vcombine.low %v6914_v8, %v6915_v52  ;;  %v7410_v23 = vrot.slane %v7402_v26, %v13590_v58  ;;  %v6029_v40 = vrot.slane %v6013_v4, %v11174_v34  ;;  %v6036_v25 = vrot.slane %v6014_v7, %v11174_v34  ;;  %v13627_v8 = vld [vmem:[#allocation53_spill] sm:$0xff]  ;;  %v9310_v4 = vpop.f32.mrf.mxu0 }
 0x27b   : > { %v7420_v61 = vcombine.low %v6918_v45, %v6919_v38  ;;  %v7427_v53 = vrot.slane %v7419_v6, %v13590_v58  ;;  %v6044_v39 = vcombine.high %v6022_v63, %v6022_v63  ;;  %v6043_v14 = vrot.slane %v6015_v31, %v11174_v34 }
 0x27c   : > { %v7417_v11 = vrot.slane %v7403_v22, %v13590_v58  ;;  %v6045_v29 = vcombine.high %v6029_v40, %v6029_v40  ;;  %v6309_v10 = vrot.slane %v6022_v63, %v11246_v59  ;;  %v6046_v51 = vcombine.high %v6036_v25, %v6036_v25 }
 0x27d   : > { %v7434_v48 = vrot.slane %v7420_v61, %v13590_v58  ;;  %v6313_v33 = vrot.slane %v6036_v25, %v11246_v59  ;;  %v6317_v47 = vrot.slane %v6044_v39, %v11246_v59  ;;  %v6047_v3 = vcombine.high %v6043_v14, %v6043_v14  ;;  %v9350_v61 = vpop.f32.mrf.mxu1 }
 0x27e   : > { %v7418_v49 = vcombine.low %v7410_v23, %v7417_v11  ;;  %v6325_v9 = vrot.slane %v6029_v40, %v11246_v59  ;;  %v6329_v21 = vrot.slane %v6043_v14, %v11246_v59  ;;  %v6321_v44 = vrot.slane %v6046_v51, %v11246_v59 }
 0x27f   : > { %v7435_v15 = vcombine.low %v7427_v53, %v7434_v48  ;;  %v6333_v30 = vrot.slane %v6045_v29, %v11246_v59  ;;  %v6506_v19 = vsel %vm5217_vm6, %v13623_v42, %v6309_v10  ;;  %v6507_v24 = vsel %vm5217_vm6, %v13624_v18, %v6313_v33  ;;  %v9311_v33 = vpop.f32.mrf.mxu0 }
 0x280   : > { %7690 = vst [vmem:[%s11588_s13 + $0x90] sm:$0xff] %v7418_v49  ;;  %v6337_v36 = vrot.slane %v6047_v3, %v11246_v59  ;;  %v13625_v60 = vcombine.high %v13623_v42, %v13623_v42  ;;  %v6510_v62 = vsel %vm5217_vm6, %v13626_v55, %v6325_v9  ;;  %v6511_v0 = vsel %vm5217_vm6, %v13627_v8, %v6329_v21  ;;  %v9351_v21 = vpop.f32.mrf.mxu1 }
 0x281   : > { %7691 = vst [vmem:[%s11588_s13 + $0x98] sm:$0xff] %v7435_v15  ;;  %v13628_v52 = vcombine.high %v13624_v18, %v13624_v18  ;;  %v13629_v46 = vcombine.high %v13626_v55, %v13626_v55  ;;  %v6645_v38 = vmul.f32 %v11215_v16, %v6506_v19  ;;  %v6646_v26 = vmul.f32 %v11250_v32, %v6507_v24 }
 0x282   : > { %v6508_v56 = vsel %vm5217_vm6, %v13625_v60, %v6317_v47  ;;  %v13630_v7 = vcombine.high %v13627_v8, %v13627_v8  ;;  %v6649_v23 = vmul.f32 %v11215_v16, %v6510_v62  ;;  %v6650_v31 = vmul.f32 %v11250_v32, %v6511_v0 }
 0x283   : > { %v6509_v5 = vsel %vm5217_vm6, %v13628_v52, %v6321_v44  ;;  %v6512_v45 = vsel %vm5217_vm6, %v13629_v46, %v6333_v30  ;;  %v6647_v6 = vmul.f32 %v13583_v50, %v6508_v56  ;;  %v6800_v53 = vadd.f32 %v13586_v17, %v6645_v38 }
 0x284   : > { %v6513_v22 = vsel %vm5217_vm6, %v13630_v7, %v6337_v36  ;;  %v6648_v63 = vmul.f32 %v13584_v41, %v6509_v5  ;;  %v6651_v40 = vmul.f32 %v13583_v50, %v6512_v45  ;;  %v6801_v25 = vadd.f32 %v13587_v2, %v6646_v26  ;;  %v13632_v7 = vld [vmem:[#allocation59_spill] sm:$0xff] }
 0x285   : > { %v6652_v11 = vmul.f32 %v13584_v41, %v6513_v22  ;;  %v6802_v39 = vadd.f32 %v13588_v27, %v6647_v6  ;;  %v6804_v14 = vadd.f32 %v13586_v17, %v6649_v23  ;;  %v6805_v29 = vadd.f32 %v13587_v2, %v6650_v31  ;;  %v13633_v6 = vld [vmem:[#allocation48_spill] sm:$0xff] }
 0x286   : > { %v6803_v48 = vadd.f32 %v13589_v20, %v6648_v63  ;;  %v6806_v10 = vadd.f32 %v13588_v27, %v6651_v40  ;;  %v6928_v51 = vmax.f32 %v6800_v53, 0.0  ;;  %v6929_v47 = vmax.f32 %v6801_v25, 0.0 }
 0x287   : > { %v6807_v49 = vadd.f32 %v13589_v20, %v6652_v11  ;;  %v6930_v15 = vmax.f32 %v6802_v39, 0.0  ;;  %v6932_v9 = vmax.f32 %v6804_v14, 0.0  ;;  %v6933_v44 = vmax.f32 %v6805_v29, 0.0 }
 0x288   : > { %v6931_v3 = vmax.f32 %v6803_v48, 0.0  ;;  %v6934_v30 = vmax.f32 %v6806_v10, 0.0  ;;  %v3823_v19 = vadd.f32 %v12972_v54, %v12589_v57  ;;  %v7470_v18 = vcombine.low %v6928_v51, %v6929_v47 }
 0x289   : > { %v6935_v42 = vmax.f32 %v6807_v49, 0.0  ;;  %v9349_v36 = vadd.f32 %v9348_v35, %v9347_v13  ;;  %v9312_v60 = vadd.f32 %v9311_v33, %v9310_v4  ;;  %v13035_v56 = vrot.slane %v12539_v37, %v11174_v34 }
 0x28a   : > { %v7471_v24 = vcombine.low %v6930_v15, %v6931_v3  ;;  %v7487_v55 = vcombine.low %v6932_v9, %v6933_v44  ;;  %v9352_v8 = vadd.f32 %v9351_v21, %v9350_v61  ;;  %v7478_v0 = vrot.slane %v7470_v18, %v13590_v58 }
 0x28b   : > { %v7488_v62 = vcombine.low %v6934_v30, %v6935_v42  ;;  %v4031_v5 = vadd.f32 %v9349_v36, %v3823_v19  ;;  %v3824_v46 = vadd.f32 %v9312_v60, %v12595_v1  ;;  %v13631_v57 = vcombine.high %v12536_v28, %v12536_v28  ;;  %v13634_v30 = vld [vmem:[#allocation55_spill] sm:$0xff] }
 0x28c   : > { %v7485_v52 = vrot.slane %v7471_v24, %v13590_v58  ;;  %v13050_v13 = vrot.slane %v5649_v43, %v11174_v34  ;;  %v7495_v35 = vrot.slane %v7487_v55, %v13590_v58  ;;  %v5631_v28 = vcombine.high %v12548_v12, %v12548_v12 }
 0x28d   : > { %v13044_v54 = vrot.slane %v13631_v57, %v11174_v34  ;;  %v7502_v45 = vrot.slane %v7488_v62, %v13590_v58  ;;  %v6048_v26 = vcombine.high %v4031_v5, %v4031_v5  ;;  %v6055_v1 = vrot.slane %v4031_v5, %v11174_v34 }
 0x28e   : > { %v7486_v38 = vcombine.low %v7478_v0, %v7485_v52  ;;  %v4032_v4 = vadd.f32 %v9352_v8, %v3824_v46  ;;  %v5632_v22 = vcombine.high %v13632_v7, %v13632_v7  ;;  %v5678_v37 = vcombine.high %v13633_v6, %v13633_v6  ;;  %v13636_v0 = vld [vmem:[#allocation57_spill] sm:$0xff] }
 0x28f   : > { %v7503_v43 = vcombine.low %v7495_v35, %v7502_v45  ;;  %v6062_v63 = vrot.slane %v6048_v26, %v11174_v34  ;;  %v6063_v23 = vcombine.high %v6055_v1, %v6055_v1  ;;  %v6071_v61 = vrot.slane %v6055_v1, %v11174_v34 }
 0x290   : > { %7694 = vst [vmem:[%s11588_s13 + $0xb0] sm:$0xff] %v7486_v38  ;;  %v6097_v31 = vcombine.high %v4032_v4, %v4032_v4  ;;  %v5679_v40 = vcombine.high %v13035_v56, %v13035_v56  ;;  %v5680_v11 = vcombine.high %v13044_v54, %v13044_v54  ;;  %v5681_v53 = vcombine.high %v13050_v13, %v13050_v13 }
 0x291   : > { %7695 = vst [vmem:[%s11588_s13 + $0xb8] sm:$0xff] %v7503_v43  ;;  %v6104_v25 = vrot.slane %v4032_v4, %v11174_v34  ;;  %v6064_v39 = vcombine.high %v6062_v63, %v6062_v63  ;;  %v6078_v48 = vrot.slane %v6062_v63, %v11174_v34  ;;  %v6085_v14 = vrot.slane %v6063_v23, %v11174_v34 }
 0x292   : > { %v6093_v29 = vcombine.high %v6071_v61, %v6071_v61  ;;  %v6341_v10 = vrot.slane %v6071_v61, %v11246_v59  ;;  %v6111_v49 = vrot.slane %v6097_v31, %v11174_v34  ;;  %v13635_v62 = vcombine.high %v13634_v30, %v13634_v30 }
 0x293   : > { %v6112_v51 = vcombine.high %v6104_v25, %v6104_v25  ;;  %v13077_v33 = vrot.slane %v6104_v25, %v11174_v34  ;;  %v6092_v47 = vrot.slane %v6064_v39, %v11174_v34  ;;  %v6094_v15 = vcombine.high %v6078_v48, %v6078_v48 }
 0x294   : > { %v6095_v3 = vcombine.high %v6085_v14, %v6085_v14  ;;  %v6345_v9 = vrot.slane %v6085_v14, %v11246_v59  ;;  %v6349_v21 = vrot.slane %v6093_v29, %v11246_v59  ;;  %v6357_v44 = vrot.slane %v6078_v48, %v11246_v59 }
 0x295   : > { %v6514_v42 = vsel %vm5217_vm6, %v13634_v30, %v6341_v10  ;;  %v6113_v19 = vcombine.high %v6111_v49, %v6111_v49  ;;  %v6096_v18 = vcombine.high %v6092_v47, %v6092_v47  ;;  %v6361_v36 = vrot.slane %v6092_v47, %v11246_v59 }
 0x296   : > { %v6353_v24 = vrot.slane %v6095_v3, %v11246_v59  ;;  %v6365_v60 = vrot.slane %v6094_v15, %v11246_v59  ;;  %v6515_v55 = vsel %vm5217_vm6, %v12548_v12, %v6345_v9  ;;  %v6516_v8 = vsel %vm5217_vm6, %v13635_v62, %v6349_v21 }
 0x297   : > { %v6518_v52 = vsel %vm5217_vm6, %v13636_v0, %v6357_v44  ;;  %v6661_v5 = vmul.f32 %v11215_v16, %v6514_v42  ;;  %v6369_v46 = vrot.slane %v6096_v18, %v11246_v59  ;;  %v6519_v35 = vsel %vm5217_vm6, %v13632_v7, %v6361_v36 }
 0x298   : > { %v6517_v57 = vsel %vm5217_vm6, %v5631_v28, %v6353_v24  ;;  %v13637_v12 = vcombine.high %v13636_v0, %v13636_v0  ;;  %v6662_v38 = vmul.f32 %v11250_v32, %v6515_v55  ;;  %v6663_v26 = vmul.f32 %v13583_v50, %v6516_v8 }
 0x299   : > { %v6664_v1 = vmul.f32 %v13584_v41, %v6517_v57  ;;  %v6665_v4 = vmul.f32 %v11215_v16, %v6518_v52  ;;  %v6521_v43 = vsel %vm5217_vm6, %v5632_v22, %v6369_v46  ;;  %v6666_v28 = vmul.f32 %v11250_v32, %v6519_v35 }
 0x29a   : > { %v6520_v45 = vsel %vm5217_vm6, %v13637_v12, %v6365_v60  ;;  %v6816_v7 = vadd.f32 %v13586_v17, %v6661_v5  ;;  %v6668_v23 = vmul.f32 %v13584_v41, %v6521_v43  ;;  %v6817_v61 = vadd.f32 %v13587_v2, %v6662_v38 }
 0x29b   : > { %v6667_v63 = vmul.f32 %v13583_v50, %v6520_v45  ;;  %v6818_v31 = vadd.f32 %v13588_v27, %v6663_v26  ;;  %v6819_v25 = vadd.f32 %v13589_v20, %v6664_v1  ;;  %v6820_v39 = vadd.f32 %v13586_v17, %v6665_v4 }
 0x29c   : > { %v6821_v48 = vadd.f32 %v13587_v2, %v6666_v28  ;;  %v6944_v14 = vmax.f32 %v6816_v7, 0.0  ;;  %v6823_v29 = vadd.f32 %v13589_v20, %v6668_v23  ;;  %v6945_v10 = vmax.f32 %v6817_v61, 0.0 }
 0x29d   : > { %v6822_v22 = vadd.f32 %v13588_v27, %v6667_v63  ;;  %v6946_v47 = vmax.f32 %v6818_v31, 0.0  ;;  %v6947_v15 = vmax.f32 %v6819_v25, 0.0  ;;  %v6948_v3 = vmax.f32 %v6820_v39, 0.0 }
 0x29e   : > { %v6949_v9 = vmax.f32 %v6821_v48, 0.0  ;;  %v6127_v44 = vrot.slane %v6111_v49, %v11174_v34  ;;  %v6951_v30 = vmax.f32 %v6823_v29, 0.0  ;;  %v7538_v42 = vcombine.low %v6944_v14, %v6945_v10 }
 0x29f   : > { %v6950_v21 = vmax.f32 %v6822_v22, 0.0  ;;  %v7539_v18 = vcombine.low %v6946_v47, %v6947_v15  ;;  %v6134_v24 = vrot.slane %v6112_v51, %v11174_v34  ;;  %v6141_v60 = vrot.slane %v6113_v19, %v11174_v34 }
 0x2a0   : > { %v7555_v36 = vcombine.low %v6948_v3, %v6949_v9  ;;  %v6142_v55 = vcombine.high %v13077_v33, %v13077_v33  ;;  %v6143_v62 = vcombine.high %v6127_v44, %v6127_v44  ;;  %v7546_v8 = vrot.slane %v7538_v42, %v13590_v58 }
 0x2a1   : > { %v7553_v0 = vrot.slane %v7539_v18, %v13590_v58  ;;  %v7556_v52 = vcombine.low %v6950_v21, %v6951_v30  ;;  %v6144_v5 = vcombine.high %v6134_v24, %v6134_v24  ;;  %v6145_v46 = vcombine.high %v6141_v60, %v6141_v60 }
 0x2a2   : > { %v7563_v49 = vrot.slane %v7555_v36, %v13590_v58  ;;  %v6373_v51 = vrot.slane %v13077_v33, %v11246_v59  ;;  %v6377_v57 = vrot.slane %v6134_v24, %v11246_v59  ;;  %v6381_v35 = vrot.slane %v6142_v55, %v11246_v59 }
 0x2a3   : > { %v7554_v34 = vcombine.low %v7546_v8, %v7553_v0  ;;  %v7570_v19 = vrot.slane %v7556_v52, %v13590_v58  ;;  %v6385_v12 = vrot.slane %v6144_v5, %v11246_v59  ;;  %v6389_v45 = vrot.slane %v6127_v44, %v11246_v59 }
 0x2a4   : > { %v6393_v38 = vrot.slane %v6141_v60, %v11246_v59  ;;  %v6397_v26 = vrot.slane %v6143_v62, %v11246_v59  ;;  %v6401_v1 = vrot.slane %v6145_v46, %v11246_v59  ;;  %v6522_v33 = vsel %vm5217_vm6, %v13633_v6, %v6373_v51 }
 0x2a5   : > { %v7571_v4 = vcombine.low %v7563_v49, %v7570_v19  ;;  %7698 = vst [vmem:[%s11588_s13 + $0xd0] sm:$0xff] %v7554_v34  ;;  %v6523_v43 = vsel %vm5217_vm6, %v13044_v54, %v6377_v57  ;;  %v6524_v28 = vsel %vm5217_vm6, %v5678_v37, %v6381_v35  ;;  %v6525_v63 = vsel %vm5217_vm6, %v5680_v11, %v6385_v12 }
 0x2a6   : > { %v6526_v59 = vsel %vm5217_vm6, %v13035_v56, %v6389_v45  ;;  %v6527_v7 = vsel %vm5217_vm6, %v13050_v13, %v6393_v38  ;;  %v6528_v23 = vsel %vm5217_vm6, %v5679_v40, %v6397_v26  ;;  %v6529_v6 = vsel %vm5217_vm6, %v5681_v53, %v6401_v1 }
 0x2a7   : > { %7699 = vst [vmem:[%s11588_s13 + $0xd8] sm:$0xff] %v7571_v4  ;;  %v6677_v54 = vmul.f32 %v11215_v16, %v6522_v33  ;;  %v6678_v37 = vmul.f32 %v11250_v32, %v6523_v43  ;;  %v6679_v11 = vmul.f32 %v13583_v50, %v6524_v28  ;;  %v6680_v61 = vmul.f32 %v13584_v41, %v6525_v63 }
 0x2a8   : > { %v6681_v31 = vmul.f32 %v11215_v16, %v6526_v59  ;;  %v6682_v56 = vmul.f32 %v11250_v32, %v6527_v7  ;;  %v6683_v40 = vmul.f32 %v13583_v50, %v6528_v23  ;;  %v6684_v25 = vmul.f32 %v13584_v41, %v6529_v6 }
 0x2a9   : > { %v6832_v13 = vadd.f32 %v13586_v17, %v6677_v54  ;;  %v6833_v53 = vadd.f32 %v13587_v2, %v6678_v37  ;;  %v6834_v39 = vadd.f32 %v13588_v27, %v6679_v11  ;;  %v6835_v48 = vadd.f32 %v13589_v20, %v6680_v61 }
 0x2aa   : > { %v6836_v22 = vadd.f32 %v13586_v17, %v6681_v31  ;;  %v6837_v14 = vadd.f32 %v13587_v2, %v6682_v56  ;;  %v6838_v16 = vadd.f32 %v13588_v27, %v6683_v40  ;;  %v6839_v32 = vadd.f32 %v13589_v20, %v6684_v25 }
 0x2ab   : > { %v6960_v50 = vmax.f32 %v6832_v13, 0.0  ;;  %v6961_v41 = vmax.f32 %v6833_v53, 0.0  ;;  %v6962_v29 = vmax.f32 %v6834_v39, 0.0  ;;  %v6963_v10 = vmax.f32 %v6835_v48, 0.0 }
 0x2ac   : > { %v6964_v47 = vmax.f32 %v6836_v22, 0.0  ;;  %v6965_v15 = vmax.f32 %v6837_v14, 0.0  ;;  %v6966_v3 = vmax.f32 %v6838_v16, 0.0  ;;  %v6967_v9 = vmax.f32 %v6839_v32, 0.0 }
 0x2ad   : > { %v7606_v21 = vcombine.low %v6960_v50, %v6961_v41  ;;  %v7607_v17 = vcombine.low %v6962_v29, %v6963_v10 }
 0x2ae   : > { %v7623_v44 = vcombine.low %v6964_v47, %v6965_v15  ;;  %v7624_v2 = vcombine.low %v6966_v3, %v6967_v9 }
 0x2af   : > { %v7614_v27 = vrot.slane %v7606_v21, %v13590_v58  ;;  %v7621_v20 = vrot.slane %v7607_v17, %v13590_v58 }
 0x2b0   : > { %v7631_v30 = vrot.slane %v7623_v44, %v13590_v58  ;;  %v7638_v42 = vrot.slane %v7624_v2, %v13590_v58 }
 0x2b1   : > { %v7622_v18 = vcombine.low %v7614_v27, %v7621_v20 }
 0x2b2   : > { %v7639_v24 = vcombine.low %v7631_v30, %v7638_v42 }
 0x2b3   : > { %7702 = vst [vmem:[%s11588_s13 + $0xf0] sm:$0xff] %v7622_v18 }
 0x2b4   : > { %7703 = vst [vmem:[%s11588_s13 + $0xf8] sm:$0xff] %v7639_v24 }
 0x2b5   : > { %9699 = shalt.err (!%p9696_p5)
}
 0x2b6   : > { %s9700_s20 = scalar_lea.hbm %s13190_s17, 4096  ;;  %s9704_s8 = scalar_lea.hbm %s13249_s6, 8192 }
 0x2b7   : > { %p9701_p6 = scmp.ne.s32.totalorder %s13190_s17, %s9700_s20  ;;  %p9705_p10 = scmp.lt.s32.totalorder %s13190_s17, %s13249_s6 }
 0x2b8   : > { %p9706_p11 = scmp.lt.s32.totalorder %s9704_s8, %s9700_s20 }
 0x2b9   : > { %p9702_p7 = pnand %p9701_p6, %p9844_p4 }
 0x2ba   : > { %p9707_p12 = por %p9706_p11, %p9705_p10 }
 0x2bb   : > { %p9703_p9 = pneg %p9702_p7 }
 0x2bd   : > { %p9708_p13 = pnand %p9707_p12, %p9703_p9 }
 0x2bf   : > { %9711 = shalt.err (!%p9708_p13)
}
 0x2c0   : > { %s9767_s15 = smov 128   ;;  %s9768_s16 = smov 8  }
 0x2c1   : > { %9355 = dma.vmem_to_hbm [thread:$0]  (%p9844_p4), %s13192_s28, 4096, %s13190_s17, %s13198_s24, %s9767_s15, %s9767_s15, %s9768_s16  }
 0x2c2 PF: > { %p9362_p0 = scmp.ge.s32.totalorder %s9762_s26, 2  ;;  %s7737_s14 = sand.u32 1, %s9742_s21  }
 0x2c3   : > { %s7738_s18 = scalar_lea.sflag [#allocation3], %s7737_s14 }
 0x2c4   : > { %p9358_p1 = pnand %p9362_p0, %p9851_p8 }
 0x2c6   : > { %p9359_p2 = pneg %p9358_p1 }
 0x2c8   : > { %9737 = dma.done.wait (%p9359_p2), %s7738_s18, 4096  }
 0x2c9   : > { %9739 = vsyncadd (%p9359_p2), %s7738_s18, 4294963200  ;;  %s19_s26 = sadd.s32 1, %s9762_s26   ;;  %s13638_s21 = smov %s9746_s22 }
 0x2ca   : > { %p16_p3 = scmp.ge.s32.totalorder %s19_s26, 4   ;;  %s13639_s22 = smov %s9750_s23 }
 0x2cb   : > { %s13640_s23 = smov %s9857_s10  ;;  %s13641_s24 = smov %s9758_s25 }
 0x2cc   : > { %s13642_s25 = smov %s13644_s29  ;;  %18 = sbr.rel (!%p16_p3) target bundleno = 4 (0x4), region = 109 }
 0x2d1   :  { %7743 = vsyncpa [#allocation3], 1 }
 0x2d2   :  { %7745 = vsyncpa [#allocation3 + $0x1], 1 }

</bundles_post_ra>
